<compile_context>
chip_gen: v5e
topology: v5e:2x2
jax: 0.10.0
libtpu: 0.0.40
codegen_flags: <defaults>
</compile_context>

<pallas_src>
import functools

import jax
import jax.numpy as jnp
from jax.experimental import pallas as pl
from jax.experimental.pallas import tpu as pltpu


def _round_up(x, m):
    return (x + m - 1) // m * m


# ----------------------------------------------------------------------------
# Kernel 1: tiled MXU matmul (im2col conv) with fused LeakyReLU epilogue and
#           optionally fused BatchNorm batch statistics (per-channel sum / sumsq)
# ----------------------------------------------------------------------------
def _conv_matmul_kernel(a_ref, w_ref, o_ref, *rest, negative_slope, with_stats):
    if with_stats:
        sum_ref, sq_ref, acc_ref = rest
    else:
        (acc_ref,) = rest

    m_idx = pl.program_id(1)
    k_idx = pl.program_id(2)
    nk = pl.num_programs(2)

    @pl.when(k_idx == 0)
    def _():
        acc_ref[...] = jnp.zeros_like(acc_ref)

    acc_ref[...] += jnp.dot(a_ref[...], w_ref[...],
                            preferred_element_type=jnp.float32)

    if with_stats:
        # Stats block stays resident for the whole (m, k) sweep of this N tile.
        @pl.when((k_idx == nk - 1) & (m_idx == 0))
        def _():
            sum_ref[...] = jnp.zeros_like(sum_ref)
            sq_ref[...] = jnp.zeros_like(sq_ref)

    @pl.when(k_idx == nk - 1)
    def _():
        acc = acc_ref[...]
        if with_stats:
            # Ride the spare VPU/XLU slots while the MXU pipeline drains.
            sum_ref[...] += jnp.sum(acc, axis=0, keepdims=True)
            sq_ref[...] += jnp.sum(acc * acc, axis=0, keepdims=True)
        if negative_slope is not None:
            acc = jnp.where(acc >= 0, acc, jnp.float32(negative_slope) * acc)
        o_ref[...] = acc.astype(o_ref.dtype)


def conv_matmul(patches, w2, *, with_stats=False, negative_slope=None,
                out_dtype=jnp.bfloat16, max_tile_m=512, max_tile_n=256,
                max_tile_k=1024):
    """(M, K) x (K, N) matmul on the MXU in bf16 with f32 accumulation.

    Returns the padded (Mpad, Npad) product (plus (1, Npad) f32 sum / sumsq if
    with_stats).  Padding rows/cols are zero-filled and sliced off by the caller.
    """
    m, k = patches.shape
    k2, n = w2.shape
    assert k == k2

    # Lane-dense / MXU-friendly padding (N, K multiples of 128; M multiple of 8).
    n_pad = _round_up(n, 128)
    k_pad = _round_up(k, 128)
    tile_m = min(_round_up(m, 8), max_tile_m)
    m_pad = _round_up(m, tile_m)
    tile_n = min(n_pad, max_tile_n)
    n_pad = _round_up(n_pad, tile_n)
    tile_k = min(k_pad, max_tile_k)
    k_pad = _round_up(k_pad, tile_k)

    a = patches
    if (m_pad, k_pad) != (m, k):
        a = jnp.pad(a, ((0, m_pad - m), (0, k_pad - k)))
    wp = w2
    if (k_pad, n_pad) != (k, n):
        wp = jnp.pad(wp, ((0, k_pad - k), (0, n_pad - n)))
    a = a.astype(jnp.bfloat16)
    wp = wp.astype(jnp.bfloat16)

    grid = (n_pad // tile_n, m_pad // tile_m, k_pad // tile_k)

    in_specs = [pl.BlockSpec((tile_m, tile_k), lambda nb, mb, kb: (mb, kb)),
                pl.BlockSpec((tile_k, tile_n), lambda nb, mb, kb: (kb, nb))]

    if with_stats:
        out_shape = (jax.ShapeDtypeStruct((m_pad, n_pad), out_dtype),
                     jax.ShapeDtypeStruct((1, n_pad), jnp.float32),
                     jax.ShapeDtypeStruct((1, n_pad), jnp.float32))
        out_specs = (pl.BlockSpec((tile_m, tile_n), lambda nb, mb, kb: (mb, nb)),
                     pl.BlockSpec((1, tile_n), lambda nb, mb, kb: (0, nb)),
                     pl.BlockSpec((1, tile_n), lambda nb, mb, kb: (0, nb)))
        # Stats accumulate across the M axis -> it must stay sequential.
        semantics = ("parallel", "arbitrary", "arbitrary")
    else:
        out_shape = jax.ShapeDtypeStruct((m_pad, n_pad), out_dtype)
        out_specs = pl.BlockSpec((tile_m, tile_n), lambda nb, mb, kb: (mb, nb))
        semantics = ("parallel", "parallel", "arbitrary")

    return pl.pallas_call(
        functools.partial(_conv_matmul_kernel,
                          negative_slope=negative_slope,
                          with_stats=with_stats),
        out_shape=out_shape,
        grid=grid,
        in_specs=in_specs,
        out_specs=out_specs,
        scratch_shapes=[pltpu.VMEM((tile_m, tile_n), jnp.float32)],
        compiler_params=pltpu.CompilerParams(dimension_semantics=semantics),
    )(a, wp)


# ----------------------------------------------------------------------------
# Kernel 2: fused BatchNorm normalize (gamma=1, beta=0) + LeakyReLU
#           [+ the next block's Noise add]
# ----------------------------------------------------------------------------
def _bn_lrelu_kernel(*refs, negative_slope, sigma):
    if sigma is not None:
        x_ref, scale_ref, shift_ref, n_ref, o_ref = refs
    else:
        x_ref, scale_ref, shift_ref, o_ref = refs
    y = x_ref[...].astype(jnp.float32) * scale_ref[...] + shift_ref[...]
    y = jnp.where(y >= 0, y, jnp.float32(negative_slope) * y)
    if sigma is not None:
        y = y + jnp.float32(sigma) * n_ref[...].astype(jnp.float32)
    o_ref[...] = y.astype(o_ref.dtype)


def bn_lrelu(y_pad, mean, var, *, eps=1e-5, negative_slope=0.2,
             noise=None, sigma=None, out_dtype=jnp.bfloat16, max_tile_m=512):
    m_pad, n_pad = y_pad.shape
    scale = jax.lax.rsqrt(var + jnp.float32(eps))        # (1, Npad) f32
    shift = (-mean * scale).astype(jnp.float32)          # (1, Npad) f32
    tile_m = min(m_pad, max_tile_m)

    in_specs = [pl.BlockSpec((tile_m, n_pad), lambda i: (i, 0)),
                pl.BlockSpec((1, n_pad), lambda i: (0, 0)),
                pl.BlockSpec((1, n_pad), lambda i: (0, 0))]
    args = [y_pad, scale, shift]
    fused_noise = noise is not None
    if fused_noise:
        in_specs.append(pl.BlockSpec((tile_m, n_pad), lambda i: (i, 0)))
        args.append(noise)

    return pl.pallas_call(
        functools.partial(_bn_lrelu_kernel, negative_slope=negative_slope,
                          sigma=float(sigma) if fused_noise else None),
        out_shape=jax.ShapeDtypeStruct((m_pad, n_pad), out_dtype),
        grid=(m_pad // tile_m,),
        in_specs=in_specs,
        out_specs=pl.BlockSpec((tile_m, n_pad), lambda i: (i, 0)),
        compiler_params=pltpu.CompilerParams(dimension_semantics=("parallel",)),
    )(*args)


# ----------------------------------------------------------------------------
# Conv2d(kernel=4, bias=False) as NHWC im2col (wrapper-side slicing) + matmul
# ----------------------------------------------------------------------------
def _im2col_nhwc(x, kh, kw, stride, pad):
    b, h, w, c = x.shape
    ho = (h + 2 * pad - kh) // stride + 1
    wo = (w + 2 * pad - kw) // stride + 1
    xp = jnp.pad(x, ((0, 0), (pad, pad), (pad, pad), (0, 0)))
    cols = []
    for i in range(kh):
        for j in range(kw):
            cols.append(xp[:, i:i + stride * (ho - 1) + 1:stride,
                              j:j + stride * (wo - 1) + 1:stride, :])
    patches = jnp.stack(cols, axis=3)                     # (B, Ho, Wo, kh*kw, C)
    return patches.reshape(b * ho * wo, kh * kw * c), ho, wo


def conv_block(x_nhwc, weight, *, stride, pad, use_bn, negative_slope,
               post_noise_key=None, sigma=None, eps=1e-5,
               out_dtype=jnp.bfloat16):
    """Conv2d(bias=False) [-> BatchNorm2d] [-> LeakyReLU] [-> Noise of next block]."""
    b = x_nhwc.shape[0]
    o_ch, c, kh, kw = weight.shape
    patches, ho, wo = _im2col_nhwc(x_nhwc, kh, kw, stride, pad)
    w2 = weight.transpose(2, 3, 1, 0).reshape(kh * kw * c, o_ch)  # (kh*kw*C, O)
    m = patches.shape[0]

    if use_bn:
        y_pad, s, sq = conv_matmul(patches, w2, with_stats=True,
                                   negative_slope=None, out_dtype=out_dtype)
        # Training-mode batch stats (gamma=1, beta=0, biased variance).
        mean = s / jnp.float32(m)
        var = jnp.maximum(sq / jnp.float32(m) - mean * mean, 0.0)
        noise = None
        if post_noise_key is not None:
            noise = jax.random.normal(post_noise_key, y_pad.shape,
                                      dtype=jnp.bfloat16)
        y_pad = bn_lrelu(y_pad, mean, var, eps=eps,
                         negative_slope=negative_slope,
                         noise=noise, sigma=sigma, out_dtype=out_dtype)
    else:
        y_pad = conv_matmul(patches, w2, with_stats=False,
                            negative_slope=negative_slope, out_dtype=out_dtype)

    y = y_pad[:m, :o_ch].reshape(b, ho, wo, o_ch)          # drop M/N padding
    if (not use_bn) and post_noise_key is not None:
        y = y + jnp.asarray(sigma, y.dtype) * jax.random.normal(
            post_noise_key, y.shape, dtype=y.dtype)
    return y


# ----------------------------------------------------------------------------
# ImageDiscriminator
# ----------------------------------------------------------------------------
def image_discriminator_init(key, n_channels, ndf=64):
    ks = jax.random.split(key, 5)

    def w(k, o, c):
        return 0.02 * jax.random.normal(k, (o, c, 4, 4), dtype=jnp.float32)

    return {
        "w1": w(ks[0], ndf, n_channels),
        "w2": w(ks[1], ndf * 2, ndf),
        "w3": w(ks[2], ndf * 4, ndf * 2),
        "w4": w(ks[3], ndf * 8, ndf * 4),
        "w5": w(ks[4], 1, ndf * 8),
    }


def image_discriminator_forward(params, x, *, use_noise=False, noise_sigma=None,
                                noise_rng=None):
    slope = 0.2
    keys = list(jax.random.split(noise_rng, 4)) if use_noise else [None] * 4

    h = jnp.transpose(x, (0, 2, 3, 1))                     # NCHW -> NHWC, once
    if use_noise:                                          # Noise before conv1
        h = h + jnp.asarray(noise_sigma, h.dtype) * jax.random.normal(
            keys[0], h.shape, dtype=h.dtype)

    # conv1 + LeakyReLU (fused); post-noise = Noise before conv2
    h = conv_block(h, params["w1"], stride=2, pad=1, use_bn=False,
                   negative_slope=slope,
                   post_noise_key=keys[1], sigma=noise_sigma)
    # conv2 + BN + LeakyReLU; fused post-noise = Noise before conv3
    h = conv_block(h, params["w2"], stride=2, pad=1, use_bn=True,
                   negative_slope=slope,
                   post_noise_key=keys[2], sigma=noise_sigma)
    # conv3 + BN + LeakyReLU; fused post-noise = Noise before conv4
    h = conv_block(h, params["w3"], stride=2, pad=1, use_bn=True,
                   negative_slope=slope,
                   post_noise_key=keys[3], sigma=noise_sigma)
    # conv4 + BN + LeakyReLU (no noise before conv5)
    h = conv_block(h, params["w4"], stride=2, pad=1, use_bn=True,
                   negative_slope=slope)
    # final conv: no noise / BN / activation; f32 output
    h = conv_block(h, params["w5"], stride=1, pad=0, use_bn=False,
                   negative_slope=None, out_dtype=jnp.float32)
    return jnp.transpose(h, (0, 3, 1, 2))                  # NHWC -> NCHW (B,1,1,1)


# ----------------------------------------------------------------------------
# Pure-JAX reference (mirrors the bf16 storage / f32-accumulation data flow)
# ----------------------------------------------------------------------------
def _reference_forward(params, x, eps=1e-5, slope=0.2):
    def conv(h, w, stride, pad):
        return jax.lax.conv_general_dilated(
            h.astype(jnp.bfloat16), w.astype(jnp.bfloat16),
            (stride, stride), [(pad, pad), (pad, pad)],
            dimension_numbers=("NCHW", "OIHW", "NCHW"),
            preferred_element_type=jnp.float32)

    def lrelu(h):
        return jnp.where(h >= 0, h, slope * h)

    def bn_lrelu_ref(y):                                   # y: f32 conv output
        mean = jnp.mean(y, axis=(0, 2, 3), keepdims=True)
        var = jnp.maximum(jnp.mean(y * y, axis=(0, 2, 3), keepdims=True)
                          - mean * mean, 0.0)
        scale = jax.lax.rsqrt(var + eps)
        shift = -mean * scale
        ybf = y.astype(jnp.bfloat16).astype(jnp.float32)
        return lrelu(ybf * scale + shift).astype(jnp.bfloat16)

    h = lrelu(conv(x, params["w1"], 2, 1)).astype(jnp.bfloat16)
    h = bn_lrelu_ref(conv(h, params["w2"], 2, 1))
    h = bn_lrelu_ref(conv(h, params["w3"], 2, 1))
    h = bn_lrelu_ref(conv(h, params["w4"], 2, 1))
    return conv(h, params["w5"], 1, 0)


if __name__ == "__main__":
    key = jax.random.PRNGKey(0)
    k_x, k_w, k_noise = jax.random.split(key, 3)

    # DCGAN-style discriminator needs 64x64 inputs (four stride-2 convs + 4x4 conv).
    B, n_channels, H, W = 2, 3, 64, 64
    ndf = 8
    x = jax.random.normal(k_x, (B, n_channels, H, W), dtype=jnp.float32)
    params = image_discriminator_init(k_w, n_channels, ndf=ndf)

    fwd = jax.jit(lambda p, xx: image_discriminator_forward(p, xx))
    out = jax.block_until_ready(fwd(params, x))
    assert out.shape == (B, 1, 1, 1) and out.dtype == jnp.float32
    assert bool(jnp.all(jnp.isfinite(out)))

    # Cross-check the Pallas path against a pure-JAX/XLA reference.
    ref = _reference_forward(params, x)
    err = float(jnp.max(jnp.abs(out - ref)))
    assert err < 5e-2, f"mismatch vs reference: {err}"

    # use_noise=True path (also exercises the fused noise add inside bn_lrelu).
    fwd_noise = jax.jit(lambda p, xx, k: image_discriminator_forward(
        p, xx, use_noise=True, noise_sigma=0.2, noise_rng=k))
    out_n = jax.block_until_ready(fwd_noise(params, x, k_noise))
    assert out_n.shape == (B, 1, 1, 1)
    assert bool(jnp.all(jnp.isfinite(out_n)))

    # Plain-JAX Noise helper sanity check (sigma=0.2 => std of added noise ~0.2).
    noise = 0.2 * jax.random.normal(k_noise, x.shape, dtype=jnp.float32)
    noise_std = float(jnp.std((x + noise) - x))
    assert 0.15 < noise_std < 0.25, f"unexpected noise std {noise_std}"

    print("KERNEL_OK")
</pallas_src>

<mosaic_0001>
module attributes {stable_mosaic.version = 11 : i64} {
  func.func @_conv_matmul_kernel(%arg0: i32, %arg1: i32, %arg2: i32, %arg3: memref<512x128xbf16, #tpu.memory_space<vmem>>, %arg4: memref<128x128xbf16, #tpu.memory_space<vmem>>, %arg5: memref<512x128xbf16, #tpu.memory_space<vmem>>, %arg6: memref<512x128xf32, #tpu.memory_space<vmem>>) attributes {dimension_semantics = [#tpu.dimension_semantics<parallel>, #tpu.dimension_semantics<parallel>, #tpu.dimension_semantics<arbitrary>], iteration_bounds = array<i64: 1, 4, 1>, scalar_prefetch = 0 : i64, scratch_operands = 1 : i64, tpu.core_type = #tpu.core_type<tc>, window_params = [{transform_indices = @transform_0, window_bounds = array<i64: 512, 128>}, {transform_indices = @transform_1, window_bounds = array<i64: 128, 128>}, {transform_indices = @transform_2, window_bounds = array<i64: 512, 128>}]} {
    %c0_i32 = arith.constant 0 : i32
    %0 = arith.cmpi eq, %arg2, %c0_i32 : i32
    %1 = arith.extui %0 : i1 to i32
    %c0_i32_0 = arith.constant 0 : i32
    %2 = arith.cmpi ne, %1, %c0_i32_0 : i32
    scf.if %2 {
      %cst_10 = arith.constant 0.000000e+00 : f32
      %12 = vector.broadcast %cst_10 : f32 to vector<512x128xf32>
      %c0_11 = arith.constant 0 : index
      %c0_12 = arith.constant 0 : index
      %13 = vector.load %arg6[%c0_11, %c0_12] : memref<512x128xf32, #tpu.memory_space<vmem>>, vector<512x128xf32>
      tpu.vector_store %arg6[%c0_11, %c0_12], %12 {strides = array<i32>} : memref<512x128xf32, #tpu.memory_space<vmem>>, vector<512x128xf32>,
    } else {
    }
    %c0 = arith.constant 0 : index
    %c0_1 = arith.constant 0 : index
    %3 = vector.load %arg6[%c0, %c0_1] : memref<512x128xf32, #tpu.memory_space<vmem>>, vector<512x128xf32>
    %c0_2 = arith.constant 0 : index
    %c0_3 = arith.constant 0 : index
    %4 = vector.load %arg3[%c0_2, %c0_3] : memref<512x128xbf16, #tpu.memory_space<vmem>>, vector<512x128xbf16>
    %c0_4 = arith.constant 0 : index
    %c0_5 = arith.constant 0 : index
    %5 = vector.load %arg4[%c0_4, %c0_5] : memref<128x128xbf16, #tpu.memory_space<vmem>>, vector<128x128xbf16>
    %cst = arith.constant dense<0.000000e+00> : vector<512x128xf32>
    %6 = tpu.matmul %4, %5, %cst {dimension_numbers = #tpu.dot_dimension_numbers<[1], [0], [0], [1], [0, 0, 1, 1], [], []>} : vector<512x128xbf16>, vector<128x128xbf16>, vector<512x128xf32> -> vector<512x128xf32>
    %7 = arith.addf %3, %6 : vector<512x128xf32>
    %c0_6 = arith.constant 0 : index
    %c0_7 = arith.constant 0 : index
    %8 = vector.load %arg6[%c0_6, %c0_7] : memref<512x128xf32, #tpu.memory_space<vmem>>, vector<512x128xf32>
    tpu.vector_store %arg6[%c0_6, %c0_7], %7 {strides = array<i32>} : memref<512x128xf32, #tpu.memory_space<vmem>>, vector<512x128xf32>,
    %c0_i32_8 = arith.constant 0 : i32
    %9 = arith.cmpi eq, %arg2, %c0_i32_8 : i32
    %10 = arith.extui %9 : i1 to i32
    %c0_i32_9 = arith.constant 0 : i32
    %11 = arith.cmpi ne, %10, %c0_i32_9 : i32
    scf.if %11 {
      %c0_10 = arith.constant 0 : index
      %c0_11 = arith.constant 0 : index
      %12 = vector.load %arg6[%c0_10, %c0_11] : memref<512x128xf32, #tpu.memory_space<vmem>>, vector<512x128xf32>
      %cst_12 = arith.constant 0.000000e+00 : f32
      %13 = vector.broadcast %cst_12 : f32 to vector<512x128xf32>
      %14 = arith.cmpf oge, %12, %13 : vector<512x128xf32>
      %cst_13 = arith.constant 2.000000e-01 : f32
      %15 = vector.broadcast %cst_13 : f32 to vector<512x128xf32>
      %16 = arith.mulf %15, %12 : vector<512x128xf32>
      %17 = arith.select %14, %12, %16 : vector<512x128xi1>, vector<512x128xf32>
      %18 = arith.truncf %17 : vector<512x128xf32> to vector<512x128xbf16>
      %c0_14 = arith.constant 0 : index
      %c0_15 = arith.constant 0 : index
      %19 = vector.load %arg5[%c0_14, %c0_15] : memref<512x128xbf16, #tpu.memory_space<vmem>>, vector<512x128xbf16>
      tpu.vector_store %arg5[%c0_14, %c0_15], %18 {strides = array<i32>} : memref<512x128xbf16, #tpu.memory_space<vmem>>, vector<512x128xbf16>,
    } else {
    }
    return
  }
  func.func @transform_0(%arg0: i32, %arg1: i32, %arg2: i32) -> (i32, i32) {
    %c0_i32 = arith.constant 0 : i32
    return %arg1, %arg2 : i32, i32
  }
  func.func @transform_1(%arg0: i32, %arg1: i32, %arg2: i32) -> (i32, i32) {
    %c0_i32 = arith.constant 0 : i32
    return %arg2, %arg0 : i32, i32
  }
  func.func @transform_2(%arg0: i32, %arg1: i32, %arg2: i32) -> (i32, i32) {
    %c0_i32 = arith.constant 0 : i32
    return %arg1, %arg0 : i32, i32
  }
}

module attributes {stable_mosaic.version = 11 : i64} {
  func.func @_conv_matmul_kernel(%arg0: i32, %arg1: i32, %arg2: i32, %arg3: memref<512x128xbf16, #tpu.memory_space<vmem>>, %arg4: memref<128x128xbf16, #tpu.memory_space<vmem>>, %arg5: memref<512x128xbf16, #tpu.memory_space<vmem>>, %arg6: memref<1x128xf32, #tpu.memory_space<vmem>>, %arg7: memref<1x128xf32, #tpu.memory_space<vmem>>, %arg8: memref<512x128xf32, #tpu.memory_space<vmem>>) attributes {dimension_semantics = [#tpu.dimension_semantics<parallel>, #tpu.dimension_semantics<arbitrary>, #tpu.dimension_semantics<arbitrary>], iteration_bounds = array<i64: 1, 1, 1>, scalar_prefetch = 0 : i64, scratch_operands = 1 : i64, tpu.core_type = #tpu.core_type<tc>, window_params = [{transform_indices = @transform_0, window_bounds = array<i64: 512, 128>}, {transform_indices = @transform_1, window_bounds = array<i64: 128, 128>}, {transform_indices = @transform_2, window_bounds = array<i64: 512, 128>}, {transform_indices = @transform_3, window_bounds = array<i64: 1, 128>}, {transform_indices = @transform_4, window_bounds = array<i64: 1, 128>}]} {
    %c0_i32 = arith.constant 0 : i32
    %0 = arith.cmpi eq, %arg2, %c0_i32 : i32
    %1 = arith.extui %0 : i1 to i32
    %c0_i32_0 = arith.constant 0 : i32
    %2 = arith.cmpi ne, %1, %c0_i32_0 : i32
    scf.if %2 {
      %cst_13 = arith.constant 0.000000e+00 : f32
      %17 = vector.broadcast %cst_13 : f32 to vector<512x128xf32>
      %c0_14 = arith.constant 0 : index
      %c0_15 = arith.constant 0 : index
      %18 = vector.load %arg8[%c0_14, %c0_15] : memref<512x128xf32, #tpu.memory_space<vmem>>, vector<512x128xf32>
      tpu.vector_store %arg8[%c0_14, %c0_15], %17 {strides = array<i32>} : memref<512x128xf32, #tpu.memory_space<vmem>>, vector<512x128xf32>,
    } else {
    }
    %c0 = arith.constant 0 : index
    %c0_1 = arith.constant 0 : index
    %3 = vector.load %arg8[%c0, %c0_1] : memref<512x128xf32, #tpu.memory_space<vmem>>, vector<512x128xf32>
    %c0_2 = arith.constant 0 : index
    %c0_3 = arith.constant 0 : index
    %4 = vector.load %arg3[%c0_2, %c0_3] : memref<512x128xbf16, #tpu.memory_space<vmem>>, vector<512x128xbf16>
    %c0_4 = arith.constant 0 : index
    %c0_5 = arith.constant 0 : index
    %5 = vector.load %arg4[%c0_4, %c0_5] : memref<128x128xbf16, #tpu.memory_space<vmem>>, vector<128x128xbf16>
    %cst = arith.constant dense<0.000000e+00> : vector<512x128xf32>
    %6 = tpu.matmul %4, %5, %cst {dimension_numbers = #tpu.dot_dimension_numbers<[1], [0], [0], [1], [0, 0, 1, 1], [], []>} : vector<512x128xbf16>, vector<128x128xbf16>, vector<512x128xf32> -> vector<512x128xf32>
    %7 = arith.addf %3, %6 : vector<512x128xf32>
    %c0_6 = arith.constant 0 : index
    %c0_7 = arith.constant 0 : index
    %8 = vector.load %arg8[%c0_6, %c0_7] : memref<512x128xf32, #tpu.memory_space<vmem>>, vector<512x128xf32>
    tpu.vector_store %arg8[%c0_6, %c0_7], %7 {strides = array<i32>} : memref<512x128xf32, #tpu.memory_space<vmem>>, vector<512x128xf32>,
    %c0_i32_8 = arith.constant 0 : i32
    %9 = arith.cmpi eq, %arg2, %c0_i32_8 : i32
    %c0_i32_9 = arith.constant 0 : i32
    %10 = arith.cmpi eq, %arg1, %c0_i32_9 : i32
    %11 = arith.andi %9, %10 : i1
    %12 = arith.extui %11 : i1 to i32
    %c0_i32_10 = arith.constant 0 : i32
    %13 = arith.cmpi ne, %12, %c0_i32_10 : i32
    scf.if %13 {
      %cst_13 = arith.constant 0.000000e+00 : f32
      %17 = vector.broadcast %cst_13 : f32 to vector<1x128xf32>
      %c0_14 = arith.constant 0 : index
      %c0_15 = arith.constant 0 : index
      %18 = vector.load %arg6[%c0_14, %c0_15] : memref<1x128xf32, #tpu.memory_space<vmem>>, vector<1x128xf32>
      tpu.vector_store %arg6[%c0_14, %c0_15], %17 {strides = array<i32>} : memref<1x128xf32, #tpu.memory_space<vmem>>, vector<1x128xf32>,
      %cst_16 = arith.constant 0.000000e+00 : f32
      %19 = vector.broadcast %cst_16 : f32 to vector<1x128xf32>
      %c0_17 = arith.constant 0 : index
      %c0_18 = arith.constant 0 : index
      %20 = vector.load %arg7[%c0_17, %c0_18] : memref<1x128xf32, #tpu.memory_space<vmem>>, vector<1x128xf32>
      tpu.vector_store %arg7[%c0_17, %c0_18], %19 {strides = array<i32>} : memref<1x128xf32, #tpu.memory_space<vmem>>, vector<1x128xf32>,
    } else {
    }
    %c0_i32_11 = arith.constant 0 : i32
    %14 = arith.cmpi eq, %arg2, %c0_i32_11 : i32
    %15 = arith.extui %14 : i1 to i32
    %c0_i32_12 = arith.constant 0 : i32
    %16 = arith.cmpi ne, %15, %c0_i32_12 : i32
    scf.if %16 {
      %c0_13 = arith.constant 0 : index
      %c0_14 = arith.constant 0 : index
      %17 = vector.load %arg8[%c0_13, %c0_14] : memref<512x128xf32, #tpu.memory_space<vmem>>, vector<512x128xf32>
      %c0_15 = arith.constant 0 : index
      %c0_16 = arith.constant 0 : index
      %18 = vector.load %arg6[%c0_15, %c0_16] : memref<1x128xf32, #tpu.memory_space<vmem>>, vector<1x128xf32>
      %cst_17 = arith.constant dense<0.000000e+00> : vector<128xf32>
      %19 = vector.multi_reduction <add>, %17, %cst_17 [0] : vector<512x128xf32> to vector<128xf32>
      %20 = vector.shape_cast %19 : vector<128xf32> to vector<1x128xf32>
      %21 = arith.addf %18, %20 : vector<1x128xf32>
      %c0_18 = arith.constant 0 : index
      %c0_19 = arith.constant 0 : index
      %22 = vector.load %arg6[%c0_18, %c0_19] : memref<1x128xf32, #tpu.memory_space<vmem>>, vector<1x128xf32>
      tpu.vector_store %arg6[%c0_18, %c0_19], %21 {strides = array<i32>} : memref<1x128xf32, #tpu.memory_space<vmem>>, vector<1x128xf32>,
      %c0_20 = arith.constant 0 : index
      %c0_21 = arith.constant 0 : index
      %23 = vector.load %arg7[%c0_20, %c0_21] : memref<1x128xf32, #tpu.memory_space<vmem>>, vector<1x128xf32>
      %24 = arith.mulf %17, %17 : vector<512x128xf32>
      %cst_22 = arith.constant dense<0.000000e+00> : vector<128xf32>
      %25 = vector.multi_reduction <add>, %24, %cst_22 [0] : vector<512x128xf32> to vector<128xf32>
      %26 = vector.shape_cast %25 : vector<128xf32> to vector<1x128xf32>
      %27 = arith.addf %23, %26 : vector<1x128xf32>
      %c0_23 = arith.constant 0 : index
      %c0_24 = arith.constant 0 : index
      %28 = vector.load %arg7[%c0_23, %c0_24] : memref<1x128xf32, #tpu.memory_space<vmem>>, vector<1x128xf32>
      tpu.vector_store %arg7[%c0_23, %c0_24], %27 {strides = array<i32>} : memref<1x128xf32, #tpu.memory_space<vmem>>, vector<1x128xf32>,
      %29 = arith.truncf %17 : vector<512x128xf32> to vector<512x128xbf16>
      %c0_25 = arith.constant 0 : index
      %c0_26 = arith.constant 0 : index
      %30 = vector.load %arg5[%c0_25, %c0_26] : memref<512x128xbf16, #tpu.memory_space<vmem>>, vector<512x128xbf16>
      tpu.vector_store %arg5[%c0_25, %c0_26], %29 {strides = array<i32>} : memref<512x128xbf16, #tpu.memory_space<vmem>>, vector<512x128xbf16>,
    } else {
    }
    return
  }
  func.func @transform_0(%arg0: i32, %arg1: i32, %arg2: i32) -> (i32, i32) {
    %c0_i32 = arith.constant 0 : i32
    return %arg1, %arg2 : i32, i32
  }
  func.func @transform_1(%arg0: i32, %arg1: i32, %arg2: i32) -> (i32, i32) {
    %c0_i32 = arith.constant 0 : i32
    return %arg2, %arg0 : i32, i32
  }
  func.func @transform_2(%arg0: i32, %arg1: i32, %arg2: i32) -> (i32, i32) {
    %c0_i32 = arith.constant 0 : i32
    return %arg1, %arg0 : i32, i32
  }
  func.func @transform_3(%arg0: i32, %arg1: i32, %arg2: i32) -> (i32, i32) {
    %c0_i32 = arith.constant 0 : i32
    %c0_i32_0 = arith.constant 0 : i32
    return %c0_i32, %arg0 : i32, i32
  }
  func.func @transform_4(%arg0: i32, %arg1: i32, %arg2: i32) -> (i32, i32) {
    %c0_i32 = arith.constant 0 : i32
    %c0_i32_0 = arith.constant 0 : i32
    return %c0_i32, %arg0 : i32, i32
  }
}

module attributes {stable_mosaic.version = 11 : i64} {
  func.func @_bn_lrelu_kernel(%arg0: i32, %arg1: memref<512x128xbf16, #tpu.memory_space<vmem>>, %arg2: memref<1x128xf32, #tpu.memory_space<vmem>>, %arg3: memref<1x128xf32, #tpu.memory_space<vmem>>, %arg4: memref<512x128xbf16, #tpu.memory_space<vmem>>) attributes {dimension_semantics = [#tpu.dimension_semantics<parallel>], iteration_bounds = array<i64: 1>, scalar_prefetch = 0 : i64, scratch_operands = 0 : i64, tpu.core_type = #tpu.core_type<tc>, window_params = [{transform_indices = @transform_0, window_bounds = array<i64: 512, 128>}, {pipeline_mode = #tpu.pipeline_mode<synchronous>, transform_indices = @transform_1, window_bounds = array<i64: 1, 128>}, {pipeline_mode = #tpu.pipeline_mode<synchronous>, transform_indices = @transform_2, window_bounds = array<i64: 1, 128>}, {transform_indices = @transform_3, window_bounds = array<i64: 512, 128>}]} {
    %c0 = arith.constant 0 : index
    %c0_0 = arith.constant 0 : index
    %0 = vector.load %arg1[%c0, %c0_0] : memref<512x128xbf16, #tpu.memory_space<vmem>>, vector<512x128xbf16>
    %1 = arith.extf %0 : vector<512x128xbf16> to vector<512x128xf32>
    %c0_1 = arith.constant 0 : index
    %c0_2 = arith.constant 0 : index
    %2 = vector.load %arg2[%c0_1, %c0_2] : memref<1x128xf32, #tpu.memory_space<vmem>>, vector<1x128xf32>
    %3 = vector.broadcast %2 : vector<1x128xf32> to vector<512x128xf32>
    %4 = arith.mulf %1, %3 : vector<512x128xf32>
    %c0_3 = arith.constant 0 : index
    %c0_4 = arith.constant 0 : index
    %5 = vector.load %arg3[%c0_3, %c0_4] : memref<1x128xf32, #tpu.memory_space<vmem>>, vector<1x128xf32>
    %6 = vector.broadcast %5 : vector<1x128xf32> to vector<512x128xf32>
    %7 = arith.addf %4, %6 : vector<512x128xf32>
    %cst = arith.constant 0.000000e+00 : f32
    %8 = vector.broadcast %cst : f32 to vector<512x128xf32>
    %9 = arith.cmpf oge, %7, %8 : vector<512x128xf32>
    %cst_5 = arith.constant 2.000000e-01 : f32
    %10 = vector.broadcast %cst_5 : f32 to vector<512x128xf32>
    %11 = arith.mulf %10, %7 : vector<512x128xf32>
    %12 = arith.select %9, %7, %11 : vector<512x128xi1>, vector<512x128xf32>
    %13 = arith.truncf %12 : vector<512x128xf32> to vector<512x128xbf16>
    %c0_6 = arith.constant 0 : index
    %c0_7 = arith.constant 0 : index
    %14 = vector.load %arg4[%c0_6, %c0_7] : memref<512x128xbf16, #tpu.memory_space<vmem>>, vector<512x128xbf16>
    tpu.vector_store %arg4[%c0_6, %c0_7], %13 {strides = array<i32>} : memref<512x128xbf16, #tpu.memory_space<vmem>>, vector<512x128xbf16>,
    return
  }
  func.func @transform_0(%arg0: i32) -> (i32, i32) {
    %c0_i32 = arith.constant 0 : i32
    %c0_i32_0 = arith.constant 0 : i32
    return %arg0, %c0_i32 : i32, i32
  }
  func.func @transform_1(%arg0: i32) -> (i32, i32) {
    %c0_i32 = arith.constant 0 : i32
    %c0_i32_0 = arith.constant 0 : i32
    %c0_i32_1 = arith.constant 0 : i32
    return %c0_i32, %c0_i32_0 : i32, i32
  }
  func.func @transform_2(%arg0: i32) -> (i32, i32) {
    %c0_i32 = arith.constant 0 : i32
    %c0_i32_0 = arith.constant 0 : i32
    %c0_i32_1 = arith.constant 0 : i32
    return %c0_i32, %c0_i32_0 : i32, i32
  }
  func.func @transform_3(%arg0: i32) -> (i32, i32) {
    %c0_i32 = arith.constant 0 : i32
    %c0_i32_0 = arith.constant 0 : i32
    return %arg0, %c0_i32 : i32, i32
  }
}

module attributes {stable_mosaic.version = 11 : i64} {
  func.func @_conv_matmul_kernel(%arg0: i32, %arg1: i32, %arg2: i32, %arg3: memref<128x256xbf16, #tpu.memory_space<vmem>>, %arg4: memref<256x128xbf16, #tpu.memory_space<vmem>>, %arg5: memref<128x128xbf16, #tpu.memory_space<vmem>>, %arg6: memref<1x128xf32, #tpu.memory_space<vmem>>, %arg7: memref<1x128xf32, #tpu.memory_space<vmem>>, %arg8: memref<128x128xf32, #tpu.memory_space<vmem>>) attributes {dimension_semantics = [#tpu.dimension_semantics<parallel>, #tpu.dimension_semantics<arbitrary>, #tpu.dimension_semantics<arbitrary>], iteration_bounds = array<i64: 1, 1, 1>, scalar_prefetch = 0 : i64, scratch_operands = 1 : i64, tpu.core_type = #tpu.core_type<tc>, window_params = [{transform_indices = @transform_0, window_bounds = array<i64: 128, 256>}, {transform_indices = @transform_1, window_bounds = array<i64: 256, 128>}, {transform_indices = @transform_2, window_bounds = array<i64: 128, 128>}, {transform_indices = @transform_3, window_bounds = array<i64: 1, 128>}, {transform_indices = @transform_4, window_bounds = array<i64: 1, 128>}]} {
    %c0_i32 = arith.constant 0 : i32
    %0 = arith.cmpi eq, %arg2, %c0_i32 : i32
    %1 = arith.extui %0 : i1 to i32
    %c0_i32_0 = arith.constant 0 : i32
    %2 = arith.cmpi ne, %1, %c0_i32_0 : i32
    scf.if %2 {
      %cst_13 = arith.constant 0.000000e+00 : f32
      %17 = vector.broadcast %cst_13 : f32 to vector<128x128xf32>
      %c0_14 = arith.constant 0 : index
      %c0_15 = arith.constant 0 : index
      %18 = vector.load %arg8[%c0_14, %c0_15] : memref<128x128xf32, #tpu.memory_space<vmem>>, vector<128x128xf32>
      tpu.vector_store %arg8[%c0_14, %c0_15], %17 {strides = array<i32>} : memref<128x128xf32, #tpu.memory_space<vmem>>, vector<128x128xf32>,
    } else {
    }
    %c0 = arith.constant 0 : index
    %c0_1 = arith.constant 0 : index
    %3 = vector.load %arg8[%c0, %c0_1] : memref<128x128xf32, #tpu.memory_space<vmem>>, vector<128x128xf32>
    %c0_2 = arith.constant 0 : index
    %c0_3 = arith.constant 0 : index
    %4 = vector.load %arg3[%c0_2, %c0_3] : memref<128x256xbf16, #tpu.memory_space<vmem>>, vector<128x256xbf16>
    %c0_4 = arith.constant 0 : index
    %c0_5 = arith.constant 0 : index
    %5 = vector.load %arg4[%c0_4, %c0_5] : memref<256x128xbf16, #tpu.memory_space<vmem>>, vector<256x128xbf16>
    %cst = arith.constant dense<0.000000e+00> : vector<128x128xf32>
    %6 = tpu.matmul %4, %5, %cst {dimension_numbers = #tpu.dot_dimension_numbers<[1], [0], [0], [1], [0, 0, 1, 1], [], []>} : vector<128x256xbf16>, vector<256x128xbf16>, vector<128x128xf32> -> vector<128x128xf32>
    %7 = arith.addf %3, %6 : vector<128x128xf32>
    %c0_6 = arith.constant 0 : index
    %c0_7 = arith.constant 0 : index
    %8 = vector.load %arg8[%c0_6, %c0_7] : memref<128x128xf32, #tpu.memory_space<vmem>>, vector<128x128xf32>
    tpu.vector_store %arg8[%c0_6, %c0_7], %7 {strides = array<i32>} : memref<128x128xf32, #tpu.memory_space<vmem>>, vector<128x128xf32>,
    %c0_i32_8 = arith.constant 0 : i32
    %9 = arith.cmpi eq, %arg2, %c0_i32_8 : i32
    %c0_i32_9 = arith.constant 0 : i32
    %10 = arith.cmpi eq, %arg1, %c0_i32_9 : i32
    %11 = arith.andi %9, %10 : i1
    %12 = arith.extui %11 : i1 to i32
    %c0_i32_10 = arith.constant 0 : i32
    %13 = arith.cmpi ne, %12, %c0_i32_10 : i32
    scf.if %13 {
      %cst_13 = arith.constant 0.000000e+00 : f32
      %17 = vector.broadcast %cst_13 : f32 to vector<1x128xf32>
      %c0_14 = arith.constant 0 : index
      %c0_15 = arith.constant 0 : index
      %18 = vector.load %arg6[%c0_14, %c0_15] : memref<1x128xf32, #tpu.memory_space<vmem>>, vector<1x128xf32>
      tpu.vector_store %arg6[%c0_14, %c0_15], %17 {strides = array<i32>} : memref<1x128xf32, #tpu.memory_space<vmem>>, vector<1x128xf32>,
      %cst_16 = arith.constant 0.000000e+00 : f32
      %19 = vector.broadcast %cst_16 : f32 to vector<1x128xf32>
      %c0_17 = arith.constant 0 : index
      %c0_18 = arith.constant 0 : index
      %20 = vector.load %arg7[%c0_17, %c0_18] : memref<1x128xf32, #tpu.memory_space<vmem>>, vector<1x128xf32>
      tpu.vector_store %arg7[%c0_17, %c0_18], %19 {strides = array<i32>} : memref<1x128xf32, #tpu.memory_space<vmem>>, vector<1x128xf32>,
    } else {
    }
    %c0_i32_11 = arith.constant 0 : i32
    %14 = arith.cmpi eq, %arg2, %c0_i32_11 : i32
    %15 = arith.extui %14 : i1 to i32
    %c0_i32_12 = arith.constant 0 : i32
    %16 = arith.cmpi ne, %15, %c0_i32_12 : i32
    scf.if %16 {
      %c0_13 = arith.constant 0 : index
      %c0_14 = arith.constant 0 : index
      %17 = vector.load %arg8[%c0_13, %c0_14] : memref<128x128xf32, #tpu.memory_space<vmem>>, vector<128x128xf32>
      %c0_15 = arith.constant 0 : index
      %c0_16 = arith.constant 0 : index
      %18 = vector.load %arg6[%c0_15, %c0_16] : memref<1x128xf32, #tpu.memory_space<vmem>>, vector<1x128xf32>
      %cst_17 = arith.constant dense<0.000000e+00> : vector<128xf32>
      %19 = vector.multi_reduction <add>, %17, %cst_17 [0] : vector<128x128xf32> to vector<128xf32>
      %20 = vector.shape_cast %19 : vector<128xf32> to vector<1x128xf32>
      %21 = arith.addf %18, %20 : vector<1x128xf32>
      %c0_18 = arith.constant 0 : index
      %c0_19 = arith.constant 0 : index
      %22 = vector.load %arg6[%c0_18, %c0_19] : memref<1x128xf32, #tpu.memory_space<vmem>>, vector<1x128xf32>
      tpu.vector_store %arg6[%c0_18, %c0_19], %21 {strides = array<i32>} : memref<1x128xf32, #tpu.memory_space<vmem>>, vector<1x128xf32>,
      %c0_20 = arith.constant 0 : index
      %c0_21 = arith.constant 0 : index
      %23 = vector.load %arg7[%c0_20, %c0_21] : memref<1x128xf32, #tpu.memory_space<vmem>>, vector<1x128xf32>
      %24 = arith.mulf %17, %17 : vector<128x128xf32>
      %cst_22 = arith.constant dense<0.000000e+00> : vector<128xf32>
      %25 = vector.multi_reduction <add>, %24, %cst_22 [0] : vector<128x128xf32> to vector<128xf32>
      %26 = vector.shape_cast %25 : vector<128xf32> to vector<1x128xf32>
      %27 = arith.addf %23, %26 : vector<1x128xf32>
      %c0_23 = arith.constant 0 : index
      %c0_24 = arith.constant 0 : index
      %28 = vector.load %arg7[%c0_23, %c0_24] : memref<1x128xf32, #tpu.memory_space<vmem>>, vector<1x128xf32>
      tpu.vector_store %arg7[%c0_23, %c0_24], %27 {strides = array<i32>} : memref<1x128xf32, #tpu.memory_space<vmem>>, vector<1x128xf32>,
      %29 = arith.truncf %17 : vector<128x128xf32> to vector<128x128xbf16>
      %c0_25 = arith.constant 0 : index
      %c0_26 = arith.constant 0 : index
      %30 = vector.load %arg5[%c0_25, %c0_26] : memref<128x128xbf16, #tpu.memory_space<vmem>>, vector<128x128xbf16>
      tpu.vector_store %arg5[%c0_25, %c0_26], %29 {strides = array<i32>} : memref<128x128xbf16, #tpu.memory_space<vmem>>, vector<128x128xbf16>,
    } else {
    }
    return
  }
  func.func @transform_0(%arg0: i32, %arg1: i32, %arg2: i32) -> (i32, i32) {
    %c0_i32 = arith.constant 0 : i32
    return %arg1, %arg2 : i32, i32
  }
  func.func @transform_1(%arg0: i32, %arg1: i32, %arg2: i32) -> (i32, i32) {
    %c0_i32 = arith.constant 0 : i32
    return %arg2, %arg0 : i32, i32
  }
  func.func @transform_2(%arg0: i32, %arg1: i32, %arg2: i32) -> (i32, i32) {
    %c0_i32 = arith.constant 0 : i32
    return %arg1, %arg0 : i32, i32
  }
  func.func @transform_3(%arg0: i32, %arg1: i32, %arg2: i32) -> (i32, i32) {
    %c0_i32 = arith.constant 0 : i32
    %c0_i32_0 = arith.constant 0 : i32
    return %c0_i32, %arg0 : i32, i32
  }
  func.func @transform_4(%arg0: i32, %arg1: i32, %arg2: i32) -> (i32, i32) {
    %c0_i32 = arith.constant 0 : i32
    %c0_i32_0 = arith.constant 0 : i32
    return %c0_i32, %arg0 : i32, i32
  }
}

module attributes {stable_mosaic.version = 11 : i64} {
  func.func @_bn_lrelu_kernel(%arg0: i32, %arg1: memref<128x128xbf16, #tpu.memory_space<vmem>>, %arg2: memref<1x128xf32, #tpu.memory_space<vmem>>, %arg3: memref<1x128xf32, #tpu.memory_space<vmem>>, %arg4: memref<128x128xbf16, #tpu.memory_space<vmem>>) attributes {dimension_semantics = [#tpu.dimension_semantics<parallel>], iteration_bounds = array<i64: 1>, scalar_prefetch = 0 : i64, scratch_operands = 0 : i64, tpu.core_type = #tpu.core_type<tc>, window_params = [{transform_indices = @transform_0, window_bounds = array<i64: 128, 128>}, {pipeline_mode = #tpu.pipeline_mode<synchronous>, transform_indices = @transform_1, window_bounds = array<i64: 1, 128>}, {pipeline_mode = #tpu.pipeline_mode<synchronous>, transform_indices = @transform_2, window_bounds = array<i64: 1, 128>}, {transform_indices = @transform_3, window_bounds = array<i64: 128, 128>}]} {
    %c0 = arith.constant 0 : index
    %c0_0 = arith.constant 0 : index
    %0 = vector.load %arg1[%c0, %c0_0] : memref<128x128xbf16, #tpu.memory_space<vmem>>, vector<128x128xbf16>
    %1 = arith.extf %0 : vector<128x128xbf16> to vector<128x128xf32>
    %c0_1 = arith.constant 0 : index
    %c0_2 = arith.constant 0 : index
    %2 = vector.load %arg2[%c0_1, %c0_2] : memref<1x128xf32, #tpu.memory_space<vmem>>, vector<1x128xf32>
    %3 = vector.broadcast %2 : vector<1x128xf32> to vector<128x128xf32>
    %4 = arith.mulf %1, %3 : vector<128x128xf32>
    %c0_3 = arith.constant 0 : index
    %c0_4 = arith.constant 0 : index
    %5 = vector.load %arg3[%c0_3, %c0_4] : memref<1x128xf32, #tpu.memory_space<vmem>>, vector<1x128xf32>
    %6 = vector.broadcast %5 : vector<1x128xf32> to vector<128x128xf32>
    %7 = arith.addf %4, %6 : vector<128x128xf32>
    %cst = arith.constant 0.000000e+00 : f32
    %8 = vector.broadcast %cst : f32 to vector<128x128xf32>
    %9 = arith.cmpf oge, %7, %8 : vector<128x128xf32>
    %cst_5 = arith.constant 2.000000e-01 : f32
    %10 = vector.broadcast %cst_5 : f32 to vector<128x128xf32>
    %11 = arith.mulf %10, %7 : vector<128x128xf32>
    %12 = arith.select %9, %7, %11 : vector<128x128xi1>, vector<128x128xf32>
    %13 = arith.truncf %12 : vector<128x128xf32> to vector<128x128xbf16>
    %c0_6 = arith.constant 0 : index
    %c0_7 = arith.constant 0 : index
    %14 = vector.load %arg4[%c0_6, %c0_7] : memref<128x128xbf16, #tpu.memory_space<vmem>>, vector<128x128xbf16>
    tpu.vector_store %arg4[%c0_6, %c0_7], %13 {strides = array<i32>} : memref<128x128xbf16, #tpu.memory_space<vmem>>, vector<128x128xbf16>,
    return
  }
  func.func @transform_0(%arg0: i32) -> (i32, i32) {
    %c0_i32 = arith.constant 0 : i32
    %c0_i32_0 = arith.constant 0 : i32
    return %arg0, %c0_i32 : i32, i32
  }
  func.func @transform_1(%arg0: i32) -> (i32, i32) {
    %c0_i32 = arith.constant 0 : i32
    %c0_i32_0 = arith.constant 0 : i32
    %c0_i32_1 = arith.constant 0 : i32
    return %c0_i32, %c0_i32_0 : i32, i32
  }
  func.func @transform_2(%arg0: i32) -> (i32, i32) {
    %c0_i32 = arith.constant 0 : i32
    %c0_i32_0 = arith.constant 0 : i32
    %c0_i32_1 = arith.constant 0 : i32
    return %c0_i32, %c0_i32_0 : i32, i32
  }
  func.func @transform_3(%arg0: i32) -> (i32, i32) {
    %c0_i32 = arith.constant 0 : i32
    %c0_i32_0 = arith.constant 0 : i32
    return %arg0, %c0_i32 : i32, i32
  }
}

module attributes {stable_mosaic.version = 11 : i64} {
  func.func @_conv_matmul_kernel(%arg0: i32, %arg1: i32, %arg2: i32, %arg3: memref<32x512xbf16, #tpu.memory_space<vmem>>, %arg4: memref<512x128xbf16, #tpu.memory_space<vmem>>, %arg5: memref<32x128xbf16, #tpu.memory_space<vmem>>, %arg6: memref<1x128xf32, #tpu.memory_space<vmem>>, %arg7: memref<1x128xf32, #tpu.memory_space<vmem>>, %arg8: memref<32x128xf32, #tpu.memory_space<vmem>>) attributes {dimension_semantics = [#tpu.dimension_semantics<parallel>, #tpu.dimension_semantics<arbitrary>, #tpu.dimension_semantics<arbitrary>], iteration_bounds = array<i64: 1, 1, 1>, scalar_prefetch = 0 : i64, scratch_operands = 1 : i64, tpu.core_type = #tpu.core_type<tc>, window_params = [{transform_indices = @transform_0, window_bounds = array<i64: 32, 512>}, {transform_indices = @transform_1, window_bounds = array<i64: 512, 128>}, {transform_indices = @transform_2, window_bounds = array<i64: 32, 128>}, {transform_indices = @transform_3, window_bounds = array<i64: 1, 128>}, {transform_indices = @transform_4, window_bounds = array<i64: 1, 128>}]} {
    %c0_i32 = arith.constant 0 : i32
    %0 = arith.cmpi eq, %arg2, %c0_i32 : i32
    %1 = arith.extui %0 : i1 to i32
    %c0_i32_0 = arith.constant 0 : i32
    %2 = arith.cmpi ne, %1, %c0_i32_0 : i32
    scf.if %2 {
      %cst_13 = arith.constant 0.000000e+00 : f32
      %17 = vector.broadcast %cst_13 : f32 to vector<32x128xf32>
      %c0_14 = arith.constant 0 : index
      %c0_15 = arith.constant 0 : index
      %18 = vector.load %arg8[%c0_14, %c0_15] : memref<32x128xf32, #tpu.memory_space<vmem>>, vector<32x128xf32>
      tpu.vector_store %arg8[%c0_14, %c0_15], %17 {strides = array<i32>} : memref<32x128xf32, #tpu.memory_space<vmem>>, vector<32x128xf32>,
    } else {
    }
    %c0 = arith.constant 0 : index
    %c0_1 = arith.constant 0 : index
    %3 = vector.load %arg8[%c0, %c0_1] : memref<32x128xf32, #tpu.memory_space<vmem>>, vector<32x128xf32>
    %c0_2 = arith.constant 0 : index
    %c0_3 = arith.constant 0 : index
    %4 = vector.load %arg3[%c0_2, %c0_3] : memref<32x512xbf16, #tpu.memory_space<vmem>>, vector<32x512xbf16>
    %c0_4 = arith.constant 0 : index
    %c0_5 = arith.constant 0 : index
    %5 = vector.load %arg4[%c0_4, %c0_5] : memref<512x128xbf16, #tpu.memory_space<vmem>>, vector<512x128xbf16>
    %cst = arith.constant dense<0.000000e+00> : vector<32x128xf32>
    %6 = tpu.matmul %4, %5, %cst {dimension_numbers = #tpu.dot_dimension_numbers<[1], [0], [0], [1], [0, 0, 1, 1], [], []>} : vector<32x512xbf16>, vector<512x128xbf16>, vector<32x128xf32> -> vector<32x128xf32>
    %7 = arith.addf %3, %6 : vector<32x128xf32>
    %c0_6 = arith.constant 0 : index
    %c0_7 = arith.constant 0 : index
    %8 = vector.load %arg8[%c0_6, %c0_7] : memref<32x128xf32, #tpu.memory_space<vmem>>, vector<32x128xf32>
    tpu.vector_store %arg8[%c0_6, %c0_7], %7 {strides = array<i32>} : memref<32x128xf32, #tpu.memory_space<vmem>>, vector<32x128xf32>,
    %c0_i32_8 = arith.constant 0 : i32
    %9 = arith.cmpi eq, %arg2, %c0_i32_8 : i32
    %c0_i32_9 = arith.constant 0 : i32
    %10 = arith.cmpi eq, %arg1, %c0_i32_9 : i32
    %11 = arith.andi %9, %10 : i1
    %12 = arith.extui %11 : i1 to i32
    %c0_i32_10 = arith.constant 0 : i32
    %13 = arith.cmpi ne, %12, %c0_i32_10 : i32
    scf.if %13 {
      %cst_13 = arith.constant 0.000000e+00 : f32
      %17 = vector.broadcast %cst_13 : f32 to vector<1x128xf32>
      %c0_14 = arith.constant 0 : index
      %c0_15 = arith.constant 0 : index
      %18 = vector.load %arg6[%c0_14, %c0_15] : memref<1x128xf32, #tpu.memory_space<vmem>>, vector<1x128xf32>
      tpu.vector_store %arg6[%c0_14, %c0_15], %17 {strides = array<i32>} : memref<1x128xf32, #tpu.memory_space<vmem>>, vector<1x128xf32>,
      %cst_16 = arith.constant 0.000000e+00 : f32
      %19 = vector.broadcast %cst_16 : f32 to vector<1x128xf32>
      %c0_17 = arith.constant 0 : index
      %c0_18 = arith.constant 0 : index
      %20 = vector.load %arg7[%c0_17, %c0_18] : memref<1x128xf32, #tpu.memory_space<vmem>>, vector<1x128xf32>
      tpu.vector_store %arg7[%c0_17, %c0_18], %19 {strides = array<i32>} : memref<1x128xf32, #tpu.memory_space<vmem>>, vector<1x128xf32>,
    } else {
    }
    %c0_i32_11 = arith.constant 0 : i32
    %14 = arith.cmpi eq, %arg2, %c0_i32_11 : i32
    %15 = arith.extui %14 : i1 to i32
    %c0_i32_12 = arith.constant 0 : i32
    %16 = arith.cmpi ne, %15, %c0_i32_12 : i32
    scf.if %16 {
      %c0_13 = arith.constant 0 : index
      %c0_14 = arith.constant 0 : index
      %17 = vector.load %arg8[%c0_13, %c0_14] : memref<32x128xf32, #tpu.memory_space<vmem>>, vector<32x128xf32>
      %c0_15 = arith.constant 0 : index
      %c0_16 = arith.constant 0 : index
      %18 = vector.load %arg6[%c0_15, %c0_16] : memref<1x128xf32, #tpu.memory_space<vmem>>, vector<1x128xf32>
      %cst_17 = arith.constant dense<0.000000e+00> : vector<128xf32>
      %19 = vector.multi_reduction <add>, %17, %cst_17 [0] : vector<32x128xf32> to vector<128xf32>
      %20 = vector.shape_cast %19 : vector<128xf32> to vector<1x128xf32>
      %21 = arith.addf %18, %20 : vector<1x128xf32>
      %c0_18 = arith.constant 0 : index
      %c0_19 = arith.constant 0 : index
      %22 = vector.load %arg6[%c0_18, %c0_19] : memref<1x128xf32, #tpu.memory_space<vmem>>, vector<1x128xf32>
      tpu.vector_store %arg6[%c0_18, %c0_19], %21 {strides = array<i32>} : memref<1x128xf32, #tpu.memory_space<vmem>>, vector<1x128xf32>,
      %c0_20 = arith.constant 0 : index
      %c0_21 = arith.constant 0 : index
      %23 = vector.load %arg7[%c0_20, %c0_21] : memref<1x128xf32, #tpu.memory_space<vmem>>, vector<1x128xf32>
      %24 = arith.mulf %17, %17 : vector<32x128xf32>
      %cst_22 = arith.constant dense<0.000000e+00> : vector<128xf32>
      %25 = vector.multi_reduction <add>, %24, %cst_22 [0] : vector<32x128xf32> to vector<128xf32>
      %26 = vector.shape_cast %25 : vector<128xf32> to vector<1x128xf32>
      %27 = arith.addf %23, %26 : vector<1x128xf32>
      %c0_23 = arith.constant 0 : index
      %c0_24 = arith.constant 0 : index
      %28 = vector.load %arg7[%c0_23, %c0_24] : memref<1x128xf32, #tpu.memory_space<vmem>>, vector<1x128xf32>
      tpu.vector_store %arg7[%c0_23, %c0_24], %27 {strides = array<i32>} : memref<1x128xf32, #tpu.memory_space<vmem>>, vector<1x128xf32>,
      %29 = arith.truncf %17 : vector<32x128xf32> to vector<32x128xbf16>
      %c0_25 = arith.constant 0 : index
      %c0_26 = arith.constant 0 : index
      %30 = vector.load %arg5[%c0_25, %c0_26] : memref<32x128xbf16, #tpu.memory_space<vmem>>, vector<32x128xbf16>
      tpu.vector_store %arg5[%c0_25, %c0_26], %29 {strides = array<i32>} : memref<32x128xbf16, #tpu.memory_space<vmem>>, vector<32x128xbf16>,
    } else {
    }
    return
  }
  func.func @transform_0(%arg0: i32, %arg1: i32, %arg2: i32) -> (i32, i32) {
    %c0_i32 = arith.constant 0 : i32
    return %arg1, %arg2 : i32, i32
  }
  func.func @transform_1(%arg0: i32, %arg1: i32, %arg2: i32) -> (i32, i32) {
    %c0_i32 = arith.constant 0 : i32
    return %arg2, %arg0 : i32, i32
  }
  func.func @transform_2(%arg0: i32, %arg1: i32, %arg2: i32) -> (i32, i32) {
    %c0_i32 = arith.constant 0 : i32
    return %arg1, %arg0 : i32, i32
  }
  func.func @transform_3(%arg0: i32, %arg1: i32, %arg2: i32) -> (i32, i32) {
    %c0_i32 = arith.constant 0 : i32
    %c0_i32_0 = arith.constant 0 : i32
    return %c0_i32, %arg0 : i32, i32
  }
  func.func @transform_4(%arg0: i32, %arg1: i32, %arg2: i32) -> (i32, i32) {
    %c0_i32 = arith.constant 0 : i32
    %c0_i32_0 = arith.constant 0 : i32
    return %c0_i32, %arg0 : i32, i32
  }
}

module attributes {stable_mosaic.version = 11 : i64} {
  func.func @_bn_lrelu_kernel(%arg0: i32, %arg1: memref<32x128xbf16, #tpu.memory_space<vmem>>, %arg2: memref<1x128xf32, #tpu.memory_space<vmem>>, %arg3: memref<1x128xf32, #tpu.memory_space<vmem>>, %arg4: memref<32x128xbf16, #tpu.memory_space<vmem>>) attributes {dimension_semantics = [#tpu.dimension_semantics<parallel>], iteration_bounds = array<i64: 1>, scalar_prefetch = 0 : i64, scratch_operands = 0 : i64, tpu.core_type = #tpu.core_type<tc>, window_params = [{transform_indices = @transform_0, window_bounds = array<i64: 32, 128>}, {pipeline_mode = #tpu.pipeline_mode<synchronous>, transform_indices = @transform_1, window_bounds = array<i64: 1, 128>}, {pipeline_mode = #tpu.pipeline_mode<synchronous>, transform_indices = @transform_2, window_bounds = array<i64: 1, 128>}, {transform_indices = @transform_3, window_bounds = array<i64: 32, 128>}]} {
    %c0 = arith.constant 0 : index
    %c0_0 = arith.constant 0 : index
    %0 = vector.load %arg1[%c0, %c0_0] : memref<32x128xbf16, #tpu.memory_space<vmem>>, vector<32x128xbf16>
    %1 = arith.extf %0 : vector<32x128xbf16> to vector<32x128xf32>
    %c0_1 = arith.constant 0 : index
    %c0_2 = arith.constant 0 : index
    %2 = vector.load %arg2[%c0_1, %c0_2] : memref<1x128xf32, #tpu.memory_space<vmem>>, vector<1x128xf32>
    %3 = vector.broadcast %2 : vector<1x128xf32> to vector<32x128xf32>
    %4 = arith.mulf %1, %3 : vector<32x128xf32>
    %c0_3 = arith.constant 0 : index
    %c0_4 = arith.constant 0 : index
    %5 = vector.load %arg3[%c0_3, %c0_4] : memref<1x128xf32, #tpu.memory_space<vmem>>, vector<1x128xf32>
    %6 = vector.broadcast %5 : vector<1x128xf32> to vector<32x128xf32>
    %7 = arith.addf %4, %6 : vector<32x128xf32>
    %cst = arith.constant 0.000000e+00 : f32
    %8 = vector.broadcast %cst : f32 to vector<32x128xf32>
    %9 = arith.cmpf oge, %7, %8 : vector<32x128xf32>
    %cst_5 = arith.constant 2.000000e-01 : f32
    %10 = vector.broadcast %cst_5 : f32 to vector<32x128xf32>
    %11 = arith.mulf %10, %7 : vector<32x128xf32>
    %12 = arith.select %9, %7, %11 : vector<32x128xi1>, vector<32x128xf32>
    %13 = arith.truncf %12 : vector<32x128xf32> to vector<32x128xbf16>
    %c0_6 = arith.constant 0 : index
    %c0_7 = arith.constant 0 : index
    %14 = vector.load %arg4[%c0_6, %c0_7] : memref<32x128xbf16, #tpu.memory_space<vmem>>, vector<32x128xbf16>
    tpu.vector_store %arg4[%c0_6, %c0_7], %13 {strides = array<i32>} : memref<32x128xbf16, #tpu.memory_space<vmem>>, vector<32x128xbf16>,
    return
  }
  func.func @transform_0(%arg0: i32) -> (i32, i32) {
    %c0_i32 = arith.constant 0 : i32
    %c0_i32_0 = arith.constant 0 : i32
    return %arg0, %c0_i32 : i32, i32
  }
  func.func @transform_1(%arg0: i32) -> (i32, i32) {
    %c0_i32 = arith.constant 0 : i32
    %c0_i32_0 = arith.constant 0 : i32
    %c0_i32_1 = arith.constant 0 : i32
    return %c0_i32, %c0_i32_0 : i32, i32
  }
  func.func @transform_2(%arg0: i32) -> (i32, i32) {
    %c0_i32 = arith.constant 0 : i32
    %c0_i32_0 = arith.constant 0 : i32
    %c0_i32_1 = arith.constant 0 : i32
    return %c0_i32, %c0_i32_0 : i32, i32
  }
  func.func @transform_3(%arg0: i32) -> (i32, i32) {
    %c0_i32 = arith.constant 0 : i32
    %c0_i32_0 = arith.constant 0 : i32
    return %arg0, %c0_i32 : i32, i32
  }
}

module attributes {stable_mosaic.version = 11 : i64} {
  func.func @_conv_matmul_kernel(%arg0: i32, %arg1: i32, %arg2: i32, %arg3: memref<8x1024xbf16, #tpu.memory_space<vmem>>, %arg4: memref<1024x128xbf16, #tpu.memory_space<vmem>>, %arg5: memref<8x128xf32, #tpu.memory_space<vmem>>, %arg6: memref<8x128xf32, #tpu.memory_space<vmem>>) attributes {dimension_semantics = [#tpu.dimension_semantics<parallel>, #tpu.dimension_semantics<parallel>, #tpu.dimension_semantics<arbitrary>], iteration_bounds = array<i64: 1, 1, 1>, scalar_prefetch = 0 : i64, scratch_operands = 1 : i64, tpu.core_type = #tpu.core_type<tc>, window_params = [{transform_indices = @transform_0, window_bounds = array<i64: 8, 1024>}, {transform_indices = @transform_1, window_bounds = array<i64: 1024, 128>}, {transform_indices = @transform_2, window_bounds = array<i64: 8, 128>}]} {
    %c0_i32 = arith.constant 0 : i32
    %0 = arith.cmpi eq, %arg2, %c0_i32 : i32
    %1 = arith.extui %0 : i1 to i32
    %c0_i32_0 = arith.constant 0 : i32
    %2 = arith.cmpi ne, %1, %c0_i32_0 : i32
    scf.if %2 {
      %cst_10 = arith.constant 0.000000e+00 : f32
      %12 = vector.broadcast %cst_10 : f32 to vector<8x128xf32>
      %c0_11 = arith.constant 0 : index
      %c0_12 = arith.constant 0 : index
      %13 = vector.load %arg6[%c0_11, %c0_12] : memref<8x128xf32, #tpu.memory_space<vmem>>, vector<8x128xf32>
      tpu.vector_store %arg6[%c0_11, %c0_12], %12 {strides = array<i32>} : memref<8x128xf32, #tpu.memory_space<vmem>>, vector<8x128xf32>,
    } else {
    }
    %c0 = arith.constant 0 : index
    %c0_1 = arith.constant 0 : index
    %3 = vector.load %arg6[%c0, %c0_1] : memref<8x128xf32, #tpu.memory_space<vmem>>, vector<8x128xf32>
    %c0_2 = arith.constant 0 : index
    %c0_3 = arith.constant 0 : index
    %4 = vector.load %arg3[%c0_2, %c0_3] : memref<8x1024xbf16, #tpu.memory_space<vmem>>, vector<8x1024xbf16>
    %c0_4 = arith.constant 0 : index
    %c0_5 = arith.constant 0 : index
    %5 = vector.load %arg4[%c0_4, %c0_5] : memref<1024x128xbf16, #tpu.memory_space<vmem>>, vector<1024x128xbf16>
    %cst = arith.constant dense<0.000000e+00> : vector<8x128xf32>
    %6 = tpu.matmul %4, %5, %cst {dimension_numbers = #tpu.dot_dimension_numbers<[1], [0], [0], [1], [0, 0, 1, 1], [], []>} : vector<8x1024xbf16>, vector<1024x128xbf16>, vector<8x128xf32> -> vector<8x128xf32>
    %7 = arith.addf %3, %6 : vector<8x128xf32>
    %c0_6 = arith.constant 0 : index
    %c0_7 = arith.constant 0 : index
    %8 = vector.load %arg6[%c0_6, %c0_7] : memref<8x128xf32, #tpu.memory_space<vmem>>, vector<8x128xf32>
    tpu.vector_store %arg6[%c0_6, %c0_7], %7 {strides = array<i32>} : memref<8x128xf32, #tpu.memory_space<vmem>>, vector<8x128xf32>,
    %c0_i32_8 = arith.constant 0 : i32
    %9 = arith.cmpi eq, %arg2, %c0_i32_8 : i32
    %10 = arith.extui %9 : i1 to i32
    %c0_i32_9 = arith.constant 0 : i32
    %11 = arith.cmpi ne, %10, %c0_i32_9 : i32
    scf.if %11 {
      %c0_10 = arith.constant 0 : index
      %c0_11 = arith.constant 0 : index
      %12 = vector.load %arg6[%c0_10, %c0_11] : memref<8x128xf32, #tpu.memory_space<vmem>>, vector<8x128xf32>
      %c0_12 = arith.constant 0 : index
      %c0_13 = arith.constant 0 : index
      %13 = vector.load %arg5[%c0_12, %c0_13] : memref<8x128xf32, #tpu.memory_space<vmem>>, vector<8x128xf32>
      tpu.vector_store %arg5[%c0_12, %c0_13], %12 {strides = array<i32>} : memref<8x128xf32, #tpu.memory_space<vmem>>, vector<8x128xf32>,
    } else {
    }
    return
  }
  func.func @transform_0(%arg0: i32, %arg1: i32, %arg2: i32) -> (i32, i32) {
    %c0_i32 = arith.constant 0 : i32
    return %arg1, %arg2 : i32, i32
  }
  func.func @transform_1(%arg0: i32, %arg1: i32, %arg2: i32) -> (i32, i32) {
    %c0_i32 = arith.constant 0 : i32
    return %arg2, %arg0 : i32, i32
  }
  func.func @transform_2(%arg0: i32, %arg1: i32, %arg2: i32) -> (i32, i32) {
    %c0_i32 = arith.constant 0 : i32
    return %arg1, %arg0 : i32, i32
  }
}

</mosaic_0001>

<bundles_post_ra>
// kernel: _lambda_.8
= control target key start
LH: loop header
LB: loop body
LE: loop exit
PB: predicated region body
PF: predicated region fallthrough
CT: control target
= control target key end

     0   :  { %s1943_s9 = smov 0   ;;  %s1945_s10 = smov 0   ;;  %s2078_s0 = inlined_call_operand.vmem [shape: bf16[2048,128], index: 0, kind: input, shape index: {}]   ;;  %s2079_s1 = inlined_call_operand.vmem [shape: bf16[128,128], index: 1, kind: input, shape index: {}]   ;;  %s2080_s2 = inlined_call_operand.vmem [shape: bf16[2048,128], index: 2, kind: output, shape index: {}]  }
   0x1   :  { %s1947_s11 = smov 0  }
   0x2 LB: > { %s27_s12 = sadd.s32 1, %s1922_s10  ;;  %p1458_p0 = scmp.ge.s32.totalorder %s1926_s11, 1  ;;  %s1926_s11 = sphi %s1947_s11, %s12_s11   ;;  %s1922_s10 = sphi %s1945_s10, %s2082_s10   ;;  %s1918_s9 = sphi %s1943_s9, %s2081_s9  }
   0x3   : > { %p29_p1 = scmp.ge.s32.totalorder %s27_s12, 4  ;;  %p155_p2 = scmp.lt.s32.totalorder %s1926_s11, 5 }
   0x5   : > { %s2084_s12 = smov (%p29_p1, %s27_s12), 0  ;;  %p156_p3 = pnand %p1458_p0, %p155_p2 }
   0x6   : > { %s1459_s21 = sshll.u32 (!%p156_p3), %s1918_s9, 6 }
   0x7   : > { %159 = sbr.rel (%p156_p3) target bundleno = 304 (0x130), region = 28  ;;  %p192_p4 = scmp.lt.s32.totalorder (!%p156_p3), %s1459_s21, 255 }
   0xc   : > { %v1664_v0 = vld [vmem:[%s2079_s1 + $0x38] sm:$0xff]  ;;  %v1663_v1 = vld [vmem:[%s2079_s1 + $0x30] sm:$0xff]  ;;  %v1662_v2 = vld [vmem:[%s2079_s1 + $0x28] sm:$0xff]  ;;  %s2086_s21 = smov (!%p192_p4, %s1459_s21), 255 }
   0xd   : > { %670 = vmatpush.bf16.msra.mxu0 %v1664_v0  ;;  %1856 = vmatpush.bf16.msra.mxu1 %v1664_v0  ;;  %v1661_v3 = vld [vmem:[%s2079_s1 + $0x20] sm:$0xff]  ;;  %v1660_v4 = vld [vmem:[%s2079_s1 + $0x18] sm:$0xff]  ;;  %v1659_v5 = vld [vmem:[%s2079_s1 + $0x10] sm:$0xff]  ;;  %s1460_s28 = sshll.u32 %s2086_s21, 2 }
   0xe   : > { %1857 = vmatpush.bf16.msra.mxu2 %v1664_v0  ;;  %1858 = vmatpush.bf16.msra.mxu3 %v1664_v0  ;;  %v1658_v6 = vld [vmem:[%s2079_s1 + $0x8] sm:$0xff]  ;;  %v1657_v7 = vld [vmem:[%s2079_s1] sm:$0xff]  ;;  %s1996_s5 = scalar_lea.vmem %s2078_s0, %s1460_s28  ;;  %s2035_s8 = scalar_lea.vmem %s2080_s2, %s1460_s28 }
   0xf   : > { %v1625_v8 = vld [vmem:[%s1996_s5] sm:$0xff]  ;;  %v1626_v12 = vld [vmem:[%s1996_s5 + $0x8] sm:$0xff]  ;;  %v1627_v16 = vld [vmem:[%s1996_s5 + $0x10] sm:$0xff] }
  0x10   : > { %v1633_v9 = vld [vmem:[%s1996_s5 + $0x40] sm:$0xff]  ;;  %v1634_v13 = vld [vmem:[%s1996_s5 + $0x48] sm:$0xff]  ;;  %v1635_v17 = vld [vmem:[%s1996_s5 + $0x50] sm:$0xff] }
  0x11   : > { %671 = vmatpush.bf16.msra.mxu0 %v1663_v1  ;;  %1859 = vmatpush.bf16.msra.mxu1 %v1663_v1  ;;  %v1641_v10 = vld [vmem:[%s1996_s5 + $0x80] sm:$0xff]  ;;  %v1642_v14 = vld [vmem:[%s1996_s5 + $0x88] sm:$0xff]  ;;  %v1643_v18 = vld [vmem:[%s1996_s5 + $0x90] sm:$0xff] }
  0x12   : > { %1860 = vmatpush.bf16.msra.mxu2 %v1663_v1  ;;  %1861 = vmatpush.bf16.msra.mxu3 %v1663_v1  ;;  %v1649_v11 = vld [vmem:[%s1996_s5 + $0xc0] sm:$0xff]  ;;  %v1650_v15 = vld [vmem:[%s1996_s5 + $0xc8] sm:$0xff]  ;;  %v1651_v19 = vld [vmem:[%s1996_s5 + $0xd0] sm:$0xff] }
  0x13   : > { %v1628_v20 = vld [vmem:[%s1996_s5 + $0x18] sm:$0xff]  ;;  %v1629_v24 = vld [vmem:[%s1996_s5 + $0x20] sm:$0xff]  ;;  %v1630_v28 = vld [vmem:[%s1996_s5 + $0x28] sm:$0xff] }
  0x14   : > { %v1636_v21 = vld [vmem:[%s1996_s5 + $0x58] sm:$0xff]  ;;  %v1637_v25 = vld [vmem:[%s1996_s5 + $0x60] sm:$0xff]  ;;  %v1638_v29 = vld [vmem:[%s1996_s5 + $0x68] sm:$0xff] }
  0x15   : > { %672 = vmatpush.bf16.msra.mxu0 %v1662_v2  ;;  %1862 = vmatpush.bf16.msra.mxu1 %v1662_v2  ;;  %v1644_v22 = vld [vmem:[%s1996_s5 + $0x98] sm:$0xff]  ;;  %v1645_v26 = vld [vmem:[%s1996_s5 + $0xa0] sm:$0xff]  ;;  %v1646_v30 = vld [vmem:[%s1996_s5 + $0xa8] sm:$0xff] }
  0x16   : > { %1863 = vmatpush.bf16.msra.mxu2 %v1662_v2  ;;  %1864 = vmatpush.bf16.msra.mxu3 %v1662_v2  ;;  %v1652_v23 = vld [vmem:[%s1996_s5 + $0xd8] sm:$0xff]  ;;  %v1653_v27 = vld [vmem:[%s1996_s5 + $0xe0] sm:$0xff]  ;;  %v1654_v31 = vld [vmem:[%s1996_s5 + $0xe8] sm:$0xff] }
  0x17   : > { %v1631_v32 = vld [vmem:[%s1996_s5 + $0x30] sm:$0xff]  ;;  %v1632_v36 = vld [vmem:[%s1996_s5 + $0x38] sm:$0xff] }
  0x18   : > { %v1639_v33 = vld [vmem:[%s1996_s5 + $0x70] sm:$0xff]  ;;  %v1640_v37 = vld [vmem:[%s1996_s5 + $0x78] sm:$0xff] }
  0x19   : > { %673 = vmatpush.bf16.msra.mxu0 %v1661_v3  ;;  %1865 = vmatpush.bf16.msra.mxu1 %v1661_v3  ;;  %v1647_v34 = vld [vmem:[%s1996_s5 + $0xb0] sm:$0xff]  ;;  %v1648_v38 = vld [vmem:[%s1996_s5 + $0xb8] sm:$0xff] }
  0x1a   : > { %1866 = vmatpush.bf16.msra.mxu2 %v1661_v3  ;;  %1867 = vmatpush.bf16.msra.mxu3 %v1661_v3  ;;  %v1655_v35 = vld [vmem:[%s1996_s5 + $0xf0] sm:$0xff]  ;;  %v1656_v39 = vld [vmem:[%s1996_s5 + $0xf8] sm:$0xff] }
  0x1d   : > { %674 = vmatpush.bf16.msra.mxu0 %v1660_v4  ;;  %1868 = vmatpush.bf16.msra.mxu1 %v1660_v4 }
  0x1e   : > { %1869 = vmatpush.bf16.msra.mxu2 %v1660_v4  ;;  %1870 = vmatpush.bf16.msra.mxu3 %v1660_v4 }
  0x21   : > { %675 = vmatpush.bf16.msra.mxu0 %v1659_v5  ;;  %1871 = vmatpush.bf16.msra.mxu1 %v1659_v5 }
  0x22   : > { %1872 = vmatpush.bf16.msra.mxu2 %v1659_v5  ;;  %1873 = vmatpush.bf16.msra.mxu3 %v1659_v5 }
  0x25   : > { %676 = vmatpush.bf16.msra.mxu0 %v1658_v6  ;;  %1874 = vmatpush.bf16.msra.mxu1 %v1658_v6 }
  0x26   : > { %1875 = vmatpush.bf16.msra.mxu2 %v1658_v6  ;;  %1876 = vmatpush.bf16.msra.mxu3 %v1658_v6 }
  0x29   : > { %677 = vmatpush.bf16.msra.mxu0 %v1657_v7  ;;  %1877 = vmatpush.bf16.msra.mxu1 %v1657_v7 }
  0x2a   : > { %1878 = vmatpush.bf16.msra.mxu2 %v1657_v7  ;;  %1879 = vmatpush.bf16.msra.mxu3 %v1657_v7 }
  0x2c   : > { %678 = vmatmul.bf16.vlgmr.msra.gmra.mxu0 %v1625_v8  ;;  %718 = vmatmul.bf16.vlgmr.msra.gmra.mxu1 %v1633_v9 }
  0x2d   : > { %758 = vmatmul.bf16.vlgmr.msra.gmra.mxu2 %v1641_v10  ;;  %798 = vmatmul.bf16.vlgmr.msra.gmra.mxu3 %v1649_v11 }
  0x3c   : > { %683 = vmatmul.bf16.gmra.mxu0 %v1626_v12  ;;  %723 = vmatmul.bf16.gmra.mxu1 %v1634_v13 }
  0x3d   : > { %763 = vmatmul.bf16.gmra.mxu2 %v1642_v14  ;;  %803 = vmatmul.bf16.gmra.mxu3 %v1650_v15 }
  0x4c   : > { %688 = vmatmul.bf16.gmra.mxu0 %v1627_v16  ;;  %728 = vmatmul.bf16.gmra.mxu1 %v1635_v17 }
  0x4d   : > { %768 = vmatmul.bf16.gmra.mxu2 %v1643_v18  ;;  %808 = vmatmul.bf16.gmra.mxu3 %v1651_v19 }
  0x5c   : > { %693 = vmatmul.bf16.gmra.mxu0 %v1628_v20  ;;  %733 = vmatmul.bf16.gmra.mxu1 %v1636_v21 }
  0x5d   : > { %773 = vmatmul.bf16.gmra.mxu2 %v1644_v22  ;;  %813 = vmatmul.bf16.gmra.mxu3 %v1652_v23 }
  0x6c   : > { %698 = vmatmul.bf16.gmra.mxu0 %v1629_v24  ;;  %738 = vmatmul.bf16.gmra.mxu1 %v1637_v25 }
  0x6d   : > { %778 = vmatmul.bf16.gmra.mxu2 %v1645_v26  ;;  %818 = vmatmul.bf16.gmra.mxu3 %v1653_v27 }
  0x7c   : > { %703 = vmatmul.bf16.gmra.mxu0 %v1630_v28  ;;  %743 = vmatmul.bf16.gmra.mxu1 %v1638_v29 }
  0x7d   : > { %783 = vmatmul.bf16.gmra.mxu2 %v1646_v30  ;;  %823 = vmatmul.bf16.gmra.mxu3 %v1654_v31 }
  0x8c   : > { %708 = vmatmul.bf16.gmra.mxu0 %v1631_v32  ;;  %748 = vmatmul.bf16.gmra.mxu1 %v1639_v33 }
  0x8d   : > { %788 = vmatmul.bf16.gmra.mxu2 %v1647_v34  ;;  %828 = vmatmul.bf16.gmra.mxu3 %v1655_v35 }
  0x9c   : > { %713 = vmatmul.bf16.gmra.mxu0 %v1632_v36  ;;  %753 = vmatmul.bf16.gmra.mxu1 %v1640_v37 }
  0x9d   : > { %793 = vmatmul.bf16.gmra.mxu2 %v1648_v38  ;;  %833 = vmatmul.bf16.gmra.mxu3 %v1656_v39 }
  0xa9   : > { %v679_v40 = vpop.f32.mrf.mxu0  ;;  %v719_v41 = vpop.f32.mrf.mxu1 }
  0xaa   : > { %v1098_v42 = vmul.f32 0.2, %v679_v40  ;;  %v1114_v43 = vmul.f32 0.2, %v719_v41  ;;  %vm1034_vm0 = vcmp.ge.f32.partialorder %v679_v40, 0.0  ;;  %vm1050_vm1 = vcmp.ge.f32.partialorder %v719_v41, 0.0 }
  0xac   : > { %v1162_v50 = vsel %vm1034_vm0, %v679_v40, %v1098_v42  ;;  %v1178_v51 = vsel %vm1050_vm1, %v719_v41, %v1114_v43 }
  0xb0   : > { %v759_v44 = vpop.f32.mrf.mxu2  ;;  %v799_v45 = vpop.f32.mrf.mxu3 }
  0xb1   : > { %v681_v46 = vpop.f32.mrf.mxu0  ;;  %v721_v47 = vpop.f32.mrf.mxu1  ;;  %v1130_v56 = vmul.f32 0.2, %v759_v44  ;;  %v1146_v57 = vmul.f32 0.2, %v799_v45  ;;  %vm1066_vm4 = vcmp.ge.f32.partialorder %v759_v44, 0.0  ;;  %vm1082_vm5 = vcmp.ge.f32.partialorder %v799_v45, 0.0 }
  0xb2   : > { %vm1035_vm2 = vcmp.ge.f32.partialorder %v681_v46, 0.0  ;;  %v1099_v48 = vmul.f32 0.2, %v681_v46  ;;  %vm1051_vm3 = vcmp.ge.f32.partialorder %v721_v47, 0.0  ;;  %v1115_v49 = vmul.f32 0.2, %v721_v47 }
  0xb3   : > { %v1194_v0 = vsel %vm1066_vm4, %v759_v44, %v1130_v56  ;;  %v1210_v1 = vsel %vm1082_vm5, %v799_v45, %v1146_v57 }
  0xb4   : > { %v1163_v52 = vsel %vm1035_vm2, %v681_v46, %v1099_v48  ;;  %v1179_v53 = vsel %vm1051_vm3, %v721_v47, %v1115_v49 }
  0xb5   : > { %v1668_v54 = vpack.c.bf16 %v1163_v52, %v1162_v50  ;;  %v1708_v55 = vpack.c.bf16 %v1179_v53, %v1178_v51 }
  0xb7   : > { %1669 = vst [vmem:[%s2035_s8] sm:$0xff] %v1668_v54  }
  0xb8   : > { %1832 = vst [vmem:[%s2035_s8 + $0x40] sm:$0xff] %v1708_v55   ;;  %v761_v58 = vpop.f32.mrf.mxu2  ;;  %v801_v59 = vpop.f32.mrf.mxu3 }
  0xb9   : > { %vm1067_vm6 = vcmp.ge.f32.partialorder %v761_v58, 0.0  ;;  %v1131_v60 = vmul.f32 0.2, %v761_v58  ;;  %vm1083_vm7 = vcmp.ge.f32.partialorder %v801_v59, 0.0  ;;  %v1147_v61 = vmul.f32 0.2, %v801_v59  ;;  %v684_v62 = vpop.f32.mrf.mxu0  ;;  %v724_v63 = vpop.f32.mrf.mxu1 }
  0xba   : > { %v1100_v6 = vmul.f32 0.2, %v684_v62  ;;  %v1116_v7 = vmul.f32 0.2, %v724_v63  ;;  %vm1036_vm8 = vcmp.ge.f32.partialorder %v684_v62, 0.0  ;;  %vm1052_vm9 = vcmp.ge.f32.partialorder %v724_v63, 0.0 }
  0xbb   : > { %v1195_v2 = vsel %vm1067_vm6, %v761_v58, %v1131_v60  ;;  %v1211_v3 = vsel %vm1083_vm7, %v801_v59, %v1147_v61 }
  0xbc   : > { %v1748_v4 = vpack.c.bf16 %v1195_v2, %v1194_v0  ;;  %v1788_v5 = vpack.c.bf16 %v1211_v3, %v1210_v1  ;;  %v1164_v14 = vsel %vm1036_vm8, %v684_v62, %v1100_v6  ;;  %v1180_v15 = vsel %vm1052_vm9, %v724_v63, %v1116_v7 }
  0xbe   : > { %1840 = vst [vmem:[%s2035_s8 + $0x80] sm:$0xff] %v1748_v4  }
  0xbf   : > { %1848 = vst [vmem:[%s2035_s8 + $0xc0] sm:$0xff] %v1788_v5  }
  0xc0   : > { %v764_v8 = vpop.f32.mrf.mxu2  ;;  %v804_v9 = vpop.f32.mrf.mxu3 }
  0xc1   : > { %v686_v10 = vpop.f32.mrf.mxu0  ;;  %v726_v11 = vpop.f32.mrf.mxu1  ;;  %v1132_v20 = vmul.f32 0.2, %v764_v8  ;;  %v1148_v21 = vmul.f32 0.2, %v804_v9  ;;  %vm1068_vm12 = vcmp.ge.f32.partialorder %v764_v8, 0.0  ;;  %vm1084_vm13 = vcmp.ge.f32.partialorder %v804_v9, 0.0 }
  0xc2   : > { %vm1037_vm10 = vcmp.ge.f32.partialorder %v686_v10, 0.0  ;;  %v1101_v12 = vmul.f32 0.2, %v686_v10  ;;  %vm1053_vm11 = vcmp.ge.f32.partialorder %v726_v11, 0.0  ;;  %v1117_v13 = vmul.f32 0.2, %v726_v11 }
  0xc3   : > { %v1196_v28 = vsel %vm1068_vm12, %v764_v8, %v1132_v20  ;;  %v1212_v29 = vsel %vm1084_vm13, %v804_v9, %v1148_v21 }
  0xc4   : > { %v1165_v16 = vsel %vm1037_vm10, %v686_v10, %v1101_v12  ;;  %v1181_v17 = vsel %vm1053_vm11, %v726_v11, %v1117_v13 }
  0xc5   : > { %v1673_v18 = vpack.c.bf16 %v1165_v16, %v1164_v14  ;;  %v1713_v19 = vpack.c.bf16 %v1181_v17, %v1180_v15 }
  0xc7   : > { %1825 = vst [vmem:[%s2035_s8 + $0x8] sm:$0xff] %v1673_v18  }
  0xc8   : > { %1833 = vst [vmem:[%s2035_s8 + $0x48] sm:$0xff] %v1713_v19   ;;  %v766_v22 = vpop.f32.mrf.mxu2  ;;  %v806_v23 = vpop.f32.mrf.mxu3 }
  0xc9   : > { %vm1069_vm14 = vcmp.ge.f32.partialorder %v766_v22, 0.0  ;;  %v1133_v24 = vmul.f32 0.2, %v766_v22  ;;  %vm1085_vm15 = vcmp.ge.f32.partialorder %v806_v23, 0.0  ;;  %v1149_v25 = vmul.f32 0.2, %v806_v23  ;;  %v689_v26 = vpop.f32.mrf.mxu0  ;;  %v729_v27 = vpop.f32.mrf.mxu1 }
  0xca   : > { %v1102_v34 = vmul.f32 0.2, %v689_v26  ;;  %v1118_v35 = vmul.f32 0.2, %v729_v27  ;;  %vm1038_vm0 = vcmp.ge.f32.partialorder %v689_v26, 0.0  ;;  %vm1054_vm1 = vcmp.ge.f32.partialorder %v729_v27, 0.0 }
  0xcb   : > { %v1197_v30 = vsel %vm1069_vm14, %v766_v22, %v1133_v24  ;;  %v1213_v31 = vsel %vm1085_vm15, %v806_v23, %v1149_v25 }
  0xcc   : > { %v1753_v32 = vpack.c.bf16 %v1197_v30, %v1196_v28  ;;  %v1793_v33 = vpack.c.bf16 %v1213_v31, %v1212_v29  ;;  %v1166_v42 = vsel %vm1038_vm0, %v689_v26, %v1102_v34  ;;  %v1182_v43 = vsel %vm1054_vm1, %v729_v27, %v1118_v35 }
  0xce   : > { %1841 = vst [vmem:[%s2035_s8 + $0x88] sm:$0xff] %v1753_v32  }
  0xcf   : > { %1849 = vst [vmem:[%s2035_s8 + $0xc8] sm:$0xff] %v1793_v33  }
  0xd0   : > { %v769_v36 = vpop.f32.mrf.mxu2  ;;  %v809_v37 = vpop.f32.mrf.mxu3 }
  0xd1   : > { %v691_v38 = vpop.f32.mrf.mxu0  ;;  %v731_v39 = vpop.f32.mrf.mxu1  ;;  %v1134_v48 = vmul.f32 0.2, %v769_v36  ;;  %v1150_v49 = vmul.f32 0.2, %v809_v37  ;;  %vm1070_vm4 = vcmp.ge.f32.partialorder %v769_v36, 0.0  ;;  %vm1086_vm5 = vcmp.ge.f32.partialorder %v809_v37, 0.0 }
  0xd2   : > { %vm1039_vm2 = vcmp.ge.f32.partialorder %v691_v38, 0.0  ;;  %v1103_v40 = vmul.f32 0.2, %v691_v38  ;;  %vm1055_vm3 = vcmp.ge.f32.partialorder %v731_v39, 0.0  ;;  %v1119_v41 = vmul.f32 0.2, %v731_v39 }
  0xd3   : > { %v1198_v56 = vsel %vm1070_vm4, %v769_v36, %v1134_v48  ;;  %v1214_v57 = vsel %vm1086_vm5, %v809_v37, %v1150_v49 }
  0xd4   : > { %v1167_v44 = vsel %vm1039_vm2, %v691_v38, %v1103_v40  ;;  %v1183_v45 = vsel %vm1055_vm3, %v731_v39, %v1119_v41 }
  0xd5   : > { %v1678_v46 = vpack.c.bf16 %v1167_v44, %v1166_v42  ;;  %v1718_v47 = vpack.c.bf16 %v1183_v45, %v1182_v43 }
  0xd7   : > { %1826 = vst [vmem:[%s2035_s8 + $0x10] sm:$0xff] %v1678_v46  }
  0xd8   : > { %1834 = vst [vmem:[%s2035_s8 + $0x50] sm:$0xff] %v1718_v47   ;;  %v771_v50 = vpop.f32.mrf.mxu2  ;;  %v811_v51 = vpop.f32.mrf.mxu3 }
  0xd9   : > { %vm1071_vm6 = vcmp.ge.f32.partialorder %v771_v50, 0.0  ;;  %v1135_v52 = vmul.f32 0.2, %v771_v50  ;;  %vm1087_vm7 = vcmp.ge.f32.partialorder %v811_v51, 0.0  ;;  %v1151_v53 = vmul.f32 0.2, %v811_v51  ;;  %v694_v54 = vpop.f32.mrf.mxu0  ;;  %v734_v55 = vpop.f32.mrf.mxu1 }
  0xda   : > { %v1104_v62 = vmul.f32 0.2, %v694_v54  ;;  %v1120_v63 = vmul.f32 0.2, %v734_v55  ;;  %vm1040_vm8 = vcmp.ge.f32.partialorder %v694_v54, 0.0  ;;  %vm1056_vm9 = vcmp.ge.f32.partialorder %v734_v55, 0.0 }
  0xdb   : > { %v1199_v58 = vsel %vm1071_vm6, %v771_v50, %v1135_v52  ;;  %v1215_v59 = vsel %vm1087_vm7, %v811_v51, %v1151_v53 }
  0xdc   : > { %v1758_v60 = vpack.c.bf16 %v1199_v58, %v1198_v56  ;;  %v1798_v61 = vpack.c.bf16 %v1215_v59, %v1214_v57  ;;  %v1168_v6 = vsel %vm1040_vm8, %v694_v54, %v1104_v62  ;;  %v1184_v7 = vsel %vm1056_vm9, %v734_v55, %v1120_v63 }
  0xde   : > { %1842 = vst [vmem:[%s2035_s8 + $0x90] sm:$0xff] %v1758_v60  }
  0xdf   : > { %1850 = vst [vmem:[%s2035_s8 + $0xd0] sm:$0xff] %v1798_v61  }
  0xe0   : > { %v774_v0 = vpop.f32.mrf.mxu2  ;;  %v814_v1 = vpop.f32.mrf.mxu3 }
  0xe1   : > { %v696_v2 = vpop.f32.mrf.mxu0  ;;  %v736_v3 = vpop.f32.mrf.mxu1  ;;  %v1136_v12 = vmul.f32 0.2, %v774_v0  ;;  %v1152_v13 = vmul.f32 0.2, %v814_v1  ;;  %vm1072_vm12 = vcmp.ge.f32.partialorder %v774_v0, 0.0  ;;  %vm1088_vm13 = vcmp.ge.f32.partialorder %v814_v1, 0.0 }
  0xe2   : > { %vm1041_vm10 = vcmp.ge.f32.partialorder %v696_v2, 0.0  ;;  %v1105_v4 = vmul.f32 0.2, %v696_v2  ;;  %vm1057_vm11 = vcmp.ge.f32.partialorder %v736_v3, 0.0  ;;  %v1121_v5 = vmul.f32 0.2, %v736_v3 }
  0xe3   : > { %v1200_v20 = vsel %vm1072_vm12, %v774_v0, %v1136_v12  ;;  %v1216_v21 = vsel %vm1088_vm13, %v814_v1, %v1152_v13 }
  0xe4   : > { %v1169_v8 = vsel %vm1041_vm10, %v696_v2, %v1105_v4  ;;  %v1185_v9 = vsel %vm1057_vm11, %v736_v3, %v1121_v5 }
  0xe5   : > { %v1683_v10 = vpack.c.bf16 %v1169_v8, %v1168_v6  ;;  %v1723_v11 = vpack.c.bf16 %v1185_v9, %v1184_v7 }
  0xe7   : > { %1827 = vst [vmem:[%s2035_s8 + $0x18] sm:$0xff] %v1683_v10  }
  0xe8   : > { %1835 = vst [vmem:[%s2035_s8 + $0x58] sm:$0xff] %v1723_v11   ;;  %v776_v14 = vpop.f32.mrf.mxu2  ;;  %v816_v15 = vpop.f32.mrf.mxu3 }
  0xe9   : > { %vm1073_vm14 = vcmp.ge.f32.partialorder %v776_v14, 0.0  ;;  %v1137_v16 = vmul.f32 0.2, %v776_v14  ;;  %vm1089_vm15 = vcmp.ge.f32.partialorder %v816_v15, 0.0  ;;  %v1153_v17 = vmul.f32 0.2, %v816_v15  ;;  %v699_v18 = vpop.f32.mrf.mxu0  ;;  %v739_v19 = vpop.f32.mrf.mxu1 }
  0xea   : > { %v1106_v26 = vmul.f32 0.2, %v699_v18  ;;  %v1122_v27 = vmul.f32 0.2, %v739_v19  ;;  %vm1042_vm0 = vcmp.ge.f32.partialorder %v699_v18, 0.0  ;;  %vm1058_vm1 = vcmp.ge.f32.partialorder %v739_v19, 0.0 }
  0xeb   : > { %v1201_v22 = vsel %vm1073_vm14, %v776_v14, %v1137_v16  ;;  %v1217_v23 = vsel %vm1089_vm15, %v816_v15, %v1153_v17 }
  0xec   : > { %v1763_v24 = vpack.c.bf16 %v1201_v22, %v1200_v20  ;;  %v1803_v25 = vpack.c.bf16 %v1217_v23, %v1216_v21  ;;  %v1170_v34 = vsel %vm1042_vm0, %v699_v18, %v1106_v26  ;;  %v1186_v35 = vsel %vm1058_vm1, %v739_v19, %v1122_v27 }
  0xee   : > { %1843 = vst [vmem:[%s2035_s8 + $0x98] sm:$0xff] %v1763_v24  }
  0xef   : > { %1851 = vst [vmem:[%s2035_s8 + $0xd8] sm:$0xff] %v1803_v25  }
  0xf0   : > { %v779_v28 = vpop.f32.mrf.mxu2  ;;  %v819_v29 = vpop.f32.mrf.mxu3 }
  0xf1   : > { %v701_v30 = vpop.f32.mrf.mxu0  ;;  %v741_v31 = vpop.f32.mrf.mxu1  ;;  %v1138_v40 = vmul.f32 0.2, %v779_v28  ;;  %v1154_v41 = vmul.f32 0.2, %v819_v29  ;;  %vm1074_vm4 = vcmp.ge.f32.partialorder %v779_v28, 0.0  ;;  %vm1090_vm5 = vcmp.ge.f32.partialorder %v819_v29, 0.0 }
  0xf2   : > { %vm1043_vm2 = vcmp.ge.f32.partialorder %v701_v30, 0.0  ;;  %v1107_v32 = vmul.f32 0.2, %v701_v30  ;;  %vm1059_vm3 = vcmp.ge.f32.partialorder %v741_v31, 0.0  ;;  %v1123_v33 = vmul.f32 0.2, %v741_v31 }
  0xf3   : > { %v1202_v48 = vsel %vm1074_vm4, %v779_v28, %v1138_v40  ;;  %v1218_v49 = vsel %vm1090_vm5, %v819_v29, %v1154_v41 }
  0xf4   : > { %v1171_v36 = vsel %vm1043_vm2, %v701_v30, %v1107_v32  ;;  %v1187_v37 = vsel %vm1059_vm3, %v741_v31, %v1123_v33 }
  0xf5   : > { %v1688_v38 = vpack.c.bf16 %v1171_v36, %v1170_v34  ;;  %v1728_v39 = vpack.c.bf16 %v1187_v37, %v1186_v35 }
  0xf7   : > { %1828 = vst [vmem:[%s2035_s8 + $0x20] sm:$0xff] %v1688_v38  }
  0xf8   : > { %1836 = vst [vmem:[%s2035_s8 + $0x60] sm:$0xff] %v1728_v39   ;;  %v781_v42 = vpop.f32.mrf.mxu2  ;;  %v821_v43 = vpop.f32.mrf.mxu3 }
  0xf9   : > { %vm1075_vm6 = vcmp.ge.f32.partialorder %v781_v42, 0.0  ;;  %v1139_v44 = vmul.f32 0.2, %v781_v42  ;;  %vm1091_vm7 = vcmp.ge.f32.partialorder %v821_v43, 0.0  ;;  %v1155_v45 = vmul.f32 0.2, %v821_v43  ;;  %v704_v46 = vpop.f32.mrf.mxu0  ;;  %v744_v47 = vpop.f32.mrf.mxu1 }
  0xfa   : > { %v1108_v54 = vmul.f32 0.2, %v704_v46  ;;  %v1124_v55 = vmul.f32 0.2, %v744_v47  ;;  %vm1044_vm8 = vcmp.ge.f32.partialorder %v704_v46, 0.0  ;;  %vm1060_vm9 = vcmp.ge.f32.partialorder %v744_v47, 0.0 }
  0xfb   : > { %v1203_v50 = vsel %vm1075_vm6, %v781_v42, %v1139_v44  ;;  %v1219_v51 = vsel %vm1091_vm7, %v821_v43, %v1155_v45 }
  0xfc   : > { %v1768_v52 = vpack.c.bf16 %v1203_v50, %v1202_v48  ;;  %v1808_v53 = vpack.c.bf16 %v1219_v51, %v1218_v49  ;;  %v1172_v62 = vsel %vm1044_vm8, %v704_v46, %v1108_v54  ;;  %v1188_v63 = vsel %vm1060_vm9, %v744_v47, %v1124_v55 }
  0xfe   : > { %1844 = vst [vmem:[%s2035_s8 + $0xa0] sm:$0xff] %v1768_v52  }
  0xff   : > { %1852 = vst [vmem:[%s2035_s8 + $0xe0] sm:$0xff] %v1808_v53  }
 0x100   : > { %v784_v56 = vpop.f32.mrf.mxu2  ;;  %v824_v57 = vpop.f32.mrf.mxu3 }
 0x101   : > { %v706_v58 = vpop.f32.mrf.mxu0  ;;  %v746_v59 = vpop.f32.mrf.mxu1  ;;  %v1140_v4 = vmul.f32 0.2, %v784_v56  ;;  %v1156_v5 = vmul.f32 0.2, %v824_v57  ;;  %vm1076_vm12 = vcmp.ge.f32.partialorder %v784_v56, 0.0  ;;  %vm1092_vm13 = vcmp.ge.f32.partialorder %v824_v57, 0.0 }
 0x102   : > { %vm1045_vm10 = vcmp.ge.f32.partialorder %v706_v58, 0.0  ;;  %v1109_v60 = vmul.f32 0.2, %v706_v58  ;;  %vm1061_vm11 = vcmp.ge.f32.partialorder %v746_v59, 0.0  ;;  %v1125_v61 = vmul.f32 0.2, %v746_v59 }
 0x103   : > { %v1204_v12 = vsel %vm1076_vm12, %v784_v56, %v1140_v4  ;;  %v1220_v13 = vsel %vm1092_vm13, %v824_v57, %v1156_v5 }
 0x104   : > { %v1173_v0 = vsel %vm1045_vm10, %v706_v58, %v1109_v60  ;;  %v1189_v1 = vsel %vm1061_vm11, %v746_v59, %v1125_v61 }
 0x105   : > { %v1693_v2 = vpack.c.bf16 %v1173_v0, %v1172_v62  ;;  %v1733_v3 = vpack.c.bf16 %v1189_v1, %v1188_v63 }
 0x107   : > { %1829 = vst [vmem:[%s2035_s8 + $0x28] sm:$0xff] %v1693_v2  }
 0x108   : > { %1837 = vst [vmem:[%s2035_s8 + $0x68] sm:$0xff] %v1733_v3   ;;  %v786_v6 = vpop.f32.mrf.mxu2  ;;  %v826_v7 = vpop.f32.mrf.mxu3 }
 0x109   : > { %vm1077_vm14 = vcmp.ge.f32.partialorder %v786_v6, 0.0  ;;  %v1141_v8 = vmul.f32 0.2, %v786_v6  ;;  %vm1093_vm15 = vcmp.ge.f32.partialorder %v826_v7, 0.0  ;;  %v1157_v9 = vmul.f32 0.2, %v826_v7  ;;  %v709_v10 = vpop.f32.mrf.mxu0  ;;  %v749_v11 = vpop.f32.mrf.mxu1 }
 0x10a   : > { %v1110_v18 = vmul.f32 0.2, %v709_v10  ;;  %v1126_v19 = vmul.f32 0.2, %v749_v11  ;;  %vm1046_vm0 = vcmp.ge.f32.partialorder %v709_v10, 0.0  ;;  %vm1062_vm1 = vcmp.ge.f32.partialorder %v749_v11, 0.0 }
 0x10b   : > { %v1205_v14 = vsel %vm1077_vm14, %v786_v6, %v1141_v8  ;;  %v1221_v15 = vsel %vm1093_vm15, %v826_v7, %v1157_v9 }
 0x10c   : > { %v1773_v16 = vpack.c.bf16 %v1205_v14, %v1204_v12  ;;  %v1813_v17 = vpack.c.bf16 %v1221_v15, %v1220_v13  ;;  %v1174_v26 = vsel %vm1046_vm0, %v709_v10, %v1110_v18  ;;  %v1190_v27 = vsel %vm1062_vm1, %v749_v11, %v1126_v19 }
 0x10e   : > { %1845 = vst [vmem:[%s2035_s8 + $0xa8] sm:$0xff] %v1773_v16  }
 0x10f   : > { %1853 = vst [vmem:[%s2035_s8 + $0xe8] sm:$0xff] %v1813_v17  }
 0x110   : > { %v789_v20 = vpop.f32.mrf.mxu2  ;;  %v829_v21 = vpop.f32.mrf.mxu3 }
 0x111   : > { %v711_v22 = vpop.f32.mrf.mxu0  ;;  %v751_v23 = vpop.f32.mrf.mxu1  ;;  %v1142_v32 = vmul.f32 0.2, %v789_v20  ;;  %v1158_v33 = vmul.f32 0.2, %v829_v21  ;;  %vm1078_vm4 = vcmp.ge.f32.partialorder %v789_v20, 0.0  ;;  %vm1094_vm5 = vcmp.ge.f32.partialorder %v829_v21, 0.0 }
 0x112   : > { %vm1047_vm2 = vcmp.ge.f32.partialorder %v711_v22, 0.0  ;;  %v1111_v24 = vmul.f32 0.2, %v711_v22  ;;  %vm1063_vm3 = vcmp.ge.f32.partialorder %v751_v23, 0.0  ;;  %v1127_v25 = vmul.f32 0.2, %v751_v23 }
 0x113   : > { %v1206_v40 = vsel %vm1078_vm4, %v789_v20, %v1142_v32  ;;  %v1222_v41 = vsel %vm1094_vm5, %v829_v21, %v1158_v33 }
 0x114   : > { %v1175_v28 = vsel %vm1047_vm2, %v711_v22, %v1111_v24  ;;  %v1191_v29 = vsel %vm1063_vm3, %v751_v23, %v1127_v25 }
 0x115   : > { %v1698_v30 = vpack.c.bf16 %v1175_v28, %v1174_v26  ;;  %v1738_v31 = vpack.c.bf16 %v1191_v29, %v1190_v27 }
 0x117   : > { %1830 = vst [vmem:[%s2035_s8 + $0x30] sm:$0xff] %v1698_v30  }
 0x118   : > { %1838 = vst [vmem:[%s2035_s8 + $0x70] sm:$0xff] %v1738_v31   ;;  %v791_v34 = vpop.f32.mrf.mxu2  ;;  %v831_v35 = vpop.f32.mrf.mxu3 }
 0x119   : > { %vm1079_vm6 = vcmp.ge.f32.partialorder %v791_v34, 0.0  ;;  %v1143_v36 = vmul.f32 0.2, %v791_v34  ;;  %vm1095_vm7 = vcmp.ge.f32.partialorder %v831_v35, 0.0  ;;  %v1159_v37 = vmul.f32 0.2, %v831_v35  ;;  %v714_v38 = vpop.f32.mrf.mxu0  ;;  %v754_v39 = vpop.f32.mrf.mxu1 }
 0x11a   : > { %v1112_v46 = vmul.f32 0.2, %v714_v38  ;;  %v1128_v47 = vmul.f32 0.2, %v754_v39  ;;  %vm1048_vm8 = vcmp.ge.f32.partialorder %v714_v38, 0.0  ;;  %vm1064_vm9 = vcmp.ge.f32.partialorder %v754_v39, 0.0 }
 0x11b   : > { %v1207_v42 = vsel %vm1079_vm6, %v791_v34, %v1143_v36  ;;  %v1223_v43 = vsel %vm1095_vm7, %v831_v35, %v1159_v37 }
 0x11c   : > { %v1778_v44 = vpack.c.bf16 %v1207_v42, %v1206_v40  ;;  %v1818_v45 = vpack.c.bf16 %v1223_v43, %v1222_v41  ;;  %v1176_v54 = vsel %vm1048_vm8, %v714_v38, %v1112_v46  ;;  %v1192_v55 = vsel %vm1064_vm9, %v754_v39, %v1128_v47 }
 0x11e   : > { %1846 = vst [vmem:[%s2035_s8 + $0xb0] sm:$0xff] %v1778_v44  }
 0x11f   : > { %1854 = vst [vmem:[%s2035_s8 + $0xf0] sm:$0xff] %v1818_v45  }
 0x120   : > { %v794_v48 = vpop.f32.mrf.mxu2  ;;  %v834_v49 = vpop.f32.mrf.mxu3 }
 0x121   : > { %v716_v50 = vpop.f32.mrf.mxu0  ;;  %v756_v51 = vpop.f32.mrf.mxu1  ;;  %v1144_v60 = vmul.f32 0.2, %v794_v48  ;;  %v1160_v61 = vmul.f32 0.2, %v834_v49  ;;  %vm1080_vm12 = vcmp.ge.f32.partialorder %v794_v48, 0.0  ;;  %vm1096_vm13 = vcmp.ge.f32.partialorder %v834_v49, 0.0 }
 0x122   : > { %vm1049_vm10 = vcmp.ge.f32.partialorder %v716_v50, 0.0  ;;  %v1113_v52 = vmul.f32 0.2, %v716_v50  ;;  %vm1065_vm11 = vcmp.ge.f32.partialorder %v756_v51, 0.0  ;;  %v1129_v53 = vmul.f32 0.2, %v756_v51 }
 0x123   : > { %v1208_v2 = vsel %vm1080_vm12, %v794_v48, %v1144_v60  ;;  %v1224_v3 = vsel %vm1096_vm13, %v834_v49, %v1160_v61 }
 0x124   : > { %v1177_v56 = vsel %vm1049_vm10, %v716_v50, %v1113_v52  ;;  %v1193_v57 = vsel %vm1065_vm11, %v756_v51, %v1129_v53 }
 0x125   : > { %v1703_v58 = vpack.c.bf16 %v1177_v56, %v1176_v54  ;;  %v1743_v59 = vpack.c.bf16 %v1193_v57, %v1192_v55 }
 0x127   : > { %1831 = vst [vmem:[%s2035_s8 + $0x38] sm:$0xff] %v1703_v58  }
 0x128   : > { %1839 = vst [vmem:[%s2035_s8 + $0x78] sm:$0xff] %v1743_v59   ;;  %v796_v62 = vpop.f32.mrf.mxu2  ;;  %v836_v63 = vpop.f32.mrf.mxu3 }
 0x129   : > { %vm1081_vm14 = vcmp.ge.f32.partialorder %v796_v62, 0.0  ;;  %v1145_v0 = vmul.f32 0.2, %v796_v62  ;;  %vm1097_vm15 = vcmp.ge.f32.partialorder %v836_v63, 0.0  ;;  %v1161_v1 = vmul.f32 0.2, %v836_v63 }
 0x12b   : > { %v1209_v4 = vsel %vm1081_vm14, %v796_v62, %v1145_v0  ;;  %v1225_v5 = vsel %vm1097_vm15, %v836_v63, %v1161_v1 }
 0x12c   : > { %v1783_v6 = vpack.c.bf16 %v1209_v4, %v1208_v2  ;;  %v1823_v7 = vpack.c.bf16 %v1225_v5, %v1224_v3 }
 0x12e   : > { %1847 = vst [vmem:[%s2035_s8 + $0xb8] sm:$0xff] %v1783_v6  }
 0x12f   : > { %1855 = vst [vmem:[%s2035_s8 + $0xf8] sm:$0xff] %v1823_v7  }
 0x130 PF: > { %s12_s11 = sadd.s32 1, %s1926_s11   ;;  %s2081_s9 = smov %s1922_s10 }
 0x131   : > { %p9_p5 = scmp.ge.s32.totalorder %s12_s11, 6   ;;  %s2082_s10 = smov %s2084_s12 }
 0x133   :  { %11 = sbr.rel (!%p9_p5) target bundleno = 2 (0x2), region = 69 }

// kernel: _lambda_.9
= control target key start
LH: loop header
LB: loop body
LE: loop exit
PB: predicated region body
PF: predicated region fallthrough
CT: control target
= control target key end

     0   :  { %s2155_s1 = inlined_call_operand.vmem [shape: bf16[128,128], index: 1, kind: input, shape index: {}]   ;;  %s2156_s0 = inlined_call_operand.vmem [shape: bf16[512,128], index: 0, kind: input, shape index: {}]   ;;  %s2157_s2 = inlined_call_operand.vmem [shape: bf16[512,128], index: 2, kind: output, shape index: {0}]   ;;  %s2158_s3 = inlined_call_operand.vmem [shape: f32[1,128], index: 3, kind: output, shape index: {1}]   ;;  %s2159_s4 = inlined_call_operand.vmem [shape: f32[1,128], index: 4, kind: output, shape index: {2}]  }
   0x1   :  { %v1384_v0 = vld [vmem:[%s2155_s1 + $0x38] sm:$0xff]  ;;  %v1383_v1 = vld [vmem:[%s2155_s1 + $0x30] sm:$0xff]  ;;  %v1382_v2 = vld [vmem:[%s2155_s1 + $0x28] sm:$0xff] }
   0x2   :  { %466 = vmatpush.bf16.msra.mxu0 %v1384_v0  ;;  %1576 = vmatpush.bf16.msra.mxu1 %v1384_v0  ;;  %v1381_v3 = vld [vmem:[%s2155_s1 + $0x20] sm:$0xff]  ;;  %v1380_v4 = vld [vmem:[%s2155_s1 + $0x18] sm:$0xff]  ;;  %v1379_v5 = vld [vmem:[%s2155_s1 + $0x10] sm:$0xff] }
   0x3   :  { %1577 = vmatpush.bf16.msra.mxu2 %v1384_v0  ;;  %1578 = vmatpush.bf16.msra.mxu3 %v1384_v0  ;;  %v1378_v6 = vld [vmem:[%s2155_s1 + $0x8] sm:$0xff]  ;;  %v1377_v7 = vld [vmem:[%s2155_s1] sm:$0xff]  ;;  %v1347_v13 = vld [vmem:[%s2156_s0 + $0x10] sm:$0xff] }
   0x4   :  { %v1345_v8 = vld [vmem:[%s2156_s0] sm:$0xff]  ;;  %v1346_v10 = vld [vmem:[%s2156_s0 + $0x8] sm:$0xff]  ;;  %v1355_v14 = vld [vmem:[%s2156_s0 + $0x50] sm:$0xff] }
   0x5   :  { %v1353_v9 = vld [vmem:[%s2156_s0 + $0x40] sm:$0xff]  ;;  %v1354_v11 = vld [vmem:[%s2156_s0 + $0x48] sm:$0xff]  ;;  %v1348_v16 = vld [vmem:[%s2156_s0 + $0x18] sm:$0xff] }
   0x6   :  { %467 = vmatpush.bf16.msra.mxu0 %v1383_v1  ;;  %1579 = vmatpush.bf16.msra.mxu1 %v1383_v1  ;;  %v1361_v12 = vld [vmem:[%s2156_s0 + $0x80] sm:$0xff]  ;;  %v1362_v15 = vld [vmem:[%s2156_s0 + $0x88] sm:$0xff]  ;;  %v1356_v17 = vld [vmem:[%s2156_s0 + $0x58] sm:$0xff] }
   0x7   :  { %1580 = vmatpush.bf16.msra.mxu2 %v1383_v1  ;;  %1581 = vmatpush.bf16.msra.mxu3 %v1383_v1  ;;  %v1363_v18 = vld [vmem:[%s2156_s0 + $0x90] sm:$0xff]  ;;  %v1369_v19 = vld [vmem:[%s2156_s0 + $0xc0] sm:$0xff]  ;;  %v1364_v22 = vld [vmem:[%s2156_s0 + $0x98] sm:$0xff] }
   0x8   :  { %v1349_v20 = vld [vmem:[%s2156_s0 + $0x20] sm:$0xff]  ;;  %v1370_v23 = vld [vmem:[%s2156_s0 + $0xc8] sm:$0xff]  ;;  %v1371_v27 = vld [vmem:[%s2156_s0 + $0xd0] sm:$0xff] }
   0x9   :  { %v1357_v21 = vld [vmem:[%s2156_s0 + $0x60] sm:$0xff]  ;;  %v1350_v24 = vld [vmem:[%s2156_s0 + $0x28] sm:$0xff]  ;;  %v1351_v28 = vld [vmem:[%s2156_s0 + $0x30] sm:$0xff] }
   0xa   :  { %468 = vmatpush.bf16.msra.mxu0 %v1382_v2  ;;  %1582 = vmatpush.bf16.msra.mxu1 %v1382_v2  ;;  %v1358_v25 = vld [vmem:[%s2156_s0 + $0x68] sm:$0xff]  ;;  %v1365_v26 = vld [vmem:[%s2156_s0 + $0xa0] sm:$0xff]  ;;  %v1359_v29 = vld [vmem:[%s2156_s0 + $0x70] sm:$0xff] }
   0xb   :  { %1583 = vmatpush.bf16.msra.mxu2 %v1382_v2  ;;  %1584 = vmatpush.bf16.msra.mxu3 %v1382_v2  ;;  %v1366_v30 = vld [vmem:[%s2156_s0 + $0xa8] sm:$0xff]  ;;  %v1372_v31 = vld [vmem:[%s2156_s0 + $0xd8] sm:$0xff]  ;;  %v1367_v34 = vld [vmem:[%s2156_s0 + $0xb0] sm:$0xff] }
   0xc   :  { %v1352_v32 = vld [vmem:[%s2156_s0 + $0x38] sm:$0xff]  ;;  %v1373_v35 = vld [vmem:[%s2156_s0 + $0xe0] sm:$0xff]  ;;  %v1374_v39 = vld [vmem:[%s2156_s0 + $0xe8] sm:$0xff] }
   0xd   :  { %v1360_v33 = vld [vmem:[%s2156_s0 + $0x78] sm:$0xff]  ;;  %v1375_v53 = vld [vmem:[%s2156_s0 + $0xf0] sm:$0xff] }
   0xe   :  { %469 = vmatpush.bf16.msra.mxu0 %v1381_v3  ;;  %1585 = vmatpush.bf16.msra.mxu1 %v1381_v3  ;;  %v1368_v38 = vld [vmem:[%s2156_s0 + $0xb8] sm:$0xff] }
   0xf   :  { %1586 = vmatpush.bf16.msra.mxu2 %v1381_v3  ;;  %1587 = vmatpush.bf16.msra.mxu3 %v1381_v3 }
  0x12   :  { %470 = vmatpush.bf16.msra.mxu0 %v1380_v4  ;;  %1588 = vmatpush.bf16.msra.mxu1 %v1380_v4 }
  0x13   :  { %1589 = vmatpush.bf16.msra.mxu2 %v1380_v4  ;;  %1590 = vmatpush.bf16.msra.mxu3 %v1380_v4 }
  0x16   :  { %471 = vmatpush.bf16.msra.mxu0 %v1379_v5  ;;  %1591 = vmatpush.bf16.msra.mxu1 %v1379_v5 }
  0x17   :  { %1592 = vmatpush.bf16.msra.mxu2 %v1379_v5  ;;  %1593 = vmatpush.bf16.msra.mxu3 %v1379_v5  ;;  %v1376_v5 = vld [vmem:[%s2156_s0 + $0xf8] sm:$0xff] }
  0x1a   :  { %472 = vmatpush.bf16.msra.mxu0 %v1378_v6  ;;  %1594 = vmatpush.bf16.msra.mxu1 %v1378_v6 }
  0x1b   :  { %1595 = vmatpush.bf16.msra.mxu2 %v1378_v6  ;;  %1596 = vmatpush.bf16.msra.mxu3 %v1378_v6 }
  0x1e   :  { %473 = vmatpush.bf16.msra.mxu0 %v1377_v7  ;;  %1597 = vmatpush.bf16.msra.mxu1 %v1377_v7 }
  0x1f   :  { %1598 = vmatpush.bf16.msra.mxu2 %v1377_v7  ;;  %1599 = vmatpush.bf16.msra.mxu3 %v1377_v7 }
  0x21   :  { %474 = vmatmul.bf16.vlgmr.msra.gmra.mxu0 %v1345_v8  ;;  %514 = vmatmul.bf16.vlgmr.msra.gmra.mxu1 %v1353_v9 }
  0x22   :  { %554 = vmatmul.bf16.vlgmr.msra.gmra.mxu2 %v1361_v12  ;;  %594 = vmatmul.bf16.vlgmr.msra.gmra.mxu3 %v1369_v19 }
  0x31   :  { %479 = vmatmul.bf16.gmra.mxu0 %v1346_v10  ;;  %519 = vmatmul.bf16.gmra.mxu1 %v1354_v11 }
  0x32   :  { %559 = vmatmul.bf16.gmra.mxu2 %v1362_v15  ;;  %599 = vmatmul.bf16.gmra.mxu3 %v1370_v23 }
  0x41   :  { %484 = vmatmul.bf16.gmra.mxu0 %v1347_v13  ;;  %524 = vmatmul.bf16.gmra.mxu1 %v1355_v14 }
  0x42   :  { %564 = vmatmul.bf16.gmra.mxu2 %v1363_v18  ;;  %604 = vmatmul.bf16.gmra.mxu3 %v1371_v27 }
  0x51   :  { %489 = vmatmul.bf16.gmra.mxu0 %v1348_v16  ;;  %529 = vmatmul.bf16.gmra.mxu1 %v1356_v17 }
  0x52   :  { %569 = vmatmul.bf16.gmra.mxu2 %v1364_v22  ;;  %609 = vmatmul.bf16.gmra.mxu3 %v1372_v31 }
  0x61   :  { %494 = vmatmul.bf16.gmra.mxu0 %v1349_v20  ;;  %534 = vmatmul.bf16.gmra.mxu1 %v1357_v21 }
  0x62   :  { %574 = vmatmul.bf16.gmra.mxu2 %v1365_v26  ;;  %614 = vmatmul.bf16.gmra.mxu3 %v1373_v35 }
  0x71   :  { %499 = vmatmul.bf16.gmra.mxu0 %v1350_v24  ;;  %539 = vmatmul.bf16.gmra.mxu1 %v1358_v25 }
  0x72   :  { %579 = vmatmul.bf16.gmra.mxu2 %v1366_v30  ;;  %619 = vmatmul.bf16.gmra.mxu3 %v1374_v39 }
  0x81   :  { %504 = vmatmul.bf16.gmra.mxu0 %v1351_v28  ;;  %544 = vmatmul.bf16.gmra.mxu1 %v1359_v29 }
  0x82   :  { %584 = vmatmul.bf16.gmra.mxu2 %v1367_v34  ;;  %624 = vmatmul.bf16.gmra.mxu3 %v1375_v53 }
  0x91   :  { %509 = vmatmul.bf16.gmra.mxu0 %v1352_v32  ;;  %549 = vmatmul.bf16.gmra.mxu1 %v1360_v33 }
  0x92   :  { %589 = vmatmul.bf16.gmra.mxu2 %v1368_v38  ;;  %629 = vmatmul.bf16.gmra.mxu3 %v1376_v5 }
  0x9e   :  { %v475_v36 = vpop.f32.mrf.mxu0  ;;  %v1735_v37 = vpop.f32.mrf.mxu1 }
  0x9f   :  { %v910_v42 = vmul.f32 %v475_v36, %v475_v36 }
  0xa5   :  { %v1760_v59 = vpop.f32.mrf.mxu2  ;;  %v1811_v19 = vpop.f32.mrf.mxu3 }
  0xa6   :  { %v477_v40 = vpop.f32.mrf.mxu0  ;;  %v1743_v41 = vpop.f32.mrf.mxu1 }
  0xa7   :  { %v838_v43 = vadd.f32 %v477_v40, %v475_v36  ;;  %v911_v44 = vmul.f32 %v477_v40, %v477_v40  ;;  %v1388_v45 = vpack.c.bf16 %v477_v40, %v475_v36  ;;  %v1428_v46 = vpack.c.bf16 %v1743_v41, %v1735_v37 }
  0xa9   :  { %v974_v47 = vadd.f32 %v911_v44, %v910_v42  ;;  %1389 = vst [vmem:[%s2157_s2] sm:$0xff] %v1388_v45  }
  0xaa   :  { %1552 = vst [vmem:[%s2157_s2 + $0x40] sm:$0xff] %v1428_v46  }
  0xad   :  { %v1774_v2 = vpop.f32.mrf.mxu2  ;;  %v1825_v24 = vpop.f32.mrf.mxu3 }
  0xae   :  { %v480_v48 = vpop.f32.mrf.mxu0  ;;  %v1753_v49 = vpop.f32.mrf.mxu1  ;;  %v1468_v3 = vpack.c.bf16 %v1774_v2, %v1760_v59  ;;  %v1508_v26 = vpack.c.bf16 %v1825_v24, %v1811_v19 }
  0xaf   :  { %v839_v50 = vadd.f32 %v838_v43, %v480_v48  ;;  %v912_v51 = vmul.f32 %v480_v48, %v480_v48 }
  0xb0   :  { %1560 = vst [vmem:[%s2157_s2 + $0x80] sm:$0xff] %v1468_v3  }
  0xb1   :  { %v975_v52 = vadd.f32 %v974_v47, %v912_v51  ;;  %1568 = vst [vmem:[%s2157_s2 + $0xc0] sm:$0xff] %v1508_v26  }
  0xb5   :  { %v1788_v9 = vpop.f32.mrf.mxu2  ;;  %v1841_v31 = vpop.f32.mrf.mxu3 }
  0xb6   :  { %v482_v54 = vpop.f32.mrf.mxu0  ;;  %v1758_v55 = vpop.f32.mrf.mxu1 }
  0xb7   :  { %v840_v56 = vadd.f32 %v839_v50, %v482_v54  ;;  %v913_v57 = vmul.f32 %v482_v54, %v482_v54  ;;  %v1393_v58 = vpack.c.bf16 %v482_v54, %v480_v48  ;;  %v1433_v60 = vpack.c.bf16 %v1758_v55, %v1753_v49 }
  0xb9   :  { %v976_v61 = vadd.f32 %v975_v52, %v913_v57  ;;  %1545 = vst [vmem:[%s2157_s2 + $0x8] sm:$0xff] %v1393_v58  }
  0xba   :  { %1553 = vst [vmem:[%s2157_s2 + $0x48] sm:$0xff] %v1433_v60  }
  0xbd   :  { %v1800_v13 = vpop.f32.mrf.mxu2  ;;  %v1855_v36 = vpop.f32.mrf.mxu3 }
  0xbe   :  { %v485_v62 = vpop.f32.mrf.mxu0  ;;  %v1770_v63 = vpop.f32.mrf.mxu1  ;;  %v1473_v14 = vpack.c.bf16 %v1800_v13, %v1788_v9  ;;  %v1513_v39 = vpack.c.bf16 %v1855_v36, %v1841_v31 }
  0xbf   :  { %v1772_v0 = vadd.f32 %v840_v56, %v485_v62  ;;  %v914_v1 = vmul.f32 %v485_v62, %v485_v62 }
  0xc0   :  { %1561 = vst [vmem:[%s2157_s2 + $0x88] sm:$0xff] %v1473_v14  }
  0xc1   :  { %v1778_v4 = vadd.f32 %v976_v61, %v914_v1  ;;  %1569 = vst [vmem:[%s2157_s2 + $0xc8] sm:$0xff] %v1513_v39  }
  0xc5   :  { %v1809_v18 = vpop.f32.mrf.mxu2  ;;  %v1871_v45 = vpop.f32.mrf.mxu3 }
  0xc6   :  { %v487_v6 = vpop.f32.mrf.mxu0  ;;  %v1786_v7 = vpop.f32.mrf.mxu1 }
  0xc7   :  { %v1398_v8 = vpack.c.bf16 %v487_v6, %v485_v62  ;;  %v1438_v10 = vpack.c.bf16 %v1786_v7, %v1770_v63  ;;  %v915_v53 = vmul.f32 %v487_v6, %v487_v6  ;;  %v842_v56 = vadd.f32 %v1772_v0, %v487_v6 }
  0xc9   :  { %1546 = vst [vmem:[%s2157_s2 + $0x10] sm:$0xff] %v1398_v8   ;;  %v978_v58 = vadd.f32 %v1778_v4, %v915_v53 }
  0xca   :  { %1554 = vst [vmem:[%s2157_s2 + $0x50] sm:$0xff] %v1438_v10  }
  0xcd   :  { %v1823_v23 = vpop.f32.mrf.mxu2  ;;  %v1885_v51 = vpop.f32.mrf.mxu3 }
  0xce   :  { %v490_v11 = vpop.f32.mrf.mxu0  ;;  %v1798_v12 = vpop.f32.mrf.mxu1  ;;  %v1478_v25 = vpack.c.bf16 %v1823_v23, %v1809_v18  ;;  %v1518_v54 = vpack.c.bf16 %v1885_v51, %v1871_v45 }
  0xcf   :  { %v916_v57 = vmul.f32 %v490_v11, %v490_v11  ;;  %v843_v60 = vadd.f32 %v842_v56, %v490_v11 }
  0xd0   :  { %1562 = vst [vmem:[%s2157_s2 + $0x90] sm:$0xff] %v1478_v25  }
  0xd1   :  { %1570 = vst [vmem:[%s2157_s2 + $0xd0] sm:$0xff] %v1518_v54   ;;  %v979_v3 = vadd.f32 %v978_v58, %v916_v57 }
  0xd5   :  { %v1839_v30 = vpop.f32.mrf.mxu2 }
  0xd6   :  { %v492_v15 = vpop.f32.mrf.mxu0  ;;  %v1807_v16 = vpop.f32.mrf.mxu1 }
  0xd7   :  { %v1403_v17 = vpack.c.bf16 %v492_v15, %v490_v11  ;;  %v1443_v20 = vpack.c.bf16 %v1807_v16, %v1798_v12  ;;  %v917_v61 = vmul.f32 %v492_v15, %v492_v15  ;;  %v844_v5 = vadd.f32 %v843_v60, %v492_v15 }
  0xd9   :  { %1547 = vst [vmem:[%s2157_s2 + $0x18] sm:$0xff] %v1403_v17   ;;  %v1903_v17 = vpop.f32.mrf.mxu3  ;;  %v980_v6 = vadd.f32 %v979_v3, %v917_v61 }
  0xda   :  { %1555 = vst [vmem:[%s2157_s2 + $0x58] sm:$0xff] %v1443_v20  }
  0xdd   :  { %v1853_v35 = vpop.f32.mrf.mxu2 }
  0xde   :  { %v495_v21 = vpop.f32.mrf.mxu0  ;;  %v1821_v22 = vpop.f32.mrf.mxu1  ;;  %v1483_v38 = vpack.c.bf16 %v1853_v35, %v1839_v30 }
  0xdf   :  { %v918_v8 = vmul.f32 %v495_v21, %v495_v21  ;;  %v845_v20 = vadd.f32 %v844_v5, %v495_v21 }
  0xe0   :  { %1563 = vst [vmem:[%s2157_s2 + $0x98] sm:$0xff] %v1483_v38  }
  0xe1   :  { %v981_v4 = vadd.f32 %v980_v6, %v918_v8  ;;  %v1917_v53 = vpop.f32.mrf.mxu3 }
  0xe5   :  { %v1869_v44 = vpop.f32.mrf.mxu2 }
  0xe6   :  { %v497_v27 = vpop.f32.mrf.mxu0  ;;  %v1837_v28 = vpop.f32.mrf.mxu1 }
  0xe7   :  { %v1408_v29 = vpack.c.bf16 %v497_v27, %v495_v21  ;;  %v1448_v32 = vpack.c.bf16 %v1837_v28, %v1821_v22  ;;  %v919_v25 = vmul.f32 %v497_v27, %v497_v27  ;;  %v846_v11 = vadd.f32 %v845_v20, %v497_v27 }
  0xe9   :  { %1548 = vst [vmem:[%s2157_s2 + $0x20] sm:$0xff] %v1408_v29   ;;  %v982_v26 = vadd.f32 %v981_v4, %v919_v25  ;;  %v1933_v25 = vpop.f32.mrf.mxu3  ;;  %v926_v4 = vmul.f32 %v1735_v37, %v1735_v37 }
  0xea   :  { %1556 = vst [vmem:[%s2157_s2 + $0x60] sm:$0xff] %v1448_v32  }
  0xed   :  { %v1883_v50 = vpop.f32.mrf.mxu2 }
  0xee   :  { %v500_v33 = vpop.f32.mrf.mxu0  ;;  %v1851_v34 = vpop.f32.mrf.mxu1  ;;  %v1488_v52 = vpack.c.bf16 %v1883_v50, %v1869_v44 }
  0xef   :  { %v920_v15 = vmul.f32 %v500_v33, %v500_v33  ;;  %v847_v29 = vadd.f32 %v846_v11, %v500_v33 }
  0xf0   :  { %1564 = vst [vmem:[%s2157_s2 + $0xa0] sm:$0xff] %v1488_v52  }
  0xf5   :  { %v1901_v14 = vpop.f32.mrf.mxu2 }
  0xf6   :  { %v502_v40 = vpop.f32.mrf.mxu0  ;;  %v1867_v42 = vpop.f32.mrf.mxu1 }
  0xf7   :  { %v1413_v43 = vpack.c.bf16 %v502_v40, %v500_v33  ;;  %v1453_v46 = vpack.c.bf16 %v1867_v42, %v1851_v34  ;;  %v921_v32 = vmul.f32 %v502_v40, %v502_v40  ;;  %v848_v21 = vadd.f32 %v847_v29, %v502_v40 }
  0xf8   :  { %v1523_v33 = vpack.c.bf16 %v1917_v53, %v1903_v17 }
  0xf9   :  { %1549 = vst [vmem:[%s2157_s2 + $0x28] sm:$0xff] %v1413_v43   ;;  %v983_v43 = vadd.f32 %v982_v26, %v920_v15  ;;  %v927_v26 = vmul.f32 %v1743_v41, %v1743_v41 }
  0xfa   :  { %1557 = vst [vmem:[%s2157_s2 + $0x68] sm:$0xff] %v1453_v46  }
  0xfb   :  { %v984_v56 = vadd.f32 %v983_v43, %v921_v32  ;;  %1571 = vst [vmem:[%s2157_s2 + $0xd8] sm:$0xff] %v1523_v33  }
  0xfd   :  { %v1915_v52 = vpop.f32.mrf.mxu2 }
  0xfe   :  { %v505_v47 = vpop.f32.mrf.mxu0  ;;  %v1881_v48 = vpop.f32.mrf.mxu1  ;;  %v1493_v54 = vpack.c.bf16 %v1915_v52, %v1901_v14 }
  0xff   :  { %v922_v46 = vmul.f32 %v505_v47, %v505_v47  ;;  %v849_v57 = vadd.f32 %v848_v21, %v505_v47  ;;  %v929_v21 = vmul.f32 %v1758_v55, %v1758_v55 }
 0x100   :  { %1565 = vst [vmem:[%s2157_s2 + $0xa8] sm:$0xff] %v1493_v54  }
 0x101   :  { %v985_v58 = vadd.f32 %v984_v56, %v922_v46 }
 0x105   :  { %v1931_v20 = vpop.f32.mrf.mxu2 }
 0x106   :  { %v507_v62 = vpop.f32.mrf.mxu0  ;;  %v1899_v1 = vpop.f32.mrf.mxu1 }
 0x107   :  { %v1418_v10 = vpack.c.bf16 %v507_v62, %v505_v47  ;;  %v1458_v0 = vpack.c.bf16 %v1899_v1, %v1881_v48  ;;  %v923_v27 = vmul.f32 %v507_v62, %v507_v62  ;;  %v850_v40 = vadd.f32 %v849_v57, %v507_v62  ;;  %v1957_v57 = vpop.f32.mrf.mxu3 }
 0x109   :  { %1550 = vst [vmem:[%s2157_s2 + $0x30] sm:$0xff] %v1418_v10   ;;  %v986_v61 = vadd.f32 %v985_v58, %v923_v27  ;;  %v1528_v27 = vpack.c.bf16 %v1957_v57, %v1933_v25 }
 0x10a   :  { %1558 = vst [vmem:[%s2157_s2 + $0x70] sm:$0xff] %v1458_v0  }
 0x10b   :  { %1572 = vst [vmem:[%s2157_s2 + $0xe0] sm:$0xff] %v1528_v27   ;;  %v939_v27 = vmul.f32 %v1899_v1, %v1899_v1 }
 0x10d   :  { %v1955_v56 = vpop.f32.mrf.mxu2 }
 0x10e   :  { %v510_v38 = vpop.f32.mrf.mxu0  ;;  %v1913_v39 = vpop.f32.mrf.mxu1 }
 0x10f   :  { %v924_v60 = vmul.f32 %v510_v38, %v510_v38  ;;  %v851_v3 = vadd.f32 %v850_v40, %v510_v38 }
 0x111   :  { %v987_v47 = vadd.f32 %v986_v61, %v924_v60  ;;  %v932_v61 = vmul.f32 %v1798_v12, %v1798_v12 }
 0x116   :  { %v512_v5 = vpop.f32.mrf.mxu0  ;;  %v1929_v8 = vpop.f32.mrf.mxu1 }
 0x117   :  { %v852_v10 = vadd.f32 %v851_v3, %v512_v5  ;;  %v925_v0 = vmul.f32 %v512_v5, %v512_v5  ;;  %v1423_v6 = vpack.c.bf16 %v512_v5, %v510_v38  ;;  %v1463_v62 = vpack.c.bf16 %v1929_v8, %v1913_v39 }
 0x118   :  { %v928_v38 = vmul.f32 %v1753_v49, %v1753_v49  ;;  %v933_v5 = vmul.f32 %v1807_v16, %v1807_v16 }
 0x119   :  { %v853_v11 = vadd.f32 %v852_v10, %v1735_v37  ;;  %v988_v15 = vadd.f32 %v987_v47, %v925_v0  ;;  %1551 = vst [vmem:[%s2157_s2 + $0x38] sm:$0xff] %v1423_v6   ;;  %v1981_v0 = vpop.f32.mrf.mxu2  ;;  %v934_v6 = vmul.f32 %v1821_v22, %v1821_v22 }
 0x11a   :  { %1559 = vst [vmem:[%s2157_s2 + $0x78] sm:$0xff] %v1463_v62  }
 0x11b   :  { %v854_v29 = vadd.f32 %v853_v11, %v1743_v41  ;;  %v989_v32 = vadd.f32 %v988_v15, %v926_v4  ;;  %v1498_v41 = vpack.c.bf16 %v1955_v56, %v1931_v20  ;;  %v935_v11 = vmul.f32 %v1837_v28, %v1837_v28 }
 0x11d   :  { %v855_v37 = vadd.f32 %v854_v29, %v1753_v49  ;;  %v990_v43 = vadd.f32 %v989_v32, %v927_v26  ;;  %v930_v49 = vmul.f32 %v1770_v63, %v1770_v63  ;;  %1566 = vst [vmem:[%s2157_s2 + $0xb0] sm:$0xff] %v1498_v41   ;;  %v937_v32 = vmul.f32 %v1867_v42, %v1867_v42 }
 0x11f   :  { %v856_v46 = vadd.f32 %v855_v37, %v1758_v55  ;;  %v991_v54 = vadd.f32 %v990_v43, %v928_v38  ;;  %v931_v55 = vmul.f32 %v1786_v7, %v1786_v7 }
 0x121   :  { %v857_v33 = vadd.f32 %v856_v46, %v1770_v63  ;;  %v992_v58 = vadd.f32 %v991_v54, %v929_v21 }
 0x123   :  { %v858_v40 = vadd.f32 %v857_v33, %v1786_v7  ;;  %v993_v60 = vadd.f32 %v992_v58, %v930_v49  ;;  %v1983_v7 = vpop.f32.mrf.mxu3 }
 0x125   :  { %v994_v3 = vadd.f32 %v993_v60, %v931_v55  ;;  %v859_v63 = vadd.f32 %v858_v40, %v1798_v12  ;;  %v941_v40 = vmul.f32 %v1929_v8, %v1929_v8 }
 0x127   :  { %v860_v47 = vadd.f32 %v859_v63, %v1807_v16  ;;  %v995_v10 = vadd.f32 %v994_v3, %v932_v61  ;;  %v936_v16 = vmul.f32 %v1851_v34, %v1851_v34  ;;  %v943_v63 = vmul.f32 %v1774_v2, %v1774_v2 }
 0x129   :  { %v861_v62 = vadd.f32 %v860_v47, %v1821_v22  ;;  %v996_v4 = vadd.f32 %v995_v10, %v933_v5  ;;  %v1997_v22 = vpop.f32.mrf.mxu2  ;;  %v944_v47 = vmul.f32 %v1788_v9, %v1788_v9 }
 0x12b   :  { %v862_v12 = vadd.f32 %v861_v62, %v1837_v28  ;;  %v997_v15 = vadd.f32 %v996_v4, %v934_v6  ;;  %v1999_v43 = vpop.f32.mrf.mxu3  ;;  %v1503_v28 = vpack.c.bf16 %v1997_v22, %v1981_v0  ;;  %v945_v6 = vmul.f32 %v1800_v13, %v1800_v13 }
 0x12c   :  { %v1533_v21 = vpack.c.bf16 %v1999_v43, %v1983_v7 }
 0x12d   :  { %v863_v26 = vadd.f32 %v862_v12, %v1851_v34  ;;  %v998_v29 = vadd.f32 %v997_v15, %v935_v11  ;;  %v938_v34 = vmul.f32 %v1881_v48, %v1881_v48  ;;  %1567 = vst [vmem:[%s2157_s2 + $0xb8] sm:$0xff] %v1503_v28  }
 0x12e   :  { %1573 = vst [vmem:[%s2157_s2 + $0xe8] sm:$0xff] %v1533_v21   ;;  %v950_v21 = vmul.f32 %v1869_v44, %v1869_v44 }
 0x12f   :  { %v864_v38 = vadd.f32 %v863_v26, %v1867_v42  ;;  %v999_v37 = vadd.f32 %v998_v29, %v936_v16  ;;  %v948_v26 = vmul.f32 %v1839_v30, %v1839_v30 }
 0x131   :  { %v865_v46 = vadd.f32 %v864_v38, %v1881_v48  ;;  %v1000_v54 = vadd.f32 %v999_v37, %v937_v32  ;;  %v940_v48 = vmul.f32 %v1913_v39, %v1913_v39 }
 0x133   :  { %v1001_v42 = vadd.f32 %v1000_v54, %v938_v34  ;;  %v866_v41 = vadd.f32 %v865_v46, %v1899_v1  ;;  %v2023_v60 = vpop.f32.mrf.mxu3  ;;  %v942_v1 = vmul.f32 %v1760_v59, %v1760_v59  ;;  %v951_v34 = vmul.f32 %v1883_v50, %v1883_v50 }
 0x135   :  { %v1002_v49 = vadd.f32 %v1001_v42, %v939_v27  ;;  %v867_v33 = vadd.f32 %v866_v41, %v1913_v39  ;;  %v952_v42 = vmul.f32 %v1901_v14, %v1901_v14 }
 0x137   :  { %v1003_v58 = vadd.f32 %v1002_v49, %v940_v48  ;;  %v868_v55 = vadd.f32 %v867_v33, %v1929_v8  ;;  %v953_v49 = vmul.f32 %v1915_v52, %v1915_v52 }
 0x139   :  { %v869_v61 = vadd.f32 %v868_v55, %v1760_v59  ;;  %v1004_v3 = vadd.f32 %v1003_v58, %v941_v40  ;;  %v954_v55 = vmul.f32 %v1931_v20, %v1931_v20 }
 0x13b   :  { %v870_v5 = vadd.f32 %v869_v61, %v1774_v2  ;;  %v1005_v39 = vadd.f32 %v1004_v3, %v942_v1  ;;  %v2037_v59 = vpop.f32.mrf.mxu3  ;;  %v946_v2 = vmul.f32 %v1809_v18, %v1809_v18  ;;  %v956_v3 = vmul.f32 %v1981_v0, %v1981_v0 }
 0x13c   :  { %v1538_v11 = vpack.c.bf16 %v2037_v59, %v2023_v60 }
 0x13d   :  { %v871_v10 = vadd.f32 %v870_v5, %v1788_v9  ;;  %v1006_v8 = vadd.f32 %v1005_v39, %v943_v63  ;;  %v947_v9 = vmul.f32 %v1823_v23, %v1823_v23  ;;  %v1601_v39 = vmov 0.0  }
 0x13e   :  { %1574 = vst [vmem:[%s2157_s2 + $0xf0] sm:$0xff] %v1538_v11  }
 0x13f   :  { %v872_v62 = vadd.f32 %v871_v10, %v1800_v13  ;;  %v1007_v4 = vadd.f32 %v1006_v8, %v944_v47  ;;  %768 = vst [vmem:[%s2158_s3] sm:$0x1] %v1601_v39 }
 0x140   :  { %769 = vst [vmem:[%s2159_s4] sm:$0x1] %v1601_v39 }
 0x141   :  { %v873_v12 = vadd.f32 %v872_v62, %v1809_v18  ;;  %v1008_v15 = vadd.f32 %v1007_v4, %v945_v6  ;;  %v949_v18 = vmul.f32 %v1853_v35, %v1853_v35  ;;  %v960_v6 = vmul.f32 %v1841_v31, %v1841_v31 }
 0x143   :  { %v874_v13 = vadd.f32 %v873_v12, %v1823_v23  ;;  %v1009_v16 = vadd.f32 %v1008_v15, %v946_v2  ;;  %v2056_v28 = vpop.f32.mrf.mxu3  ;;  %v962_v12 = vmul.f32 %v1871_v45, %v1871_v45 }
 0x145   :  { %v1010_v29 = vadd.f32 %v1009_v16, %v947_v9  ;;  %v875_v32 = vadd.f32 %v874_v13, %v1839_v30 }
 0x147   :  { %v876_v38 = vadd.f32 %v875_v32, %v1853_v35  ;;  %v1011_v37 = vadd.f32 %v1010_v29, %v948_v26 }
 0x149   :  { %v877_v23 = vadd.f32 %v876_v38, %v1869_v44  ;;  %v1012_v46 = vadd.f32 %v1011_v37, %v949_v18 }
 0x14b   :  { %v878_v54 = vadd.f32 %v877_v23, %v1883_v50  ;;  %v1013_v30 = vadd.f32 %v1012_v46, %v950_v21  ;;  %v2070_v44 = vpop.f32.mrf.mxu3 }
 0x14c   :  { %v1543_v48 = vpack.c.bf16 %v2070_v44, %v2056_v28 }
 0x14d   :  { %v879_v35 = vadd.f32 %v878_v54, %v1901_v14  ;;  %v1014_v41 = vadd.f32 %v1013_v30, %v951_v34  ;;  %v969_v54 = vmul.f32 %v1999_v43, %v1999_v43 }
 0x14e   :  { %1575 = vst [vmem:[%s2157_s2 + $0xf8] sm:$0xff] %v1543_v48  }
 0x14f   :  { %v880_v27 = vadd.f32 %v879_v35, %v1915_v52  ;;  %v1015_v33 = vadd.f32 %v1014_v41, %v952_v42  ;;  %v955_v52 = vmul.f32 %v1955_v56, %v1955_v56  ;;  %v970_v35 = vmul.f32 %v2023_v60, %v2023_v60 }
 0x151   :  { %v1016_v58 = vadd.f32 %v1015_v33, %v953_v49  ;;  %v881_v50 = vadd.f32 %v880_v27, %v1931_v20  ;;  %v957_v20 = vmul.f32 %v1997_v22, %v1997_v22  ;;  %v971_v27 = vmul.f32 %v2037_v59, %v2037_v59 }
 0x152   :  { %v972_v33 = vmul.f32 %v2056_v28, %v2056_v28 }
 0x153   :  { %v1017_v14 = vadd.f32 %v1016_v58, %v954_v55  ;;  %v882_v40 = vadd.f32 %v881_v50, %v1955_v56  ;;  %v958_v56 = vmul.f32 %v1811_v19, %v1811_v19  ;;  %v973_v58 = vmul.f32 %v2070_v44, %v2070_v44 }
 0x155   :  { %v1018_v1 = vadd.f32 %v1017_v14, %v955_v52  ;;  %v883_v61 = vadd.f32 %v882_v40, %v1981_v0  ;;  %v959_v0 = vmul.f32 %v1825_v24, %v1825_v24 }
 0x157   :  { %v1019_v63 = vadd.f32 %v1018_v1, %v956_v3  ;;  %v884_v5 = vadd.f32 %v883_v61, %v1997_v22 }
 0x159   :  { %v885_v47 = vadd.f32 %v884_v5, %v1811_v19  ;;  %v1020_v10 = vadd.f32 %v1019_v63, %v957_v20  ;;  %v961_v19 = vmul.f32 %v1855_v36, %v1855_v36 }
 0x15b   :  { %v886_v22 = vadd.f32 %v885_v47, %v1825_v24  ;;  %v1021_v8 = vadd.f32 %v1020_v10, %v958_v56  ;;  %v963_v24 = vmul.f32 %v1885_v51, %v1885_v51 }
 0x15d   :  { %v887_v62 = vadd.f32 %v886_v22, %v1841_v31  ;;  %v1022_v4 = vadd.f32 %v1021_v8, %v959_v0  ;;  %v964_v31 = vmul.f32 %v1903_v17, %v1903_v17 }
 0x15f   :  { %v888_v11 = vadd.f32 %v887_v62, %v1855_v36  ;;  %v1023_v2 = vadd.f32 %v1022_v4, %v960_v6  ;;  %v965_v36 = vmul.f32 %v1917_v53, %v1917_v53 }
 0x161   :  { %v889_v15 = vadd.f32 %v888_v11, %v1871_v45  ;;  %v1024_v9 = vadd.f32 %v1023_v2, %v961_v19  ;;  %v966_v45 = vmul.f32 %v1933_v25, %v1933_v25 }
 0x163   :  { %v890_v13 = vadd.f32 %v889_v15, %v1885_v51  ;;  %v1025_v16 = vadd.f32 %v1024_v9, %v962_v12  ;;  %v967_v51 = vmul.f32 %v1957_v57, %v1957_v57 }
 0x165   :  { %v1026_v26 = vadd.f32 %v1025_v16, %v963_v24  ;;  %v891_v29 = vadd.f32 %v890_v13, %v1903_v17  ;;  %v968_v17 = vmul.f32 %v1983_v7, %v1983_v7 }
 0x167   :  { %v892_v32 = vadd.f32 %v891_v29, %v1917_v53  ;;  %v1027_v18 = vadd.f32 %v1026_v26, %v964_v31 }
 0x169   :  { %v893_v38 = vadd.f32 %v892_v32, %v1933_v25  ;;  %v1028_v37 = vadd.f32 %v1027_v18, %v965_v36 }
 0x16b   :  { %v894_v21 = vadd.f32 %v893_v38, %v1957_v57  ;;  %v1029_v23 = vadd.f32 %v1028_v37, %v966_v45 }
 0x16d   :  { %v895_v46 = vadd.f32 %v894_v21, %v1983_v7  ;;  %v1030_v34 = vadd.f32 %v1029_v23, %v967_v51 }
 0x16f   :  { %v896_v53 = vadd.f32 %v895_v46, %v1999_v43  ;;  %v1031_v30 = vadd.f32 %v1030_v34, %v968_v17 }
 0x171   :  { %v1032_v25 = vadd.f32 %v1031_v30, %v969_v54  ;;  %v897_v42 = vadd.f32 %v896_v53, %v2023_v60 }
 0x173   :  { %v1033_v57 = vadd.f32 %v1032_v25, %v970_v35  ;;  %v898_v41 = vadd.f32 %v897_v42, %v2037_v59 }
 0x175   :  { %v1034_v7 = vadd.f32 %v1033_v57, %v971_v27  ;;  %v899_v49 = vadd.f32 %v898_v41, %v2056_v28  ;;  %v837_v28 = vld [vmem:[%s2158_s3] sm:$0x1] }
 0x177   :  { %v1035_v43 = vadd.f32 %v1034_v7, %v972_v33  ;;  %v900_v48 = vadd.f32 %v899_v49, %v2070_v44  ;;  %v909_v44 = vld [vmem:[%s2159_s4] sm:$0x1] }
 0x179   :  { %v901_v50 = vrot.slane %v900_v48, 4  ;;  %v1036_v60 = vadd.f32 %v1035_v43, %v973_v58 }
 0x17b   :  { %v902_v55 = vadd.f32 %v901_v50, %v900_v48  ;;  %v1037_v14 = vrot.slane %v1036_v60, 4 }
 0x17d   :  { %v903_v40 = vrot.slane %v902_v55, 2  ;;  %v1038_v52 = vadd.f32 %v1037_v14, %v1036_v60 }
 0x17f   :  { %v904_v1 = vadd.f32 %v903_v40, %v902_v55  ;;  %v1039_v59 = vrot.slane %v1038_v52, 2 }
 0x181   :  { %v905_v61 = vrot.slane %v904_v1, 1  ;;  %v1040_v3 = vadd.f32 %v1039_v59, %v1038_v52 }
 0x183   :  { %v906_v63 = vadd.f32 %v905_v61, %v904_v1  ;;  %v1041_v5 = vrot.slane %v1040_v3, 1 }
 0x185   :  { %v907_v20 = vadd.f32 %v906_v63, %v837_v28  ;;  %v1042_v39 = vadd.f32 %v1041_v5, %v1040_v3 }
 0x187   :  { %908 = vst [vmem:[%s2158_s3] sm:$0x1] %v907_v20  ;;  %v1043_v56 = vadd.f32 %v1042_v39, %v909_v44 }
 0x189   :  { %1044 = vst [vmem:[%s2159_s4] sm:$0x1] %v1043_v56 }

// kernel: _lambda_.10
= control target key start
LH: loop header
LB: loop body
LE: loop exit
PB: predicated region body
PF: predicated region fallthrough
CT: control target
= control target key end

     0   :  { %s1304_s0 = inlined_call_operand.vmem [shape: bf16[512,128], index: 0, kind: input, shape index: {}]   ;;  %s1305_s1 = inlined_call_operand.vmem [shape: f32[1,128], index: 1, kind: input, shape index: {}]   ;;  %s1306_s2 = inlined_call_operand.vmem [shape: f32[1,128], index: 2, kind: input, shape index: {}]   ;;  %s1307_s3 = inlined_call_operand.vmem [shape: bf16[512,128], index: 3, kind: output, shape index: {}]  }
   0x1   :  { %v603_v0 = vld [vmem:[%s1304_s0] sm:$0xff]   ;;  %v890_v5 = vld [vmem:[%s1304_s0 + $0x8] sm:$0xff]   ;;  %v891_v8 = vld [vmem:[%s1304_s0 + $0x10] sm:$0xff]  }
   0x2   :  { %v980_v1 = vld [vmem:[%s1305_s1] ss:$0 sm:$0xff]  ;;  %v604_v2 = vunpack.c.l.bf16 %v603_v0  ;;  %v605_v3 = vunpack.c.h.bf16 %v603_v0  ;;  %v608_v6 = vunpack.c.l.bf16 %v890_v5  ;;  %v609_v7 = vunpack.c.h.bf16 %v890_v5  ;;  %v892_v9 = vld [vmem:[%s1304_s0 + $0x18] sm:$0xff]   ;;  %v894_v39 = vld [vmem:[%s1304_s0 + $0x28] sm:$0xff]  }
   0x3   :  { %v985_v4 = vld [vmem:[%s1306_s2] ss:$0 sm:$0xff]  ;;  %v612_v12 = vunpack.c.l.bf16 %v891_v8  ;;  %v613_v13 = vunpack.c.h.bf16 %v891_v8  ;;  %v616_v16 = vunpack.c.l.bf16 %v892_v9  ;;  %v617_v17 = vunpack.c.h.bf16 %v892_v9  ;;  %v895_v49 = vld [vmem:[%s1304_s0 + $0x30] sm:$0xff]   ;;  %v896_v57 = vld [vmem:[%s1304_s0 + $0x38] sm:$0xff]  }
   0x4   :  { %v146_v10 = vmul.f32 %v980_v1, %v604_v2  ;;  %v147_v11 = vmul.f32 %v980_v1, %v605_v3  ;;  %v148_v14 = vmul.f32 %v980_v1, %v608_v6  ;;  %v149_v15 = vmul.f32 %v980_v1, %v609_v7  ;;  %v893_v38 = vld [vmem:[%s1304_s0 + $0x20] sm:$0xff]  }
   0x5   :  { %v150_v20 = vmul.f32 %v980_v1, %v612_v12  ;;  %v151_v21 = vmul.f32 %v980_v1, %v613_v13  ;;  %v152_v24 = vmul.f32 %v980_v1, %v616_v16  ;;  %v153_v25 = vmul.f32 %v980_v1, %v617_v17 }
   0x6   :  { %v214_v18 = vadd.f32 %v985_v4, %v146_v10  ;;  %v215_v19 = vadd.f32 %v985_v4, %v147_v11  ;;  %v216_v22 = vadd.f32 %v985_v4, %v148_v14  ;;  %v217_v23 = vadd.f32 %v985_v4, %v149_v15 }
   0x7   :  { %v218_v32 = vadd.f32 %v985_v4, %v150_v20  ;;  %v219_v33 = vadd.f32 %v985_v4, %v151_v21  ;;  %v220_v37 = vadd.f32 %v985_v4, %v152_v24  ;;  %v221_v43 = vadd.f32 %v985_v4, %v153_v25  ;;  %v898_v20 = vld [vmem:[%s1304_s0 + $0x48] sm:$0xff]  }
   0x8   :  { %vm278_vm0 = vcmp.ge.f32.partialorder %v214_v18, 0.0  ;;  %vm279_vm1 = vcmp.ge.f32.partialorder %v215_v19, 0.0  ;;  %v342_v26 = vmul.f32 0.2, %v214_v18  ;;  %v343_v27 = vmul.f32 0.2, %v215_v19 }
   0x9   :  { %vm280_vm2 = vcmp.ge.f32.partialorder %v216_v22, 0.0  ;;  %vm281_vm3 = vcmp.ge.f32.partialorder %v217_v23, 0.0  ;;  %v344_v28 = vmul.f32 0.2, %v216_v22  ;;  %v345_v29 = vmul.f32 0.2, %v217_v23 }
   0xa   :  { %v406_v30 = vsel %vm278_vm0, %v214_v18, %v342_v26  ;;  %v407_v31 = vsel %vm279_vm1, %v215_v19, %v343_v27  ;;  %vm282_vm4 = vcmp.ge.f32.partialorder %v218_v32, 0.0  ;;  %vm283_vm5 = vcmp.ge.f32.partialorder %v219_v33, 0.0  ;;  %v897_v19 = vld [vmem:[%s1304_s0 + $0x40] sm:$0xff]  }
   0xb   :  { %v733_v34 = vpack.c.bf16 %v407_v31, %v406_v30  ;;  %v408_v35 = vsel %vm280_vm2, %v216_v22, %v344_v28  ;;  %v409_v36 = vsel %vm281_vm3, %v217_v23, %v345_v29  ;;  %v346_v41 = vmul.f32 0.2, %v218_v32  ;;  %v899_v28 = vld [vmem:[%s1304_s0 + $0x50] sm:$0xff]  }
   0xc   :  { %v738_v40 = vpack.c.bf16 %v409_v36, %v408_v35  ;;  %v347_v42 = vmul.f32 0.2, %v219_v33  ;;  %vm284_vm6 = vcmp.ge.f32.partialorder %v220_v37, 0.0  ;;  %v348_v44 = vmul.f32 0.2, %v220_v37 }
   0xd   :  { %734 = vst [vmem:[%s1307_s3] sm:$0xff] %v733_v34   ;;  %v410_v45 = vsel %vm282_vm4, %v218_v32, %v346_v41  ;;  %v620_v46 = vunpack.c.l.bf16 %v893_v38  ;;  %v621_v47 = vunpack.c.h.bf16 %v893_v38  ;;  %v624_v48 = vunpack.c.l.bf16 %v894_v39 }
   0xe   :  { %921 = vst [vmem:[%s1307_s3 + $0x8] sm:$0xff] %v738_v40   ;;  %v411_v50 = vsel %vm283_vm5, %v219_v33, %v347_v42  ;;  %vm285_vm7 = vcmp.ge.f32.partialorder %v221_v43, 0.0  ;;  %v349_v51 = vmul.f32 0.2, %v221_v43  ;;  %v412_v52 = vsel %vm284_vm6, %v220_v37, %v348_v44 }
   0xf   :  { %v743_v53 = vpack.c.bf16 %v411_v50, %v410_v45  ;;  %v154_v54 = vmul.f32 %v980_v1, %v620_v46  ;;  %v155_v55 = vmul.f32 %v980_v1, %v621_v47  ;;  %v625_v56 = vunpack.c.h.bf16 %v894_v39 }
  0x10   :  { %v413_v58 = vsel %vm285_vm7, %v221_v43, %v349_v51  ;;  %v156_v59 = vmul.f32 %v980_v1, %v624_v48  ;;  %v628_v60 = vunpack.c.l.bf16 %v895_v49  ;;  %v629_v61 = vunpack.c.h.bf16 %v895_v49 }
  0x11   :  { %922 = vst [vmem:[%s1307_s3 + $0x10] sm:$0xff] %v743_v53   ;;  %v748_v62 = vpack.c.bf16 %v413_v58, %v412_v52  ;;  %v222_v63 = vadd.f32 %v985_v4, %v154_v54  ;;  %v223_v0 = vadd.f32 %v985_v4, %v155_v55  ;;  %v157_v2 = vmul.f32 %v980_v1, %v625_v56  ;;  %v900_v55 = vld [vmem:[%s1304_s0 + $0x58] sm:$0xff]   ;;  %v901_v56 = vld [vmem:[%s1304_s0 + $0x60] sm:$0xff]  }
  0x12   :  { %v224_v3 = vadd.f32 %v985_v4, %v156_v59  ;;  %v158_v5 = vmul.f32 %v980_v1, %v628_v60  ;;  %v159_v6 = vmul.f32 %v980_v1, %v629_v61  ;;  %v632_v7 = vunpack.c.l.bf16 %v896_v57 }
  0x13   :  { %923 = vst [vmem:[%s1307_s3 + $0x18] sm:$0xff] %v748_v62   ;;  %vm286_vm8 = vcmp.ge.f32.partialorder %v222_v63, 0.0  ;;  %vm287_vm9 = vcmp.ge.f32.partialorder %v223_v0, 0.0  ;;  %v350_v8 = vmul.f32 0.2, %v222_v63  ;;  %v225_v9 = vadd.f32 %v985_v4, %v157_v2  ;;  %v902_v2 = vld [vmem:[%s1304_s0 + $0x68] sm:$0xff]  }
  0x14   :  { %v351_v10 = vmul.f32 0.2, %v223_v0  ;;  %vm288_vm10 = vcmp.ge.f32.partialorder %v224_v3, 0.0  ;;  %v352_v11 = vmul.f32 0.2, %v224_v3  ;;  %v226_v12 = vadd.f32 %v985_v4, %v158_v5 }
  0x15   :  { %v414_v13 = vsel %vm286_vm8, %v222_v63, %v350_v8  ;;  %vm289_vm11 = vcmp.ge.f32.partialorder %v225_v9, 0.0  ;;  %v353_v14 = vmul.f32 0.2, %v225_v9  ;;  %v227_v15 = vadd.f32 %v985_v4, %v159_v6 }
  0x16   :  { %v415_v16 = vsel %vm287_vm9, %v223_v0, %v351_v10  ;;  %v416_v17 = vsel %vm288_vm10, %v224_v3, %v352_v11  ;;  %vm290_vm12 = vcmp.ge.f32.partialorder %v226_v12, 0.0  ;;  %v354_v18 = vmul.f32 0.2, %v226_v12 }
  0x17   :  { %v753_v21 = vpack.c.bf16 %v415_v16, %v414_v13  ;;  %v417_v22 = vsel %vm289_vm11, %v225_v9, %v353_v14  ;;  %vm291_vm13 = vcmp.ge.f32.partialorder %v227_v15, 0.0  ;;  %v355_v23 = vmul.f32 0.2, %v227_v15 }
  0x18   :  { %v758_v24 = vpack.c.bf16 %v417_v22, %v416_v17  ;;  %v418_v25 = vsel %vm290_vm12, %v226_v12, %v354_v18  ;;  %v633_v26 = vunpack.c.h.bf16 %v896_v57  ;;  %v160_v27 = vmul.f32 %v980_v1, %v632_v7 }
  0x19   :  { %924 = vst [vmem:[%s1307_s3 + $0x20] sm:$0xff] %v753_v21   ;;  %v419_v29 = vsel %vm291_vm13, %v227_v15, %v355_v23  ;;  %v636_v30 = vunpack.c.l.bf16 %v897_v19  ;;  %v637_v31 = vunpack.c.h.bf16 %v897_v19  ;;  %v640_v32 = vunpack.c.l.bf16 %v898_v20 }
  0x1a   :  { %925 = vst [vmem:[%s1307_s3 + $0x28] sm:$0xff] %v758_v24   ;;  %v763_v33 = vpack.c.bf16 %v419_v29, %v418_v25  ;;  %v161_v34 = vmul.f32 %v980_v1, %v633_v26  ;;  %v228_v35 = vadd.f32 %v985_v4, %v160_v27  ;;  %v641_v36 = vunpack.c.h.bf16 %v898_v20 }
  0x1b   :  { %v162_v37 = vmul.f32 %v980_v1, %v636_v30  ;;  %v163_v38 = vmul.f32 %v980_v1, %v637_v31  ;;  %v164_v39 = vmul.f32 %v980_v1, %v640_v32  ;;  %v644_v40 = vunpack.c.l.bf16 %v899_v28 }
  0x1c   :  { %926 = vst [vmem:[%s1307_s3 + $0x30] sm:$0xff] %v763_v33   ;;  %v229_v41 = vadd.f32 %v985_v4, %v161_v34  ;;  %vm292_vm14 = vcmp.ge.f32.partialorder %v228_v35, 0.0  ;;  %v356_v42 = vmul.f32 0.2, %v228_v35  ;;  %v165_v43 = vmul.f32 %v980_v1, %v641_v36 }
  0x1d   :  { %v230_v44 = vadd.f32 %v985_v4, %v162_v37  ;;  %v231_v45 = vadd.f32 %v985_v4, %v163_v38  ;;  %v232_v46 = vadd.f32 %v985_v4, %v164_v39  ;;  %v645_v47 = vunpack.c.h.bf16 %v899_v28  ;;  %v903_v28 = vld [vmem:[%s1304_s0 + $0x70] sm:$0xff]   ;;  %v904_v39 = vld [vmem:[%s1304_s0 + $0x78] sm:$0xff]  }
  0x1e   :  { %vm293_vm15 = vcmp.ge.f32.partialorder %v229_v41, 0.0  ;;  %v357_v48 = vmul.f32 0.2, %v229_v41  ;;  %v420_v49 = vsel %vm292_vm14, %v228_v35, %v356_v42  ;;  %v233_v50 = vadd.f32 %v985_v4, %v165_v43 }
  0x1f   :  { %vm294_vm0 = vcmp.ge.f32.partialorder %v230_v44, 0.0  ;;  %vm295_vm1 = vcmp.ge.f32.partialorder %v231_v45, 0.0  ;;  %v358_v51 = vmul.f32 0.2, %v230_v44  ;;  %v359_v52 = vmul.f32 0.2, %v231_v45 }
  0x20   :  { %v421_v53 = vsel %vm293_vm15, %v229_v41, %v357_v48  ;;  %vm296_vm2 = vcmp.ge.f32.partialorder %v232_v46, 0.0  ;;  %vm297_vm3 = vcmp.ge.f32.partialorder %v233_v50, 0.0  ;;  %v360_v54 = vmul.f32 0.2, %v232_v46 }
  0x21   :  { %v768_v57 = vpack.c.bf16 %v421_v53, %v420_v49  ;;  %v422_v58 = vsel %vm294_vm0, %v230_v44, %v358_v51  ;;  %v423_v59 = vsel %vm295_vm1, %v231_v45, %v359_v52  ;;  %v361_v60 = vmul.f32 0.2, %v233_v50  ;;  %v905_v44 = vld [vmem:[%s1304_s0 + $0x80] sm:$0xff]  }
  0x22   :  { %v773_v61 = vpack.c.bf16 %v423_v59, %v422_v58  ;;  %v424_v62 = vsel %vm296_vm2, %v232_v46, %v360_v54  ;;  %v166_v63 = vmul.f32 %v980_v1, %v644_v40  ;;  %v167_v0 = vmul.f32 %v980_v1, %v645_v47  ;;  %v906_v59 = vld [vmem:[%s1304_s0 + $0x88] sm:$0xff]  }
  0x23   :  { %927 = vst [vmem:[%s1307_s3 + $0x38] sm:$0xff] %v768_v57   ;;  %v425_v3 = vsel %vm297_vm3, %v233_v50, %v361_v60  ;;  %v648_v5 = vunpack.c.l.bf16 %v900_v55  ;;  %v649_v6 = vunpack.c.h.bf16 %v900_v55  ;;  %v652_v7 = vunpack.c.l.bf16 %v901_v56 }
  0x24   :  { %928 = vst [vmem:[%s1307_s3 + $0x40] sm:$0xff] %v773_v61   ;;  %v778_v8 = vpack.c.bf16 %v425_v3, %v424_v62  ;;  %v234_v9 = vadd.f32 %v985_v4, %v166_v63  ;;  %v235_v10 = vadd.f32 %v985_v4, %v167_v0  ;;  %v653_v11 = vunpack.c.h.bf16 %v901_v56 }
  0x25   :  { %v168_v12 = vmul.f32 %v980_v1, %v648_v5  ;;  %v169_v13 = vmul.f32 %v980_v1, %v649_v6  ;;  %v170_v14 = vmul.f32 %v980_v1, %v652_v7  ;;  %v656_v15 = vunpack.c.l.bf16 %v902_v2 }
  0x26   :  { %929 = vst [vmem:[%s1307_s3 + $0x48] sm:$0xff] %v778_v8   ;;  %vm298_vm4 = vcmp.ge.f32.partialorder %v234_v9, 0.0  ;;  %vm299_vm5 = vcmp.ge.f32.partialorder %v235_v10, 0.0  ;;  %v362_v16 = vmul.f32 0.2, %v234_v9  ;;  %v171_v17 = vmul.f32 %v980_v1, %v653_v11 }
  0x27   :  { %v363_v18 = vmul.f32 0.2, %v235_v10  ;;  %v236_v19 = vadd.f32 %v985_v4, %v168_v12  ;;  %v237_v20 = vadd.f32 %v985_v4, %v169_v13  ;;  %v238_v21 = vadd.f32 %v985_v4, %v170_v14  ;;  %v907_v14 = vld [vmem:[%s1304_s0 + $0x90] sm:$0xff]  }
  0x28   :  { %v426_v22 = vsel %vm298_vm4, %v234_v9, %v362_v16  ;;  %v239_v23 = vadd.f32 %v985_v4, %v171_v17  ;;  %v657_v24 = vunpack.c.h.bf16 %v902_v2  ;;  %v172_v25 = vmul.f32 %v980_v1, %v656_v15 }
  0x29   :  { %v427_v26 = vsel %vm299_vm5, %v235_v10, %v363_v18  ;;  %vm300_vm6 = vcmp.ge.f32.partialorder %v236_v19, 0.0  ;;  %vm301_vm7 = vcmp.ge.f32.partialorder %v237_v20, 0.0  ;;  %v364_v27 = vmul.f32 0.2, %v236_v19  ;;  %v908_v18 = vld [vmem:[%s1304_s0 + $0x98] sm:$0xff]  }
  0x2a   :  { %v783_v29 = vpack.c.bf16 %v427_v26, %v426_v22  ;;  %v365_v30 = vmul.f32 0.2, %v237_v20  ;;  %vm302_vm8 = vcmp.ge.f32.partialorder %v238_v21, 0.0  ;;  %vm303_vm9 = vcmp.ge.f32.partialorder %v239_v23, 0.0 }
  0x2b   :  { %v428_v31 = vsel %vm300_vm6, %v236_v19, %v364_v27  ;;  %v366_v32 = vmul.f32 0.2, %v238_v21  ;;  %v367_v33 = vmul.f32 0.2, %v239_v23  ;;  %v173_v34 = vmul.f32 %v980_v1, %v657_v24 }
  0x2c   :  { %930 = vst [vmem:[%s1307_s3 + $0x50] sm:$0xff] %v783_v29   ;;  %v429_v35 = vsel %vm301_vm7, %v237_v20, %v365_v30  ;;  %v240_v36 = vadd.f32 %v985_v4, %v172_v25  ;;  %v660_v37 = vunpack.c.l.bf16 %v903_v28  ;;  %v661_v38 = vunpack.c.h.bf16 %v903_v28 }
  0x2d   :  { %v788_v40 = vpack.c.bf16 %v429_v35, %v428_v31  ;;  %v430_v41 = vsel %vm302_vm8, %v238_v21, %v366_v32  ;;  %v431_v42 = vsel %vm303_vm9, %v239_v23, %v367_v33  ;;  %v241_v43 = vadd.f32 %v985_v4, %v173_v34  ;;  %v909_v34 = vld [vmem:[%s1304_s0 + $0xa0] sm:$0xff]  }
  0x2e   :  { %v793_v45 = vpack.c.bf16 %v431_v42, %v430_v41  ;;  %vm304_vm10 = vcmp.ge.f32.partialorder %v240_v36, 0.0  ;;  %v368_v46 = vmul.f32 0.2, %v240_v36  ;;  %v174_v47 = vmul.f32 %v980_v1, %v660_v37 }
  0x2f   :  { %931 = vst [vmem:[%s1307_s3 + $0x58] sm:$0xff] %v788_v40   ;;  %vm305_vm11 = vcmp.ge.f32.partialorder %v241_v43, 0.0  ;;  %v369_v48 = vmul.f32 0.2, %v241_v43  ;;  %v175_v49 = vmul.f32 %v980_v1, %v661_v38  ;;  %v664_v50 = vunpack.c.l.bf16 %v904_v39 }
  0x30   :  { %932 = vst [vmem:[%s1307_s3 + $0x60] sm:$0xff] %v793_v45   ;;  %v432_v51 = vsel %vm304_vm10, %v240_v36, %v368_v46  ;;  %v242_v52 = vadd.f32 %v985_v4, %v174_v47  ;;  %v665_v53 = vunpack.c.h.bf16 %v904_v39  ;;  %v668_v54 = vunpack.c.l.bf16 %v905_v44 }
  0x31   :  { %v433_v55 = vsel %vm305_vm11, %v241_v43, %v369_v48  ;;  %v243_v56 = vadd.f32 %v985_v4, %v175_v49  ;;  %v176_v57 = vmul.f32 %v980_v1, %v664_v50  ;;  %v669_v58 = vunpack.c.h.bf16 %v905_v44  ;;  %v910_v48 = vld [vmem:[%s1304_s0 + $0xa8] sm:$0xff]  }
  0x32   :  { %v798_v60 = vpack.c.bf16 %v433_v55, %v432_v51  ;;  %vm306_vm12 = vcmp.ge.f32.partialorder %v242_v52, 0.0  ;;  %v370_v61 = vmul.f32 0.2, %v242_v52  ;;  %v177_v62 = vmul.f32 %v980_v1, %v665_v53 }
  0x33   :  { %vm307_vm13 = vcmp.ge.f32.partialorder %v243_v56, 0.0  ;;  %v371_v63 = vmul.f32 0.2, %v243_v56  ;;  %v244_v0 = vadd.f32 %v985_v4, %v176_v57  ;;  %v178_v2 = vmul.f32 %v980_v1, %v668_v54 }
  0x34   :  { %933 = vst [vmem:[%s1307_s3 + $0x68] sm:$0xff] %v798_v60   ;;  %v434_v3 = vsel %vm306_vm12, %v242_v52, %v370_v61  ;;  %v245_v5 = vadd.f32 %v985_v4, %v177_v62  ;;  %v179_v6 = vmul.f32 %v980_v1, %v669_v58  ;;  %v672_v7 = vunpack.c.l.bf16 %v906_v59  ;;  %v911_v58 = vld [vmem:[%s1304_s0 + $0xb0] sm:$0xff]  }
  0x35   :  { %v435_v8 = vsel %vm307_vm13, %v243_v56, %v371_v63  ;;  %vm308_vm14 = vcmp.ge.f32.partialorder %v244_v0, 0.0  ;;  %v372_v9 = vmul.f32 0.2, %v244_v0  ;;  %v246_v10 = vadd.f32 %v985_v4, %v178_v2 }
  0x36   :  { %v803_v11 = vpack.c.bf16 %v435_v8, %v434_v3  ;;  %vm309_vm15 = vcmp.ge.f32.partialorder %v245_v5, 0.0  ;;  %v373_v12 = vmul.f32 0.2, %v245_v5  ;;  %v247_v13 = vadd.f32 %v985_v4, %v179_v6 }
  0x37   :  { %v436_v15 = vsel %vm308_vm14, %v244_v0, %v372_v9  ;;  %vm310_vm0 = vcmp.ge.f32.partialorder %v246_v10, 0.0  ;;  %v374_v16 = vmul.f32 0.2, %v246_v10  ;;  %v673_v17 = vunpack.c.h.bf16 %v906_v59  ;;  %v912_v59 = vld [vmem:[%s1304_s0 + $0xb8] sm:$0xff]  }
  0x38   :  { %934 = vst [vmem:[%s1307_s3 + $0x70] sm:$0xff] %v803_v11   ;;  %v437_v19 = vsel %vm309_vm15, %v245_v5, %v373_v12  ;;  %vm311_vm1 = vcmp.ge.f32.partialorder %v247_v13, 0.0  ;;  %v375_v20 = vmul.f32 0.2, %v247_v13  ;;  %v180_v21 = vmul.f32 %v980_v1, %v672_v7 }
  0x39   :  { %v808_v22 = vpack.c.bf16 %v437_v19, %v436_v15  ;;  %v438_v23 = vsel %vm310_vm0, %v246_v10, %v374_v16  ;;  %v181_v24 = vmul.f32 %v980_v1, %v673_v17  ;;  %v676_v25 = vunpack.c.l.bf16 %v907_v14 }
  0x3a   :  { %v439_v26 = vsel %vm311_vm1, %v247_v13, %v375_v20  ;;  %v248_v27 = vadd.f32 %v985_v4, %v180_v21  ;;  %v677_v28 = vunpack.c.h.bf16 %v907_v14  ;;  %v680_v29 = vunpack.c.l.bf16 %v908_v18 }
  0x3b   :  { %935 = vst [vmem:[%s1307_s3 + $0x78] sm:$0xff] %v808_v22   ;;  %v813_v30 = vpack.c.bf16 %v439_v26, %v438_v23  ;;  %v249_v31 = vadd.f32 %v985_v4, %v181_v24  ;;  %v182_v32 = vmul.f32 %v980_v1, %v676_v25  ;;  %v681_v33 = vunpack.c.h.bf16 %v908_v18  ;;  %v913_v26 = vld [vmem:[%s1304_s0 + $0xc0] sm:$0xff]  }
  0x3c   :  { %vm312_vm2 = vcmp.ge.f32.partialorder %v248_v27, 0.0  ;;  %v376_v35 = vmul.f32 0.2, %v248_v27  ;;  %v183_v36 = vmul.f32 %v980_v1, %v677_v28  ;;  %v184_v37 = vmul.f32 %v980_v1, %v680_v29 }
  0x3d   :  { %936 = vst [vmem:[%s1307_s3 + $0x80] sm:$0xff] %v813_v30   ;;  %vm313_vm3 = vcmp.ge.f32.partialorder %v249_v31, 0.0  ;;  %v377_v38 = vmul.f32 0.2, %v249_v31  ;;  %v250_v39 = vadd.f32 %v985_v4, %v182_v32  ;;  %v185_v40 = vmul.f32 %v980_v1, %v681_v33  ;;  %v914_v30 = vld [vmem:[%s1304_s0 + $0xc8] sm:$0xff]  }
  0x3e   :  { %v440_v41 = vsel %vm312_vm2, %v248_v27, %v376_v35  ;;  %v251_v42 = vadd.f32 %v985_v4, %v183_v36  ;;  %v252_v43 = vadd.f32 %v985_v4, %v184_v37  ;;  %v684_v44 = vunpack.c.l.bf16 %v909_v34 }
  0x3f   :  { %v441_v45 = vsel %vm313_vm3, %v249_v31, %v377_v38  ;;  %vm314_vm4 = vcmp.ge.f32.partialorder %v250_v39, 0.0  ;;  %v378_v46 = vmul.f32 0.2, %v250_v39  ;;  %v253_v47 = vadd.f32 %v985_v4, %v185_v40 }
  0x40   :  { %v818_v49 = vpack.c.bf16 %v441_v45, %v440_v41  ;;  %vm315_vm5 = vcmp.ge.f32.partialorder %v251_v42, 0.0  ;;  %v379_v50 = vmul.f32 0.2, %v251_v42  ;;  %vm316_vm6 = vcmp.ge.f32.partialorder %v252_v43, 0.0 }
  0x41   :  { %v442_v51 = vsel %vm314_vm4, %v250_v39, %v378_v46  ;;  %vm317_vm7 = vcmp.ge.f32.partialorder %v253_v47, 0.0  ;;  %v380_v52 = vmul.f32 0.2, %v252_v43  ;;  %v381_v53 = vmul.f32 0.2, %v253_v47 }
  0x42   :  { %937 = vst [vmem:[%s1307_s3 + $0x88] sm:$0xff] %v818_v49   ;;  %v443_v54 = vsel %vm315_vm5, %v251_v42, %v379_v50  ;;  %v685_v55 = vunpack.c.h.bf16 %v909_v34  ;;  %v186_v56 = vmul.f32 %v980_v1, %v684_v44  ;;  %v688_v57 = vunpack.c.l.bf16 %v910_v48  ;;  %v915_v42 = vld [vmem:[%s1304_s0 + $0xd0] sm:$0xff]  }
  0x43   :  { %v823_v60 = vpack.c.bf16 %v443_v54, %v442_v51  ;;  %v444_v61 = vsel %vm316_vm6, %v252_v43, %v380_v52  ;;  %v445_v62 = vsel %vm317_vm7, %v253_v47, %v381_v53  ;;  %v689_v63 = vunpack.c.h.bf16 %v910_v48 }
  0x44   :  { %v828_v0 = vpack.c.bf16 %v445_v62, %v444_v61  ;;  %v187_v2 = vmul.f32 %v980_v1, %v685_v55  ;;  %v254_v3 = vadd.f32 %v985_v4, %v186_v56  ;;  %v188_v5 = vmul.f32 %v980_v1, %v688_v57 }
  0x45   :  { %938 = vst [vmem:[%s1307_s3 + $0x90] sm:$0xff] %v823_v60   ;;  %v189_v6 = vmul.f32 %v980_v1, %v689_v63  ;;  %v692_v7 = vunpack.c.l.bf16 %v911_v58  ;;  %v693_v8 = vunpack.c.h.bf16 %v911_v58  ;;  %v696_v9 = vunpack.c.l.bf16 %v912_v59 }
  0x46   :  { %939 = vst [vmem:[%s1307_s3 + $0x98] sm:$0xff] %v828_v0   ;;  %v255_v10 = vadd.f32 %v985_v4, %v187_v2  ;;  %vm318_vm8 = vcmp.ge.f32.partialorder %v254_v3, 0.0  ;;  %v382_v11 = vmul.f32 0.2, %v254_v3  ;;  %v256_v12 = vadd.f32 %v985_v4, %v188_v5  ;;  %v916_v2 = vld [vmem:[%s1304_s0 + $0xd8] sm:$0xff]  }
  0x47   :  { %v257_v13 = vadd.f32 %v985_v4, %v189_v6  ;;  %v190_v14 = vmul.f32 %v980_v1, %v692_v7  ;;  %v191_v15 = vmul.f32 %v980_v1, %v693_v8  ;;  %v697_v16 = vunpack.c.h.bf16 %v912_v59  ;;  %v917_v8 = vld [vmem:[%s1304_s0 + $0xe0] sm:$0xff]  }
  0x48   :  { %vm319_vm9 = vcmp.ge.f32.partialorder %v255_v10, 0.0  ;;  %v383_v17 = vmul.f32 0.2, %v255_v10  ;;  %v446_v18 = vsel %vm318_vm8, %v254_v3, %v382_v11  ;;  %vm320_vm10 = vcmp.ge.f32.partialorder %v256_v12, 0.0 }
  0x49   :  { %vm321_vm11 = vcmp.ge.f32.partialorder %v257_v13, 0.0  ;;  %v384_v19 = vmul.f32 0.2, %v256_v12  ;;  %v385_v20 = vmul.f32 0.2, %v257_v13  ;;  %v258_v21 = vadd.f32 %v985_v4, %v190_v14 }
  0x4a   :  { %v447_v22 = vsel %vm319_vm9, %v255_v10, %v383_v17  ;;  %v259_v23 = vadd.f32 %v985_v4, %v191_v15  ;;  %v192_v24 = vmul.f32 %v980_v1, %v696_v9  ;;  %v193_v25 = vmul.f32 %v980_v1, %v697_v16 }
  0x4b   :  { %v833_v27 = vpack.c.bf16 %v447_v22, %v446_v18  ;;  %v448_v28 = vsel %vm320_vm10, %v256_v12, %v384_v19  ;;  %v449_v29 = vsel %vm321_vm11, %v257_v13, %v385_v20  ;;  %vm322_vm12 = vcmp.ge.f32.partialorder %v258_v21, 0.0  ;;  %v918_v12 = vld [vmem:[%s1304_s0 + $0xe8] sm:$0xff]   ;;  %v919_v20 = vld [vmem:[%s1304_s0 + $0xf0] sm:$0xff]  }
  0x4c   :  { %v838_v31 = vpack.c.bf16 %v449_v29, %v448_v28  ;;  %vm323_vm13 = vcmp.ge.f32.partialorder %v259_v23, 0.0  ;;  %v386_v32 = vmul.f32 0.2, %v258_v21  ;;  %v387_v33 = vmul.f32 0.2, %v259_v23 }
  0x4d   :  { %940 = vst [vmem:[%s1307_s3 + $0xa0] sm:$0xff] %v833_v27   ;;  %v260_v34 = vadd.f32 %v985_v4, %v192_v24  ;;  %v261_v35 = vadd.f32 %v985_v4, %v193_v25  ;;  %v700_v36 = vunpack.c.l.bf16 %v913_v26  ;;  %v701_v37 = vunpack.c.h.bf16 %v913_v26 }
  0x4e   :  { %941 = vst [vmem:[%s1307_s3 + $0xa8] sm:$0xff] %v838_v31   ;;  %v450_v38 = vsel %vm322_vm12, %v258_v21, %v386_v32  ;;  %v451_v39 = vsel %vm323_vm13, %v259_v23, %v387_v33  ;;  %v704_v40 = vunpack.c.l.bf16 %v914_v30  ;;  %v705_v41 = vunpack.c.h.bf16 %v914_v30 }
  0x4f   :  { %v843_v43 = vpack.c.bf16 %v451_v39, %v450_v38  ;;  %vm324_vm14 = vcmp.ge.f32.partialorder %v260_v34, 0.0  ;;  %vm325_vm15 = vcmp.ge.f32.partialorder %v261_v35, 0.0  ;;  %v388_v44 = vmul.f32 0.2, %v260_v34 }
  0x50   :  { %v389_v45 = vmul.f32 0.2, %v261_v35  ;;  %v194_v46 = vmul.f32 %v980_v1, %v700_v36  ;;  %v195_v47 = vmul.f32 %v980_v1, %v701_v37  ;;  %v196_v48 = vmul.f32 %v980_v1, %v704_v40 }
  0x51   :  { %942 = vst [vmem:[%s1307_s3 + $0xb0] sm:$0xff] %v843_v43   ;;  %v452_v49 = vsel %vm324_vm14, %v260_v34, %v388_v44  ;;  %v197_v50 = vmul.f32 %v980_v1, %v705_v41  ;;  %v708_v51 = vunpack.c.l.bf16 %v915_v42  ;;  %v709_v52 = vunpack.c.h.bf16 %v915_v42 }
  0x52   :  { %v453_v53 = vsel %vm325_vm15, %v261_v35, %v389_v45  ;;  %v262_v54 = vadd.f32 %v985_v4, %v194_v46  ;;  %v263_v55 = vadd.f32 %v985_v4, %v195_v47  ;;  %v264_v56 = vadd.f32 %v985_v4, %v196_v48  ;;  %v920_v48 = vld [vmem:[%s1304_s0 + $0xf8] sm:$0xff]  }
  0x53   :  { %v848_v57 = vpack.c.bf16 %v453_v53, %v452_v49  ;;  %v265_v58 = vadd.f32 %v985_v4, %v197_v50  ;;  %v198_v59 = vmul.f32 %v980_v1, %v708_v51  ;;  %v199_v60 = vmul.f32 %v980_v1, %v709_v52 }
  0x54   :  { %vm326_vm0 = vcmp.ge.f32.partialorder %v262_v54, 0.0  ;;  %vm327_vm1 = vcmp.ge.f32.partialorder %v263_v55, 0.0  ;;  %v390_v61 = vmul.f32 0.2, %v262_v54  ;;  %v391_v62 = vmul.f32 0.2, %v263_v55 }
  0x55   :  { %943 = vst [vmem:[%s1307_s3 + $0xb8] sm:$0xff] %v848_v57   ;;  %vm328_vm2 = vcmp.ge.f32.partialorder %v264_v56, 0.0  ;;  %vm329_vm3 = vcmp.ge.f32.partialorder %v265_v58, 0.0  ;;  %v392_v63 = vmul.f32 0.2, %v264_v56  ;;  %v266_v0 = vadd.f32 %v985_v4, %v198_v59 }
  0x56   :  { %v454_v3 = vsel %vm326_vm0, %v262_v54, %v390_v61  ;;  %v455_v5 = vsel %vm327_vm1, %v263_v55, %v391_v62  ;;  %v393_v6 = vmul.f32 0.2, %v265_v58  ;;  %v267_v7 = vadd.f32 %v985_v4, %v199_v60 }
  0x57   :  { %v853_v9 = vpack.c.bf16 %v455_v5, %v454_v3  ;;  %v456_v10 = vsel %vm328_vm2, %v264_v56, %v392_v63  ;;  %vm330_vm4 = vcmp.ge.f32.partialorder %v266_v0, 0.0  ;;  %v394_v11 = vmul.f32 0.2, %v266_v0 }
  0x58   :  { %v457_v13 = vsel %vm329_vm3, %v265_v58, %v393_v6  ;;  %vm331_vm5 = vcmp.ge.f32.partialorder %v267_v7, 0.0  ;;  %v395_v14 = vmul.f32 0.2, %v267_v7  ;;  %v712_v15 = vunpack.c.l.bf16 %v916_v2 }
  0x59   :  { %944 = vst [vmem:[%s1307_s3 + $0xc0] sm:$0xff] %v853_v9   ;;  %v858_v16 = vpack.c.bf16 %v457_v13, %v456_v10  ;;  %v458_v17 = vsel %vm330_vm4, %v266_v0, %v394_v11  ;;  %v713_v18 = vunpack.c.h.bf16 %v916_v2  ;;  %v716_v19 = vunpack.c.l.bf16 %v917_v8 }
  0x5a   :  { %v459_v21 = vsel %vm331_vm5, %v267_v7, %v395_v14  ;;  %v200_v22 = vmul.f32 %v980_v1, %v712_v15  ;;  %v717_v23 = vunpack.c.h.bf16 %v917_v8  ;;  %v720_v24 = vunpack.c.l.bf16 %v918_v12 }
  0x5b   :  { %945 = vst [vmem:[%s1307_s3 + $0xc8] sm:$0xff] %v858_v16   ;;  %v863_v25 = vpack.c.bf16 %v459_v21, %v458_v17  ;;  %v201_v26 = vmul.f32 %v980_v1, %v713_v18  ;;  %v202_v27 = vmul.f32 %v980_v1, %v716_v19  ;;  %v721_v28 = vunpack.c.h.bf16 %v918_v12 }
  0x5c   :  { %v268_v29 = vadd.f32 %v985_v4, %v200_v22  ;;  %v203_v30 = vmul.f32 %v980_v1, %v717_v23  ;;  %v204_v31 = vmul.f32 %v980_v1, %v720_v24  ;;  %v724_v32 = vunpack.c.l.bf16 %v919_v20 }
  0x5d   :  { %946 = vst [vmem:[%s1307_s3 + $0xd0] sm:$0xff] %v863_v25   ;;  %v269_v33 = vadd.f32 %v985_v4, %v201_v26  ;;  %v270_v34 = vadd.f32 %v985_v4, %v202_v27  ;;  %v205_v35 = vmul.f32 %v980_v1, %v721_v28  ;;  %v725_v36 = vunpack.c.h.bf16 %v919_v20 }
  0x5e   :  { %vm332_vm6 = vcmp.ge.f32.partialorder %v268_v29, 0.0  ;;  %v396_v37 = vmul.f32 0.2, %v268_v29  ;;  %v271_v38 = vadd.f32 %v985_v4, %v203_v30  ;;  %v272_v39 = vadd.f32 %v985_v4, %v204_v31 }
  0x5f   :  { %vm333_vm7 = vcmp.ge.f32.partialorder %v269_v33, 0.0  ;;  %v397_v40 = vmul.f32 0.2, %v269_v33  ;;  %vm334_vm8 = vcmp.ge.f32.partialorder %v270_v34, 0.0  ;;  %v398_v41 = vmul.f32 0.2, %v270_v34 }
  0x60   :  { %v460_v42 = vsel %vm332_vm6, %v268_v29, %v396_v37  ;;  %vm335_vm9 = vcmp.ge.f32.partialorder %v271_v38, 0.0  ;;  %v399_v43 = vmul.f32 0.2, %v271_v38  ;;  %v273_v44 = vadd.f32 %v985_v4, %v205_v35 }
  0x61   :  { %v461_v45 = vsel %vm333_vm7, %v269_v33, %v397_v40  ;;  %v462_v46 = vsel %vm334_vm8, %v270_v34, %v398_v41  ;;  %vm336_vm10 = vcmp.ge.f32.partialorder %v272_v39, 0.0  ;;  %v400_v47 = vmul.f32 0.2, %v272_v39 }
  0x62   :  { %v868_v49 = vpack.c.bf16 %v461_v45, %v460_v42  ;;  %v463_v50 = vsel %vm335_vm9, %v271_v38, %v399_v43  ;;  %vm337_vm11 = vcmp.ge.f32.partialorder %v273_v44, 0.0  ;;  %v401_v51 = vmul.f32 0.2, %v273_v44 }
  0x63   :  { %v873_v52 = vpack.c.bf16 %v463_v50, %v462_v46  ;;  %v464_v53 = vsel %vm336_vm10, %v272_v39, %v400_v47  ;;  %v206_v54 = vmul.f32 %v980_v1, %v724_v32  ;;  %v207_v55 = vmul.f32 %v980_v1, %v725_v36 }
  0x64   :  { %947 = vst [vmem:[%s1307_s3 + $0xd8] sm:$0xff] %v868_v49   ;;  %v465_v56 = vsel %vm337_vm11, %v273_v44, %v401_v51  ;;  %v728_v57 = vunpack.c.l.bf16 %v920_v48  ;;  %v729_v58 = vunpack.c.h.bf16 %v920_v48 }
  0x65   :  { %948 = vst [vmem:[%s1307_s3 + $0xe0] sm:$0xff] %v873_v52   ;;  %v878_v59 = vpack.c.bf16 %v465_v56, %v464_v53  ;;  %v274_v60 = vadd.f32 %v985_v4, %v206_v54  ;;  %v275_v61 = vadd.f32 %v985_v4, %v207_v55 }
  0x66   :  { %v208_v62 = vmul.f32 %v980_v1, %v728_v57  ;;  %v209_v63 = vmul.f32 %v980_v1, %v729_v58 }
  0x67   :  { %949 = vst [vmem:[%s1307_s3 + $0xe8] sm:$0xff] %v878_v59   ;;  %vm338_vm12 = vcmp.ge.f32.partialorder %v274_v60, 0.0  ;;  %vm339_vm13 = vcmp.ge.f32.partialorder %v275_v61, 0.0  ;;  %v402_v0 = vmul.f32 0.2, %v274_v60 }
  0x68   :  { %v403_v2 = vmul.f32 0.2, %v275_v61  ;;  %v276_v3 = vadd.f32 %v985_v4, %v208_v62  ;;  %v277_v5 = vadd.f32 %v985_v4, %v209_v63 }
  0x69   :  { %v466_v6 = vsel %vm338_vm12, %v274_v60, %v402_v0 }
  0x6a   :  { %v467_v7 = vsel %vm339_vm13, %v275_v61, %v403_v2  ;;  %vm340_vm14 = vcmp.ge.f32.partialorder %v276_v3, 0.0  ;;  %vm341_vm15 = vcmp.ge.f32.partialorder %v277_v5, 0.0  ;;  %v404_v8 = vmul.f32 0.2, %v276_v3 }
  0x6b   :  { %v883_v9 = vpack.c.bf16 %v467_v7, %v466_v6  ;;  %v405_v10 = vmul.f32 0.2, %v277_v5 }
  0x6c   :  { %v468_v1 = vsel %vm340_vm14, %v276_v3, %v404_v8 }
  0x6d   :  { %950 = vst [vmem:[%s1307_s3 + $0xf0] sm:$0xff] %v883_v9   ;;  %v469_v11 = vsel %vm341_vm15, %v277_v5, %v405_v10 }
  0x6e   :  { %v888_v12 = vpack.c.bf16 %v469_v11, %v468_v1 }
  0x70   :  { %951 = vst [vmem:[%s1307_s3 + $0xf8] sm:$0xff] %v888_v12  }

// kernel: _lambda_.11
= control target key start
LH: loop header
LB: loop body
LE: loop exit
PB: predicated region body
PF: predicated region fallthrough
CT: control target
= control target key end

     0   :  { %s998_s1 = inlined_call_operand.vmem [shape: bf16[256,128], index: 1, kind: input, shape index: {}]   ;;  %s999_s0 = inlined_call_operand.vmem [shape: bf16[128,256], index: 0, kind: input, shape index: {}]   ;;  %s1000_s2 = inlined_call_operand.vmem [shape: bf16[128,128], index: 2, kind: output, shape index: {0}]   ;;  %s1001_s3 = inlined_call_operand.vmem [shape: f32[1,128], index: 3, kind: output, shape index: {1}]   ;;  %s1002_s4 = inlined_call_operand.vmem [shape: f32[1,128], index: 4, kind: output, shape index: {2}]  }
   0x1   :  { %v689_v0 = vld [vmem:[%s998_s1 + $0x38] sm:$0xff]  ;;  %v688_v2 = vld [vmem:[%s998_s1 + $0x30] sm:$0xff]  ;;  %v687_v4 = vld [vmem:[%s998_s1 + $0x28] sm:$0xff] }
   0x2   :  { %v697_v1 = vld [vmem:[%s998_s1 + $0x78] sm:$0xff]  ;;  %274 = vmatpush.bf16.msra.mxu0 %v689_v0  ;;  %v696_v3 = vld [vmem:[%s998_s1 + $0x70] sm:$0xff]  ;;  %745 = vmatpush.bf16.msra.mxu2 %v689_v0  ;;  %v695_v5 = vld [vmem:[%s998_s1 + $0x68] sm:$0xff] }
   0x3   :  { %323 = vmatpush.bf16.msra.mxu1 %v697_v1  ;;  %753 = vmatpush.bf16.msra.mxu3 %v697_v1  ;;  %v686_v6 = vld [vmem:[%s998_s1 + $0x20] sm:$0xff]  ;;  %v685_v8 = vld [vmem:[%s998_s1 + $0x18] sm:$0xff]  ;;  %v684_v10 = vld [vmem:[%s998_s1 + $0x10] sm:$0xff] }
   0x4   :  { %v694_v7 = vld [vmem:[%s998_s1 + $0x60] sm:$0xff]  ;;  %v693_v9 = vld [vmem:[%s998_s1 + $0x58] sm:$0xff]  ;;  %v692_v11 = vld [vmem:[%s998_s1 + $0x50] sm:$0xff] }
   0x5   :  { %v683_v12 = vld [vmem:[%s998_s1 + $0x8] sm:$0xff]  ;;  %v682_v14 = vld [vmem:[%s998_s1] sm:$0xff]  ;;  %v548_v28 = vld [vmem:[%s999_s0 + $0x10] sm:$0xf] }
   0x6   :  { %275 = vmatpush.bf16.msra.mxu0 %v688_v2  ;;  %746 = vmatpush.bf16.msra.mxu2 %v688_v2  ;;  %v691_v13 = vld [vmem:[%s998_s1 + $0x48] sm:$0xff]  ;;  %v690_v15 = vld [vmem:[%s998_s1 + $0x40] sm:$0xff]  ;;  %v669_v29 = vld [vmem:[%s999_s0 + $0x14] sm:$0xf0] }
   0x7   :  { %324 = vmatpush.bf16.msra.mxu1 %v696_v3  ;;  %754 = vmatpush.bf16.msra.mxu3 %v696_v3  ;;  %v540_v16 = vld [vmem:[%s999_s0] sm:$0xf]  ;;  %v667_v17 = vld [vmem:[%s999_s0 + $0x4] sm:$0xf0]  ;;  %v666_v18 = vld [vmem:[%s999_s0 + $0x4] sm:$0xf]  ;;  %v549_v36 = vor.u32 %v669_v29, %v548_v28 }
   0x8   :  { %v542_v19 = vld [vmem:[%s999_s0 + $0x8] sm:$0xf0]  ;;  %v572_v20 = vld [vmem:[%s999_s0 + $0x40] sm:$0xf]  ;;  %v675_v21 = vld [vmem:[%s999_s0 + $0x44] sm:$0xf0]  ;;  %v541_v24 = vor.u32 %v667_v17, %v540_v16 }
   0x9   :  { %v674_v22 = vld [vmem:[%s999_s0 + $0x44] sm:$0xf]  ;;  %v574_v23 = vld [vmem:[%s999_s0 + $0x48] sm:$0xf0]  ;;  %v545_v25 = vor.u32 %v666_v18, %v542_v19  ;;  %v573_v26 = vor.u32 %v675_v21, %v572_v20  ;;  %v668_v30 = vld [vmem:[%s999_s0 + $0x14] sm:$0xf] }
   0xa   :  { %276 = vmatpush.bf16.msra.mxu0 %v687_v4  ;;  %747 = vmatpush.bf16.msra.mxu2 %v687_v4  ;;  %v577_v27 = vor.u32 %v674_v22, %v574_v23  ;;  %v550_v31 = vld [vmem:[%s999_s0 + $0x18] sm:$0xf0]  ;;  %v580_v32 = vld [vmem:[%s999_s0 + $0x50] sm:$0xf]  ;;  %v677_v33 = vld [vmem:[%s999_s0 + $0x54] sm:$0xf0] }
   0xb   :  { %325 = vmatpush.bf16.msra.mxu1 %v695_v5  ;;  %755 = vmatpush.bf16.msra.mxu3 %v695_v5  ;;  %v676_v34 = vld [vmem:[%s999_s0 + $0x54] sm:$0xf]  ;;  %v582_v35 = vld [vmem:[%s999_s0 + $0x58] sm:$0xf0]  ;;  %v553_v37 = vor.u32 %v668_v30, %v550_v31  ;;  %v581_v38 = vor.u32 %v677_v33, %v580_v32  ;;  %v556_v40 = vld [vmem:[%s999_s0 + $0x20] sm:$0xf] }
   0xc   :  { %v585_v39 = vor.u32 %v676_v34, %v582_v35  ;;  %v671_v41 = vld [vmem:[%s999_s0 + $0x24] sm:$0xf0]  ;;  %v670_v42 = vld [vmem:[%s999_s0 + $0x24] sm:$0xf]  ;;  %v558_v43 = vld [vmem:[%s999_s0 + $0x28] sm:$0xf0] }
   0xd   :  { %v588_v44 = vld [vmem:[%s999_s0 + $0x60] sm:$0xf]  ;;  %v679_v45 = vld [vmem:[%s999_s0 + $0x64] sm:$0xf0]  ;;  %v678_v46 = vld [vmem:[%s999_s0 + $0x64] sm:$0xf]  ;;  %v557_v48 = vor.u32 %v671_v41, %v556_v40  ;;  %v561_v49 = vor.u32 %v670_v42, %v558_v43 }
   0xe   :  { %277 = vmatpush.bf16.msra.mxu0 %v686_v6  ;;  %748 = vmatpush.bf16.msra.mxu2 %v686_v6  ;;  %v590_v47 = vld [vmem:[%s999_s0 + $0x68] sm:$0xf0]  ;;  %v589_v50 = vor.u32 %v679_v45, %v588_v44  ;;  %v564_v52 = vld [vmem:[%s999_s0 + $0x30] sm:$0xf]  ;;  %v673_v53 = vld [vmem:[%s999_s0 + $0x34] sm:$0xf0] }
   0xf   :  { %326 = vmatpush.bf16.msra.mxu1 %v694_v7  ;;  %756 = vmatpush.bf16.msra.mxu3 %v694_v7  ;;  %v593_v51 = vor.u32 %v678_v46, %v590_v47  ;;  %v672_v54 = vld [vmem:[%s999_s0 + $0x34] sm:$0xf]  ;;  %v566_v55 = vld [vmem:[%s999_s0 + $0x38] sm:$0xf0]  ;;  %v596_v56 = vld [vmem:[%s999_s0 + $0x70] sm:$0xf]  ;;  %v565_v60 = vor.u32 %v673_v53, %v564_v52 }
  0x10   :  { %v681_v57 = vld [vmem:[%s999_s0 + $0x74] sm:$0xf0]  ;;  %v680_v58 = vld [vmem:[%s999_s0 + $0x74] sm:$0xf]  ;;  %v598_v59 = vld [vmem:[%s999_s0 + $0x78] sm:$0xf0]  ;;  %v569_v61 = vor.u32 %v672_v54, %v566_v55 }
  0x11   :  { %v597_v62 = vor.u32 %v681_v57, %v596_v56  ;;  %v601_v63 = vor.u32 %v680_v58, %v598_v59 }
  0x12   :  { %278 = vmatpush.bf16.msra.mxu0 %v685_v8  ;;  %749 = vmatpush.bf16.msra.mxu2 %v685_v8 }
  0x13   :  { %327 = vmatpush.bf16.msra.mxu1 %v693_v9  ;;  %757 = vmatpush.bf16.msra.mxu3 %v693_v9 }
  0x16   :  { %279 = vmatpush.bf16.msra.mxu0 %v684_v10  ;;  %750 = vmatpush.bf16.msra.mxu2 %v684_v10 }
  0x17   :  { %328 = vmatpush.bf16.msra.mxu1 %v692_v11  ;;  %758 = vmatpush.bf16.msra.mxu3 %v692_v11 }
  0x1a   :  { %280 = vmatpush.bf16.msra.mxu0 %v683_v12  ;;  %751 = vmatpush.bf16.msra.mxu2 %v683_v12 }
  0x1b   :  { %329 = vmatpush.bf16.msra.mxu1 %v691_v13  ;;  %759 = vmatpush.bf16.msra.mxu3 %v691_v13 }
  0x1e   :  { %281 = vmatpush.bf16.msra.mxu0 %v682_v14  ;;  %752 = vmatpush.bf16.msra.mxu2 %v682_v14 }
  0x1f   :  { %330 = vmatpush.bf16.msra.mxu1 %v690_v15  ;;  %760 = vmatpush.bf16.msra.mxu3 %v690_v15 }
  0x21   :  { %282 = vmatmul.bf16.vlgmr.msra.gmra.mxu0 %v541_v24  ;;  %302 = vmatmul.bf16.vlgmr.msra.gmra.mxu2 %v573_v26 }
  0x22   :  { %331 = vmatmul.bf16.vlgmr.msra.gmra.mxu1 %v545_v25  ;;  %351 = vmatmul.bf16.vlgmr.msra.gmra.mxu3 %v577_v27 }
  0x31   :  { %287 = vmatmul.bf16.gmra.mxu0 %v549_v36  ;;  %307 = vmatmul.bf16.gmra.mxu2 %v581_v38 }
  0x32   :  { %336 = vmatmul.bf16.gmra.mxu1 %v553_v37  ;;  %356 = vmatmul.bf16.gmra.mxu3 %v585_v39  ;;  %v762_v37 = vmov 0.0  }
  0x33   :  { %409 = vst [vmem:[%s1001_s3] sm:$0x1] %v762_v37 }
  0x34   :  { %410 = vst [vmem:[%s1002_s4] sm:$0x1] %v762_v37 }
  0x41   :  { %292 = vmatmul.bf16.gmra.mxu0 %v557_v48  ;;  %312 = vmatmul.bf16.gmra.mxu2 %v589_v50 }
  0x42   :  { %341 = vmatmul.bf16.gmra.mxu1 %v561_v49  ;;  %361 = vmatmul.bf16.gmra.mxu3 %v593_v51 }
  0x51   :  { %297 = vmatmul.bf16.gmra.mxu0 %v565_v60  ;;  %317 = vmatmul.bf16.gmra.mxu2 %v597_v62 }
  0x52   :  { %346 = vmatmul.bf16.gmra.mxu1 %v569_v61  ;;  %366 = vmatmul.bf16.gmra.mxu3 %v601_v63 }
  0x9e   :  { %v283_v0 = vpop.f32.mrf.mxu0 }
  0x9f   :  { %v332_v1 = vpop.f32.mrf.mxu1 }
  0xa0   :  { %v333_v6 = vadd.f32 %v332_v1, %v283_v0 }
  0xa2   :  { %v455_v40 = vmul.f32 %v333_v6, %v333_v6 }
  0xa4   :  { %v303_v2 = vpop.f32.mrf.mxu2 }
  0xa5   :  { %v352_v3 = vpop.f32.mrf.mxu3 }
  0xa6   :  { %v285_v4 = vpop.f32.mrf.mxu0  ;;  %v935_v9 = vadd.f32 %v352_v3, %v303_v2 }
  0xa7   :  { %v334_v5 = vpop.f32.mrf.mxu1 }
  0xa8   :  { %v335_v7 = vadd.f32 %v334_v5, %v285_v4 }
  0xaa   :  { %v701_v8 = vpack.c.bf16 %v335_v7, %v333_v6  ;;  %v456_v38 = vmul.f32 %v335_v7, %v335_v7  ;;  %v431_v41 = vadd.f32 %v335_v7, %v333_v6 }
  0xac   :  { %702 = vst [vmem:[%s1000_s2] sm:$0xff] %v701_v8   ;;  %v305_v10 = vpop.f32.mrf.mxu2  ;;  %v471_v48 = vadd.f32 %v456_v38, %v455_v40 }
  0xad   :  { %v354_v11 = vpop.f32.mrf.mxu3 }
  0xae   :  { %v288_v12 = vpop.f32.mrf.mxu0  ;;  %v937_v14 = vadd.f32 %v354_v11, %v305_v10  ;;  %v463_v10 = vmul.f32 %v935_v9, %v935_v9 }
  0xaf   :  { %v337_v13 = vpop.f32.mrf.mxu1 }
  0xb0   :  { %v721_v15 = vpack.c.bf16 %v937_v14, %v935_v9  ;;  %v338_v20 = vadd.f32 %v337_v13, %v288_v12 }
  0xb2   :  { %741 = vst [vmem:[%s1000_s2 + $0x20] sm:$0xff] %v721_v15   ;;  %v457_v42 = vmul.f32 %v338_v20, %v338_v20  ;;  %v432_v49 = vadd.f32 %v431_v41, %v338_v20  ;;  %v464_v15 = vmul.f32 %v937_v14, %v937_v14 }
  0xb4   :  { %v308_v16 = vpop.f32.mrf.mxu2  ;;  %v472_v52 = vadd.f32 %v471_v48, %v457_v42 }
  0xb5   :  { %v357_v17 = vpop.f32.mrf.mxu3 }
  0xb6   :  { %v290_v18 = vpop.f32.mrf.mxu0  ;;  %v947_v23 = vadd.f32 %v357_v17, %v308_v16 }
  0xb7   :  { %v339_v19 = vpop.f32.mrf.mxu1 }
  0xb8   :  { %v340_v21 = vadd.f32 %v339_v19, %v290_v18 }
  0xba   :  { %v706_v22 = vpack.c.bf16 %v340_v21, %v338_v20  ;;  %v458_v50 = vmul.f32 %v340_v21, %v340_v21  ;;  %v433_v53 = vadd.f32 %v432_v49, %v340_v21  ;;  %v465_v21 = vmul.f32 %v947_v23, %v947_v23 }
  0xbc   :  { %738 = vst [vmem:[%s1000_s2 + $0x8] sm:$0xff] %v706_v22   ;;  %v310_v24 = vpop.f32.mrf.mxu2  ;;  %v473_v56 = vadd.f32 %v472_v52, %v458_v50 }
  0xbd   :  { %v359_v25 = vpop.f32.mrf.mxu3 }
  0xbe   :  { %v293_v26 = vpop.f32.mrf.mxu0  ;;  %v949_v28 = vadd.f32 %v359_v25, %v310_v24 }
  0xbf   :  { %v342_v27 = vpop.f32.mrf.mxu1 }
  0xc0   :  { %v726_v29 = vpack.c.bf16 %v949_v28, %v947_v23  ;;  %v343_v34 = vadd.f32 %v342_v27, %v293_v26  ;;  %v466_v25 = vmul.f32 %v949_v28, %v949_v28 }
  0xc2   :  { %742 = vst [vmem:[%s1000_s2 + $0x28] sm:$0xff] %v726_v29   ;;  %v459_v54 = vmul.f32 %v343_v34, %v343_v34  ;;  %v434_v57 = vadd.f32 %v433_v53, %v343_v34 }
  0xc4   :  { %v313_v30 = vpop.f32.mrf.mxu2  ;;  %v474_v59 = vadd.f32 %v473_v56, %v459_v54 }
  0xc5   :  { %v362_v31 = vpop.f32.mrf.mxu3 }
  0xc6   :  { %v295_v32 = vpop.f32.mrf.mxu0  ;;  %v363_v39 = vadd.f32 %v362_v31, %v313_v30 }
  0xc7   :  { %v344_v33 = vpop.f32.mrf.mxu1 }
  0xc8   :  { %v345_v35 = vadd.f32 %v344_v33, %v295_v32 }
  0xca   :  { %v711_v36 = vpack.c.bf16 %v345_v35, %v343_v34  ;;  %v460_v58 = vmul.f32 %v345_v35, %v345_v35  ;;  %v435_v60 = vadd.f32 %v434_v57, %v345_v35 }
  0xcc   :  { %739 = vst [vmem:[%s1000_s2 + $0x10] sm:$0xff] %v711_v36   ;;  %v315_v43 = vpop.f32.mrf.mxu2  ;;  %v475_v2 = vadd.f32 %v474_v59, %v460_v58 }
  0xcd   :  { %v364_v44 = vpop.f32.mrf.mxu3 }
  0xce   :  { %v298_v45 = vpop.f32.mrf.mxu0  ;;  %v365_v47 = vadd.f32 %v364_v44, %v315_v43 }
  0xcf   :  { %v347_v46 = vpop.f32.mrf.mxu1 }
  0xd0   :  { %v731_v51 = vpack.c.bf16 %v365_v47, %v363_v39  ;;  %v348_v55 = vadd.f32 %v347_v46, %v298_v45  ;;  %v468_v31 = vmul.f32 %v365_v47, %v365_v47 }
  0xd2   :  { %743 = vst [vmem:[%s1000_s2 + $0x30] sm:$0xff] %v731_v51   ;;  %v461_v61 = vmul.f32 %v348_v55, %v348_v55  ;;  %v436_v3 = vadd.f32 %v435_v60, %v348_v55  ;;  %v454_v51 = vld [vmem:[%s1002_s4] sm:$0x1] }
  0xd4   :  { %v318_v62 = vpop.f32.mrf.mxu2  ;;  %v476_v5 = vadd.f32 %v475_v2, %v461_v61 }
  0xd5   :  { %v367_v63 = vpop.f32.mrf.mxu3 }
  0xd6   :  { %v300_v0 = vpop.f32.mrf.mxu0  ;;  %v368_v13 = vadd.f32 %v367_v63, %v318_v62 }
  0xd7   :  { %v349_v1 = vpop.f32.mrf.mxu1 }
  0xd8   :  { %v350_v4 = vadd.f32 %v349_v1, %v300_v0 }
  0xda   :  { %v437_v6 = vadd.f32 %v436_v3, %v350_v4  ;;  %v462_v7 = vmul.f32 %v350_v4, %v350_v4  ;;  %v716_v8 = vpack.c.bf16 %v350_v4, %v348_v55 }
  0xdc   :  { %v438_v11 = vadd.f32 %v437_v6, %v935_v9  ;;  %v477_v12 = vadd.f32 %v476_v5, %v462_v7  ;;  %740 = vst [vmem:[%s1000_s2 + $0x18] sm:$0xff] %v716_v8   ;;  %v320_v18 = vpop.f32.mrf.mxu2 }
  0xdd   :  { %v369_v19 = vpop.f32.mrf.mxu3 }
  0xde   :  { %v439_v16 = vadd.f32 %v438_v11, %v937_v14  ;;  %v478_v17 = vadd.f32 %v477_v12, %v463_v10  ;;  %v370_v20 = vadd.f32 %v369_v19, %v320_v18  ;;  %v467_v14 = vmul.f32 %v363_v39, %v363_v39 }
  0xe0   :  { %v440_v9 = vadd.f32 %v439_v16, %v947_v23  ;;  %v479_v22 = vadd.f32 %v478_v17, %v464_v15  ;;  %v736_v24 = vpack.c.bf16 %v370_v20, %v368_v13  ;;  %v469_v23 = vmul.f32 %v368_v13, %v368_v13 }
  0xe1   :  { %v470_v38 = vmul.f32 %v370_v20, %v370_v20 }
  0xe2   :  { %v480_v26 = vadd.f32 %v479_v22, %v465_v21  ;;  %v441_v27 = vadd.f32 %v440_v9, %v949_v28  ;;  %744 = vst [vmem:[%s1000_s2 + $0x38] sm:$0xff] %v736_v24  }
  0xe4   :  { %v442_v29 = vadd.f32 %v441_v27, %v363_v39  ;;  %v481_v30 = vadd.f32 %v480_v26, %v466_v25 }
  0xe6   :  { %v443_v32 = vadd.f32 %v442_v29, %v365_v47  ;;  %v482_v33 = vadd.f32 %v481_v30, %v467_v14  ;;  %v430_v47 = vld [vmem:[%s1001_s3] sm:$0x1] }
  0xe8   :  { %v444_v34 = vadd.f32 %v443_v32, %v368_v13  ;;  %v483_v35 = vadd.f32 %v482_v33, %v468_v31 }
  0xea   :  { %v484_v36 = vadd.f32 %v483_v35, %v469_v23  ;;  %v445_v37 = vadd.f32 %v444_v34, %v370_v20 }
  0xec   :  { %v446_v40 = vrot.slane %v445_v37, 4  ;;  %v485_v41 = vadd.f32 %v484_v36, %v470_v38 }
  0xee   :  { %v447_v42 = vadd.f32 %v446_v40, %v445_v37  ;;  %v486_v28 = vrot.slane %v485_v41, 4 }
  0xf0   :  { %v448_v43 = vrot.slane %v447_v42, 2  ;;  %v487_v44 = vadd.f32 %v486_v28, %v485_v41 }
  0xf2   :  { %v449_v45 = vadd.f32 %v448_v43, %v447_v42  ;;  %v488_v46 = vrot.slane %v487_v44, 2 }
  0xf4   :  { %v450_v48 = vrot.slane %v449_v45, 1  ;;  %v489_v39 = vadd.f32 %v488_v46, %v487_v44 }
  0xf6   :  { %v451_v49 = vadd.f32 %v450_v48, %v449_v45  ;;  %v490_v50 = vrot.slane %v489_v39, 1 }
  0xf8   :  { %v452_v52 = vadd.f32 %v451_v49, %v430_v47  ;;  %v491_v53 = vadd.f32 %v490_v50, %v489_v39 }
  0xfa   :  { %453 = vst [vmem:[%s1001_s3] sm:$0x1] %v452_v52  ;;  %v492_v54 = vadd.f32 %v491_v53, %v454_v51 }
  0xfc   :  { %493 = vst [vmem:[%s1002_s4] sm:$0x1] %v492_v54 }

// kernel: _lambda_.12
= control target key start
LH: loop header
LB: loop body
LE: loop exit
PB: predicated region body
PF: predicated region fallthrough
CT: control target
= control target key end

     0   :  { %s368_s0 = inlined_call_operand.vmem [shape: bf16[128,128], index: 0, kind: input, shape index: {}]   ;;  %s369_s1 = inlined_call_operand.vmem [shape: f32[1,128], index: 1, kind: input, shape index: {}]   ;;  %s370_s2 = inlined_call_operand.vmem [shape: f32[1,128], index: 2, kind: input, shape index: {}]   ;;  %s371_s3 = inlined_call_operand.vmem [shape: bf16[128,128], index: 3, kind: output, shape index: {}]  }
   0x1   :  { %v171_v0 = vld [vmem:[%s368_s0] sm:$0xff]   ;;  %v242_v5 = vld [vmem:[%s368_s0 + $0x8] sm:$0xff]   ;;  %v243_v8 = vld [vmem:[%s368_s0 + $0x10] sm:$0xff]  }
   0x2   :  { %v284_v1 = vld [vmem:[%s369_s1] ss:$0 sm:$0xff]  ;;  %v172_v2 = vunpack.c.l.bf16 %v171_v0  ;;  %v173_v3 = vunpack.c.h.bf16 %v171_v0  ;;  %v176_v6 = vunpack.c.l.bf16 %v242_v5  ;;  %v177_v7 = vunpack.c.h.bf16 %v242_v5  ;;  %v244_v9 = vld [vmem:[%s368_s0 + $0x18] sm:$0xff]   ;;  %v246_v39 = vld [vmem:[%s368_s0 + $0x28] sm:$0xff]  }
   0x3   :  { %v289_v4 = vld [vmem:[%s370_s2] ss:$0 sm:$0xff]  ;;  %v180_v12 = vunpack.c.l.bf16 %v243_v8  ;;  %v181_v13 = vunpack.c.h.bf16 %v243_v8  ;;  %v184_v16 = vunpack.c.l.bf16 %v244_v9  ;;  %v185_v17 = vunpack.c.h.bf16 %v244_v9  ;;  %v247_v49 = vld [vmem:[%s368_s0 + $0x30] sm:$0xff]   ;;  %v248_v57 = vld [vmem:[%s368_s0 + $0x38] sm:$0xff]  }
   0x4   :  { %v50_v10 = vmul.f32 %v284_v1, %v172_v2  ;;  %v51_v11 = vmul.f32 %v284_v1, %v173_v3  ;;  %v52_v14 = vmul.f32 %v284_v1, %v176_v6  ;;  %v53_v15 = vmul.f32 %v284_v1, %v177_v7  ;;  %v245_v38 = vld [vmem:[%s368_s0 + $0x20] sm:$0xff]  }
   0x5   :  { %v54_v20 = vmul.f32 %v284_v1, %v180_v12  ;;  %v55_v21 = vmul.f32 %v284_v1, %v181_v13  ;;  %v56_v24 = vmul.f32 %v284_v1, %v184_v16  ;;  %v57_v25 = vmul.f32 %v284_v1, %v185_v17 }
   0x6   :  { %v70_v18 = vadd.f32 %v289_v4, %v50_v10  ;;  %v71_v19 = vadd.f32 %v289_v4, %v51_v11  ;;  %v72_v22 = vadd.f32 %v289_v4, %v52_v14  ;;  %v73_v23 = vadd.f32 %v289_v4, %v53_v15 }
   0x7   :  { %v74_v32 = vadd.f32 %v289_v4, %v54_v20  ;;  %v75_v33 = vadd.f32 %v289_v4, %v55_v21  ;;  %v76_v37 = vadd.f32 %v289_v4, %v56_v24  ;;  %v77_v43 = vadd.f32 %v289_v4, %v57_v25 }
   0x8   :  { %vm86_vm0 = vcmp.ge.f32.partialorder %v70_v18, 0.0  ;;  %vm87_vm1 = vcmp.ge.f32.partialorder %v71_v19, 0.0  ;;  %v102_v26 = vmul.f32 0.2, %v70_v18  ;;  %v103_v27 = vmul.f32 0.2, %v71_v19 }
   0x9   :  { %vm88_vm2 = vcmp.ge.f32.partialorder %v72_v22, 0.0  ;;  %vm89_vm3 = vcmp.ge.f32.partialorder %v73_v23, 0.0  ;;  %v104_v28 = vmul.f32 0.2, %v72_v22  ;;  %v105_v29 = vmul.f32 0.2, %v73_v23 }
   0xa   :  { %v118_v30 = vsel %vm86_vm0, %v70_v18, %v102_v26  ;;  %v119_v31 = vsel %vm87_vm1, %v71_v19, %v103_v27  ;;  %vm90_vm4 = vcmp.ge.f32.partialorder %v74_v32, 0.0  ;;  %vm91_vm5 = vcmp.ge.f32.partialorder %v75_v33, 0.0 }
   0xb   :  { %v205_v34 = vpack.c.bf16 %v119_v31, %v118_v30  ;;  %v120_v35 = vsel %vm88_vm2, %v72_v22, %v104_v28  ;;  %v121_v36 = vsel %vm89_vm3, %v73_v23, %v105_v29  ;;  %v106_v41 = vmul.f32 0.2, %v74_v32 }
   0xc   :  { %v210_v40 = vpack.c.bf16 %v121_v36, %v120_v35  ;;  %v107_v42 = vmul.f32 0.2, %v75_v33  ;;  %vm92_vm6 = vcmp.ge.f32.partialorder %v76_v37, 0.0  ;;  %v108_v44 = vmul.f32 0.2, %v76_v37 }
   0xd   :  { %206 = vst [vmem:[%s371_s3] sm:$0xff] %v205_v34   ;;  %v122_v45 = vsel %vm90_vm4, %v74_v32, %v106_v41  ;;  %v188_v46 = vunpack.c.l.bf16 %v245_v38  ;;  %v189_v47 = vunpack.c.h.bf16 %v245_v38  ;;  %v192_v48 = vunpack.c.l.bf16 %v246_v39 }
   0xe   :  { %249 = vst [vmem:[%s371_s3 + $0x8] sm:$0xff] %v210_v40   ;;  %v123_v50 = vsel %vm91_vm5, %v75_v33, %v107_v42  ;;  %vm93_vm7 = vcmp.ge.f32.partialorder %v77_v43, 0.0  ;;  %v109_v51 = vmul.f32 0.2, %v77_v43  ;;  %v124_v52 = vsel %vm92_vm6, %v76_v37, %v108_v44 }
   0xf   :  { %v215_v53 = vpack.c.bf16 %v123_v50, %v122_v45  ;;  %v58_v54 = vmul.f32 %v284_v1, %v188_v46  ;;  %v59_v55 = vmul.f32 %v284_v1, %v189_v47  ;;  %v193_v56 = vunpack.c.h.bf16 %v246_v39 }
  0x10   :  { %v125_v58 = vsel %vm93_vm7, %v77_v43, %v109_v51  ;;  %v60_v59 = vmul.f32 %v284_v1, %v192_v48  ;;  %v196_v60 = vunpack.c.l.bf16 %v247_v49  ;;  %v197_v61 = vunpack.c.h.bf16 %v247_v49 }
  0x11   :  { %250 = vst [vmem:[%s371_s3 + $0x10] sm:$0xff] %v215_v53   ;;  %v220_v62 = vpack.c.bf16 %v125_v58, %v124_v52  ;;  %v78_v63 = vadd.f32 %v289_v4, %v58_v54  ;;  %v79_v0 = vadd.f32 %v289_v4, %v59_v55  ;;  %v61_v2 = vmul.f32 %v284_v1, %v193_v56 }
  0x12   :  { %v80_v3 = vadd.f32 %v289_v4, %v60_v59  ;;  %v62_v5 = vmul.f32 %v284_v1, %v196_v60  ;;  %v63_v6 = vmul.f32 %v284_v1, %v197_v61  ;;  %v200_v7 = vunpack.c.l.bf16 %v248_v57 }
  0x13   :  { %251 = vst [vmem:[%s371_s3 + $0x18] sm:$0xff] %v220_v62   ;;  %vm94_vm8 = vcmp.ge.f32.partialorder %v78_v63, 0.0  ;;  %vm95_vm9 = vcmp.ge.f32.partialorder %v79_v0, 0.0  ;;  %v110_v8 = vmul.f32 0.2, %v78_v63  ;;  %v81_v9 = vadd.f32 %v289_v4, %v61_v2 }
  0x14   :  { %v111_v10 = vmul.f32 0.2, %v79_v0  ;;  %vm96_vm10 = vcmp.ge.f32.partialorder %v80_v3, 0.0  ;;  %v112_v11 = vmul.f32 0.2, %v80_v3  ;;  %v82_v12 = vadd.f32 %v289_v4, %v62_v5 }
  0x15   :  { %v126_v13 = vsel %vm94_vm8, %v78_v63, %v110_v8  ;;  %vm97_vm11 = vcmp.ge.f32.partialorder %v81_v9, 0.0  ;;  %v113_v14 = vmul.f32 0.2, %v81_v9  ;;  %v83_v15 = vadd.f32 %v289_v4, %v63_v6 }
  0x16   :  { %v127_v16 = vsel %vm95_vm9, %v79_v0, %v111_v10  ;;  %v128_v17 = vsel %vm96_vm10, %v80_v3, %v112_v11  ;;  %vm98_vm12 = vcmp.ge.f32.partialorder %v82_v12, 0.0  ;;  %v114_v18 = vmul.f32 0.2, %v82_v12 }
  0x17   :  { %v225_v19 = vpack.c.bf16 %v127_v16, %v126_v13  ;;  %v129_v20 = vsel %vm97_vm11, %v81_v9, %v113_v14  ;;  %vm99_vm13 = vcmp.ge.f32.partialorder %v83_v15, 0.0  ;;  %v115_v21 = vmul.f32 0.2, %v83_v15 }
  0x18   :  { %v230_v22 = vpack.c.bf16 %v129_v20, %v128_v17  ;;  %v130_v23 = vsel %vm98_vm12, %v82_v12, %v114_v18  ;;  %v201_v24 = vunpack.c.h.bf16 %v248_v57  ;;  %v64_v25 = vmul.f32 %v284_v1, %v200_v7 }
  0x19   :  { %252 = vst [vmem:[%s371_s3 + $0x20] sm:$0xff] %v225_v19   ;;  %v131_v26 = vsel %vm99_vm13, %v83_v15, %v115_v21 }
  0x1a   :  { %253 = vst [vmem:[%s371_s3 + $0x28] sm:$0xff] %v230_v22   ;;  %v235_v27 = vpack.c.bf16 %v131_v26, %v130_v23  ;;  %v65_v28 = vmul.f32 %v284_v1, %v201_v24  ;;  %v84_v29 = vadd.f32 %v289_v4, %v64_v25 }
  0x1c   :  { %254 = vst [vmem:[%s371_s3 + $0x30] sm:$0xff] %v235_v27   ;;  %v85_v30 = vadd.f32 %v289_v4, %v65_v28  ;;  %vm100_vm14 = vcmp.ge.f32.partialorder %v84_v29, 0.0  ;;  %v116_v31 = vmul.f32 0.2, %v84_v29 }
  0x1e   :  { %vm101_vm15 = vcmp.ge.f32.partialorder %v85_v30, 0.0  ;;  %v117_v32 = vmul.f32 0.2, %v85_v30  ;;  %v132_v33 = vsel %vm100_vm14, %v84_v29, %v116_v31 }
  0x20   :  { %v133_v34 = vsel %vm101_vm15, %v85_v30, %v117_v32 }
  0x21   :  { %v240_v35 = vpack.c.bf16 %v133_v34, %v132_v33 }
  0x23   :  { %255 = vst [vmem:[%s371_s3 + $0x38] sm:$0xff] %v240_v35  }

// kernel: _lambda_.14
= control target key start
LH: loop header
LB: loop body
LE: loop exit
PB: predicated region body
PF: predicated region fallthrough
CT: control target
= control target key end

     0   :  { %s122_s0 = inlined_call_operand.vmem [shape: bf16[32,128], index: 0, kind: input, shape index: {}]   ;;  %s123_s1 = inlined_call_operand.vmem [shape: f32[1,128], index: 1, kind: input, shape index: {}]   ;;  %s124_s2 = inlined_call_operand.vmem [shape: f32[1,128], index: 2, kind: input, shape index: {}]   ;;  %s125_s3 = inlined_call_operand.vmem [shape: bf16[32,128], index: 3, kind: output, shape index: {}]  }
   0x1   :  { %v63_v0 = vld [vmem:[%s122_s0] sm:$0xff]   ;;  %v80_v5 = vld [vmem:[%s122_s0 + $0x8] sm:$0xff]  }
   0x2   :  { %v82_v1 = vld [vmem:[%s123_s1] ss:$0 sm:$0xff]  ;;  %v64_v2 = vunpack.c.l.bf16 %v63_v0  ;;  %v65_v3 = vunpack.c.h.bf16 %v63_v0  ;;  %v68_v6 = vunpack.c.l.bf16 %v80_v5  ;;  %v69_v7 = vunpack.c.h.bf16 %v80_v5 }
   0x3   :  { %v83_v4 = vld [vmem:[%s124_s2] ss:$0 sm:$0xff] }
   0x4   :  { %v26_v8 = vmul.f32 %v82_v1, %v64_v2  ;;  %v27_v9 = vmul.f32 %v82_v1, %v65_v3  ;;  %v28_v10 = vmul.f32 %v82_v1, %v68_v6  ;;  %v29_v11 = vmul.f32 %v82_v1, %v69_v7 }
   0x6   :  { %v34_v12 = vadd.f32 %v83_v4, %v26_v8  ;;  %v35_v13 = vadd.f32 %v83_v4, %v27_v9  ;;  %v36_v14 = vadd.f32 %v83_v4, %v28_v10  ;;  %v37_v15 = vadd.f32 %v83_v4, %v29_v11 }
   0x8   :  { %vm38_vm0 = vcmp.ge.f32.partialorder %v34_v12, 0.0  ;;  %vm39_vm1 = vcmp.ge.f32.partialorder %v35_v13, 0.0  ;;  %v42_v16 = vmul.f32 0.2, %v34_v12  ;;  %v43_v17 = vmul.f32 0.2, %v35_v13 }
   0x9   :  { %vm40_vm2 = vcmp.ge.f32.partialorder %v36_v14, 0.0  ;;  %vm41_vm3 = vcmp.ge.f32.partialorder %v37_v15, 0.0  ;;  %v44_v18 = vmul.f32 0.2, %v36_v14  ;;  %v45_v19 = vmul.f32 0.2, %v37_v15 }
   0xa   :  { %v46_v20 = vsel %vm38_vm0, %v34_v12, %v42_v16  ;;  %v47_v21 = vsel %vm39_vm1, %v35_v13, %v43_v17 }
   0xb   :  { %v73_v22 = vpack.c.bf16 %v47_v21, %v46_v20  ;;  %v48_v23 = vsel %vm40_vm2, %v36_v14, %v44_v18  ;;  %v49_v24 = vsel %vm41_vm3, %v37_v15, %v45_v19 }
   0xc   :  { %v78_v25 = vpack.c.bf16 %v49_v24, %v48_v23 }
   0xd   :  { %74 = vst [vmem:[%s125_s3] sm:$0xff] %v73_v22  }
   0xe   :  { %81 = vst [vmem:[%s125_s3 + $0x8] sm:$0xff] %v78_v25  }

// kernel: _lambda_.13
= control target key start
LH: loop header
LB: loop body
LE: loop exit
PB: predicated region body
PF: predicated region fallthrough
CT: control target
= control target key end

     0   :  { %v688_v58 = vmov 0.0   ;;  %s882_s1 = inlined_call_operand.vmem [shape: bf16[512,128], index: 1, kind: input, shape index: {}]   ;;  %s883_s0 = inlined_call_operand.vmem [shape: bf16[32,512], index: 0, kind: input, shape index: {}]   ;;  %s884_s3 = inlined_call_operand.vmem [shape: f32[1,128], index: 3, kind: output, shape index: {1}]   ;;  %s885_s4 = inlined_call_operand.vmem [shape: f32[1,128], index: 4, kind: output, shape index: {2}]   ;;  %s886_s2 = inlined_call_operand.vmem [shape: bf16[32,128], index: 2, kind: output, shape index: {0}]  }
   0x1   :  { %v651_v0 = vld [vmem:[%s882_s1 + $0x38] sm:$0xff]  ;;  %v650_v4 = vld [vmem:[%s882_s1 + $0x30] sm:$0xff]  ;;  %v649_v8 = vld [vmem:[%s882_s1 + $0x28] sm:$0xff]  ;;  %419 = vst [vmem:[%s884_s3] sm:$0x1] %v688_v58 }
   0x2   :  { %v659_v1 = vld [vmem:[%s882_s1 + $0x78] sm:$0xff]  ;;  %330 = vmatpush.bf16.msra.mxu0 %v651_v0  ;;  %v658_v5 = vld [vmem:[%s882_s1 + $0x70] sm:$0xff]  ;;  %v657_v9 = vld [vmem:[%s882_s1 + $0x68] sm:$0xff]  ;;  %420 = vst [vmem:[%s885_s4] sm:$0x1] %v688_v58 }
   0x3   :  { %v667_v2 = vld [vmem:[%s882_s1 + $0xb8] sm:$0xff]  ;;  %349 = vmatpush.bf16.msra.mxu1 %v659_v1  ;;  %v666_v6 = vld [vmem:[%s882_s1 + $0xb0] sm:$0xff]  ;;  %v665_v10 = vld [vmem:[%s882_s1 + $0xa8] sm:$0xff] }
   0x4   :  { %v675_v3 = vld [vmem:[%s882_s1 + $0xf8] sm:$0xff]  ;;  %368 = vmatpush.bf16.msra.mxu2 %v667_v2  ;;  %v674_v7 = vld [vmem:[%s882_s1 + $0xf0] sm:$0xff]  ;;  %v673_v11 = vld [vmem:[%s882_s1 + $0xe8] sm:$0xff] }
   0x5   :  { %387 = vmatpush.bf16.msra.mxu3 %v675_v3  ;;  %v648_v12 = vld [vmem:[%s882_s1 + $0x20] sm:$0xff]  ;;  %v647_v16 = vld [vmem:[%s882_s1 + $0x18] sm:$0xff]  ;;  %v646_v20 = vld [vmem:[%s882_s1 + $0x10] sm:$0xff] }
   0x6   :  { %331 = vmatpush.bf16.msra.mxu0 %v650_v4  ;;  %v656_v13 = vld [vmem:[%s882_s1 + $0x60] sm:$0xff]  ;;  %v655_v17 = vld [vmem:[%s882_s1 + $0x58] sm:$0xff]  ;;  %v654_v21 = vld [vmem:[%s882_s1 + $0x50] sm:$0xff] }
   0x7   :  { %350 = vmatpush.bf16.msra.mxu1 %v658_v5  ;;  %v664_v14 = vld [vmem:[%s882_s1 + $0xa0] sm:$0xff]  ;;  %v663_v18 = vld [vmem:[%s882_s1 + $0x98] sm:$0xff]  ;;  %v662_v22 = vld [vmem:[%s882_s1 + $0x90] sm:$0xff] }
   0x8   :  { %369 = vmatpush.bf16.msra.mxu2 %v666_v6  ;;  %v672_v15 = vld [vmem:[%s882_s1 + $0xe0] sm:$0xff]  ;;  %v671_v19 = vld [vmem:[%s882_s1 + $0xd8] sm:$0xff]  ;;  %v670_v23 = vld [vmem:[%s882_s1 + $0xd0] sm:$0xff] }
   0x9   :  { %388 = vmatpush.bf16.msra.mxu3 %v674_v7  ;;  %v645_v24 = vld [vmem:[%s882_s1 + $0x8] sm:$0xff]  ;;  %v644_v28 = vld [vmem:[%s882_s1] sm:$0xff]  ;;  %v638_v33 = vld [vmem:[%s883_s0 + $0xc] sm:$0xf0] }
   0xa   :  { %332 = vmatpush.bf16.msra.mxu0 %v649_v8  ;;  %v653_v25 = vld [vmem:[%s882_s1 + $0x48] sm:$0xff]  ;;  %v652_v29 = vld [vmem:[%s882_s1 + $0x40] sm:$0xff]  ;;  %v480_v35 = vld [vmem:[%s883_s0 + $0x10] sm:$0xf0] }
   0xb   :  { %351 = vmatpush.bf16.msra.mxu1 %v657_v9  ;;  %v661_v26 = vld [vmem:[%s882_s1 + $0x88] sm:$0xff]  ;;  %v660_v30 = vld [vmem:[%s882_s1 + $0x80] sm:$0xff]  ;;  %v639_v37 = vld [vmem:[%s883_s0 + $0x14] sm:$0xf0] }
   0xc   :  { %370 = vmatpush.bf16.msra.mxu2 %v665_v10  ;;  %v669_v27 = vld [vmem:[%s882_s1 + $0xc8] sm:$0xff]  ;;  %v668_v31 = vld [vmem:[%s882_s1 + $0xc0] sm:$0xff]  ;;  %v488_v39 = vld [vmem:[%s883_s0 + $0x18] sm:$0xf0] }
   0xd   :  { %389 = vmatpush.bf16.msra.mxu3 %v673_v11  ;;  %v478_v32 = vld [vmem:[%s883_s0] sm:$0xf]  ;;  %v636_v34 = vld [vmem:[%s883_s0 + $0x4] sm:$0xf]  ;;  %v486_v36 = vld [vmem:[%s883_s0 + $0x8] sm:$0xf] }
   0xe   :  { %333 = vmatpush.bf16.msra.mxu0 %v648_v12  ;;  %v637_v38 = vld [vmem:[%s883_s0 + $0xc] sm:$0xf]  ;;  %v479_v40 = vor.u32 %v638_v33, %v478_v32  ;;  %v483_v41 = vor.u32 %v636_v34, %v480_v35  ;;  %v487_v42 = vor.u32 %v639_v37, %v486_v36  ;;  %v494_v44 = vld [vmem:[%s883_s0 + $0x20] sm:$0xf]  ;;  %v642_v45 = vld [vmem:[%s883_s0 + $0x2c] sm:$0xf0] }
   0xf   :  { %352 = vmatpush.bf16.msra.mxu1 %v656_v13  ;;  %v491_v43 = vor.u32 %v637_v38, %v488_v39  ;;  %v640_v46 = vld [vmem:[%s883_s0 + $0x24] sm:$0xf]  ;;  %v496_v47 = vld [vmem:[%s883_s0 + $0x30] sm:$0xf0]  ;;  %v502_v48 = vld [vmem:[%s883_s0 + $0x28] sm:$0xf]  ;;  %v495_v52 = vor.u32 %v642_v45, %v494_v44 }
  0x10   :  { %371 = vmatpush.bf16.msra.mxu2 %v664_v14  ;;  %v643_v49 = vld [vmem:[%s883_s0 + $0x34] sm:$0xf0]  ;;  %v641_v50 = vld [vmem:[%s883_s0 + $0x2c] sm:$0xf]  ;;  %v504_v51 = vld [vmem:[%s883_s0 + $0x38] sm:$0xf0]  ;;  %v499_v53 = vor.u32 %v640_v46, %v496_v47 }
  0x11   :  { %390 = vmatpush.bf16.msra.mxu3 %v672_v15  ;;  %v503_v54 = vor.u32 %v643_v49, %v502_v48  ;;  %v507_v55 = vor.u32 %v641_v50, %v504_v51  ;;  %v440_v45 = vld [vmem:[%s885_s4] sm:$0x1] }
  0x12   :  { %334 = vmatpush.bf16.msra.mxu0 %v647_v16 }
  0x13   :  { %353 = vmatpush.bf16.msra.mxu1 %v655_v17 }
  0x14   :  { %372 = vmatpush.bf16.msra.mxu2 %v663_v18 }
  0x15   :  { %391 = vmatpush.bf16.msra.mxu3 %v671_v19 }
  0x16   :  { %335 = vmatpush.bf16.msra.mxu0 %v646_v20 }
  0x17   :  { %354 = vmatpush.bf16.msra.mxu1 %v654_v21 }
  0x18   :  { %373 = vmatpush.bf16.msra.mxu2 %v662_v22 }
  0x19   :  { %392 = vmatpush.bf16.msra.mxu3 %v670_v23 }
  0x1a   :  { %336 = vmatpush.bf16.msra.mxu0 %v645_v24 }
  0x1b   :  { %355 = vmatpush.bf16.msra.mxu1 %v653_v25 }
  0x1c   :  { %374 = vmatpush.bf16.msra.mxu2 %v661_v26 }
  0x1d   :  { %393 = vmatpush.bf16.msra.mxu3 %v669_v27 }
  0x1e   :  { %337 = vmatpush.bf16.msra.mxu0 %v644_v28 }
  0x1f   :  { %356 = vmatpush.bf16.msra.mxu1 %v652_v29 }
  0x20   :  { %375 = vmatpush.bf16.msra.mxu2 %v660_v30 }
  0x21   :  { %394 = vmatpush.bf16.msra.mxu3 %v668_v31  ;;  %338 = vmatmul.bf16.vlgmr.msra.gmra.mxu0 %v479_v40 }
  0x22   :  { %357 = vmatmul.bf16.vlgmr.msra.gmra.mxu1 %v483_v41 }
  0x23   :  { %376 = vmatmul.bf16.vlgmr.msra.gmra.mxu2 %v487_v42  ;;  %v428_v42 = vld [vmem:[%s884_s3] sm:$0x1] }
  0x24   :  { %395 = vmatmul.bf16.vlgmr.msra.gmra.mxu3 %v491_v43 }
  0x31   :  { %343 = vmatmul.bf16.gmra.mxu0 %v495_v52 }
  0x32   :  { %362 = vmatmul.bf16.gmra.mxu1 %v499_v53 }
  0x33   :  { %381 = vmatmul.bf16.gmra.mxu2 %v503_v54 }
  0x34   :  { %400 = vmatmul.bf16.gmra.mxu3 %v507_v55 }
  0x9e   :  { %v339_v56 = vpop.f32.mrf.mxu0 }
  0x9f   :  { %v358_v57 = vpop.f32.mrf.mxu1 }
  0xa0   :  { %v359_v63 = vadd.f32 %v358_v57, %v339_v56 }
  0xa6   :  { %v377_v59 = vpop.f32.mrf.mxu2  ;;  %v341_v61 = vpop.f32.mrf.mxu0 }
  0xa7   :  { %v396_v60 = vpop.f32.mrf.mxu3  ;;  %v360_v62 = vpop.f32.mrf.mxu1  ;;  %v378_v0 = vadd.f32 %v377_v59, %v359_v63 }
  0xa8   :  { %v361_v1 = vadd.f32 %v360_v62, %v341_v61 }
  0xa9   :  { %v397_v7 = vadd.f32 %v396_v60, %v378_v0 }
  0xab   :  { %v441_v20 = vmul.f32 %v397_v7, %v397_v7 }
  0xae   :  { %v379_v2 = vpop.f32.mrf.mxu2  ;;  %v344_v5 = vpop.f32.mrf.mxu0 }
  0xaf   :  { %v398_v3 = vpop.f32.mrf.mxu3  ;;  %v380_v4 = vadd.f32 %v379_v2, %v361_v1  ;;  %v363_v6 = vpop.f32.mrf.mxu1 }
  0xb0   :  { %v364_v10 = vadd.f32 %v363_v6, %v344_v5 }
  0xb1   :  { %v399_v8 = vadd.f32 %v398_v3, %v380_v4 }
  0xb3   :  { %v679_v9 = vpack.c.bf16 %v399_v8, %v397_v7  ;;  %v442_v17 = vmul.f32 %v399_v8, %v399_v8  ;;  %v429_v21 = vadd.f32 %v399_v8, %v397_v7 }
  0xb5   :  { %680 = vst [vmem:[%s886_s2] sm:$0xff] %v679_v9   ;;  %v445_v25 = vadd.f32 %v442_v17, %v441_v20 }
  0xb6   :  { %v382_v11 = vpop.f32.mrf.mxu2  ;;  %v346_v14 = vpop.f32.mrf.mxu0 }
  0xb7   :  { %v401_v12 = vpop.f32.mrf.mxu3  ;;  %v383_v13 = vadd.f32 %v382_v11, %v364_v10  ;;  %v365_v15 = vpop.f32.mrf.mxu1 }
  0xb8   :  { %v366_v18 = vadd.f32 %v365_v15, %v346_v14 }
  0xb9   :  { %v402_v16 = vadd.f32 %v401_v12, %v383_v13 }
  0xbb   :  { %v443_v22 = vmul.f32 %v402_v16, %v402_v16  ;;  %v430_v26 = vadd.f32 %v429_v21, %v402_v16 }
  0xbd   :  { %v446_v28 = vadd.f32 %v445_v25, %v443_v22 }
  0xbe   :  { %v384_v19 = vpop.f32.mrf.mxu2 }
  0xbf   :  { %v385_v23 = vadd.f32 %v384_v19, %v366_v18  ;;  %v403_v24 = vpop.f32.mrf.mxu3 }
  0xc1   :  { %v404_v27 = vadd.f32 %v403_v24, %v385_v23 }
  0xc3   :  { %v431_v29 = vadd.f32 %v430_v26, %v404_v27  ;;  %v444_v30 = vmul.f32 %v404_v27, %v404_v27  ;;  %v684_v31 = vpack.c.bf16 %v404_v27, %v402_v16 }
  0xc5   :  { %v432_v32 = vrot.slane %v431_v29, 4  ;;  %v447_v33 = vadd.f32 %v446_v28, %v444_v30  ;;  %686 = vst [vmem:[%s886_s2 + $0x8] sm:$0xff] %v684_v31  }
  0xc7   :  { %v433_v34 = vadd.f32 %v432_v32, %v431_v29  ;;  %v448_v35 = vrot.slane %v447_v33, 4 }
  0xc9   :  { %v434_v36 = vrot.slane %v433_v34, 2  ;;  %v449_v37 = vadd.f32 %v448_v35, %v447_v33 }
  0xcb   :  { %v435_v38 = vadd.f32 %v434_v36, %v433_v34  ;;  %v450_v39 = vrot.slane %v449_v37, 2 }
  0xcd   :  { %v436_v40 = vrot.slane %v435_v38, 1  ;;  %v451_v41 = vadd.f32 %v450_v39, %v449_v37 }
  0xcf   :  { %v437_v43 = vadd.f32 %v436_v40, %v435_v38  ;;  %v452_v44 = vrot.slane %v451_v41, 1 }
  0xd1   :  { %v438_v46 = vadd.f32 %v437_v43, %v428_v42  ;;  %v453_v47 = vadd.f32 %v452_v44, %v451_v41 }
  0xd3   :  { %439 = vst [vmem:[%s884_s3] sm:$0x1] %v438_v46  ;;  %v454_v48 = vadd.f32 %v453_v47, %v440_v45 }
  0xd5   :  { %455 = vst [vmem:[%s885_s4] sm:$0x1] %v454_v48 }

// kernel: _lambda_.15
= control target key start
LH: loop header
LB: loop body
LE: loop exit
PB: predicated region body
PF: predicated region fallthrough
CT: control target
= control target key end

     0   :  { %s1218_s1 = inlined_call_operand.vmem [shape: bf16[1024,128], index: 1, kind: input, shape index: {}]   ;;  %s1219_s0 = inlined_call_operand.vmem [shape: bf16[8,1024], index: 0, kind: input, shape index: {}]   ;;  %s1220_s2 = inlined_call_operand.vmem [shape: f32[8,128], index: 2, kind: output, shape index: {}]  }
   0x1   :  { %v939_v0 = vld [vmem:[%s1218_s1 + $0x38] sm:$0xff]  ;;  %v938_v4 = vld [vmem:[%s1218_s1 + $0x30] sm:$0xff]  ;;  %v937_v8 = vld [vmem:[%s1218_s1 + $0x28] sm:$0xff] }
   0x2   :  { %v947_v1 = vld [vmem:[%s1218_s1 + $0x78] sm:$0xff]  ;;  %561 = vmatpush.bf16.msra.mxu0 %v939_v0  ;;  %v946_v5 = vld [vmem:[%s1218_s1 + $0x70] sm:$0xff]  ;;  %v945_v9 = vld [vmem:[%s1218_s1 + $0x68] sm:$0xff] }
   0x3   :  { %v955_v2 = vld [vmem:[%s1218_s1 + $0xb8] sm:$0xff]  ;;  %574 = vmatpush.bf16.msra.mxu1 %v947_v1  ;;  %v954_v6 = vld [vmem:[%s1218_s1 + $0xb0] sm:$0xff]  ;;  %v953_v10 = vld [vmem:[%s1218_s1 + $0xa8] sm:$0xff] }
   0x4   :  { %v963_v3 = vld [vmem:[%s1218_s1 + $0xf8] sm:$0xff]  ;;  %587 = vmatpush.bf16.msra.mxu2 %v955_v2  ;;  %v962_v7 = vld [vmem:[%s1218_s1 + $0xf0] sm:$0xff]  ;;  %v961_v11 = vld [vmem:[%s1218_s1 + $0xe8] sm:$0xff] }
   0x5   :  { %600 = vmatpush.bf16.msra.mxu3 %v963_v3  ;;  %v936_v12 = vld [vmem:[%s1218_s1 + $0x20] sm:$0xff]  ;;  %v935_v16 = vld [vmem:[%s1218_s1 + $0x18] sm:$0xff]  ;;  %v934_v20 = vld [vmem:[%s1218_s1 + $0x10] sm:$0xff] }
   0x6   :  { %562 = vmatpush.bf16.msra.mxu0 %v938_v4  ;;  %v944_v13 = vld [vmem:[%s1218_s1 + $0x60] sm:$0xff]  ;;  %v943_v17 = vld [vmem:[%s1218_s1 + $0x58] sm:$0xff]  ;;  %v942_v21 = vld [vmem:[%s1218_s1 + $0x50] sm:$0xff] }
   0x7   :  { %575 = vmatpush.bf16.msra.mxu1 %v946_v5  ;;  %v952_v14 = vld [vmem:[%s1218_s1 + $0xa0] sm:$0xff]  ;;  %v951_v18 = vld [vmem:[%s1218_s1 + $0x98] sm:$0xff]  ;;  %v950_v22 = vld [vmem:[%s1218_s1 + $0x90] sm:$0xff] }
   0x8   :  { %588 = vmatpush.bf16.msra.mxu2 %v954_v6  ;;  %v960_v15 = vld [vmem:[%s1218_s1 + $0xe0] sm:$0xff]  ;;  %v959_v19 = vld [vmem:[%s1218_s1 + $0xd8] sm:$0xff]  ;;  %v958_v23 = vld [vmem:[%s1218_s1 + $0xd0] sm:$0xff] }
   0x9   :  { %601 = vmatpush.bf16.msra.mxu3 %v962_v7  ;;  %v933_v24 = vld [vmem:[%s1218_s1 + $0x8] sm:$0xff]  ;;  %v17_v29 = vld [vmem:[%s1219_s0] sm:$0xff]  ;;  %v971_v38 = vld [vmem:[%s1218_s1 + $0x138] sm:$0xff] }
   0xa   :  { %563 = vmatpush.bf16.msra.mxu0 %v937_v8  ;;  %v941_v25 = vld [vmem:[%s1218_s1 + $0x48] sm:$0xff]  ;;  %v932_v30 = vld [vmem:[%s1218_s1] sm:$0xff]  ;;  %v153_v36 = vunpack.c.l.b16 %v17_v29  ;;  %v154_v37 = vunpack.c.h.b16 %v17_v29  ;;  %v979_v39 = vld [vmem:[%s1218_s1 + $0x178] sm:$0xff] }
   0xb   :  { %576 = vmatpush.bf16.msra.mxu1 %v945_v9  ;;  %v949_v26 = vld [vmem:[%s1218_s1 + $0x88] sm:$0xff]  ;;  %v940_v31 = vld [vmem:[%s1218_s1 + $0x40] sm:$0xff]  ;;  %v987_v40 = vld [vmem:[%s1218_s1 + $0x1b8] sm:$0xff] }
   0xc   :  { %589 = vmatpush.bf16.msra.mxu2 %v953_v10  ;;  %v957_v27 = vld [vmem:[%s1218_s1 + $0xc8] sm:$0xff]  ;;  %v948_v34 = vld [vmem:[%s1218_s1 + $0x80] sm:$0xff]  ;;  %v995_v41 = vld [vmem:[%s1218_s1 + $0x1f8] sm:$0xff]  ;;  %v161_v44 = vpack.c.b16 %v153_v36, %v153_v36  ;;  %v162_v45 = vpack.c.b16 %v154_v37, %v154_v37 }
   0xd   :  { %602 = vmatpush.bf16.msra.mxu3 %v961_v11  ;;  %v18_v28 = vld [vmem:[%s1219_s0 + $0x8] sm:$0xff]  ;;  %v956_v35 = vld [vmem:[%s1218_s1 + $0xc0] sm:$0xff]  ;;  %v970_v46 = vld [vmem:[%s1218_s1 + $0x130] sm:$0xff] }
   0xe   :  { %564 = vmatpush.bf16.msra.mxu0 %v936_v12  ;;  %v155_v32 = vunpack.c.l.b16 %v18_v28  ;;  %v156_v33 = vunpack.c.h.b16 %v18_v28  ;;  %v978_v47 = vld [vmem:[%s1218_s1 + $0x170] sm:$0xff]  ;;  %v969_v50 = vld [vmem:[%s1218_s1 + $0x128] sm:$0xff]  ;;  %v968_v54 = vld [vmem:[%s1218_s1 + $0x120] sm:$0xff] }
   0xf   :  { %577 = vmatpush.bf16.msra.mxu1 %v944_v13  ;;  %v986_v48 = vld [vmem:[%s1218_s1 + $0x1b0] sm:$0xff]  ;;  %v977_v51 = vld [vmem:[%s1218_s1 + $0x168] sm:$0xff]  ;;  %v976_v55 = vld [vmem:[%s1218_s1 + $0x160] sm:$0xff] }
  0x10   :  { %590 = vmatpush.bf16.msra.mxu2 %v952_v14  ;;  %v163_v42 = vpack.c.b16 %v155_v32, %v155_v32  ;;  %v164_v43 = vpack.c.b16 %v156_v33, %v156_v33  ;;  %v994_v49 = vld [vmem:[%s1218_s1 + $0x1f0] sm:$0xff]  ;;  %v985_v52 = vld [vmem:[%s1218_s1 + $0x1a8] sm:$0xff]  ;;  %v984_v56 = vld [vmem:[%s1218_s1 + $0x1a0] sm:$0xff] }
  0x11   :  { %603 = vmatpush.bf16.msra.mxu3 %v960_v15  ;;  %v993_v53 = vld [vmem:[%s1218_s1 + $0x1e8] sm:$0xff]  ;;  %v992_v57 = vld [vmem:[%s1218_s1 + $0x1e0] sm:$0xff]  ;;  %v967_v58 = vld [vmem:[%s1218_s1 + $0x118] sm:$0xff] }
  0x12   :  { %565 = vmatpush.bf16.msra.mxu0 %v935_v16  ;;  %v975_v59 = vld [vmem:[%s1218_s1 + $0x158] sm:$0xff]  ;;  %v966_v62 = vld [vmem:[%s1218_s1 + $0x110] sm:$0xff]  ;;  %v965_v2 = vld [vmem:[%s1218_s1 + $0x108] sm:$0xff] }
  0x13   :  { %578 = vmatpush.bf16.msra.mxu1 %v943_v17  ;;  %v983_v60 = vld [vmem:[%s1218_s1 + $0x198] sm:$0xff]  ;;  %v974_v63 = vld [vmem:[%s1218_s1 + $0x150] sm:$0xff]  ;;  %v973_v3 = vld [vmem:[%s1218_s1 + $0x148] sm:$0xff] }
  0x14   :  { %591 = vmatpush.bf16.msra.mxu2 %v951_v18  ;;  %v991_v61 = vld [vmem:[%s1218_s1 + $0x1d8] sm:$0xff]  ;;  %v982_v0 = vld [vmem:[%s1218_s1 + $0x190] sm:$0xff]  ;;  %v981_v5 = vld [vmem:[%s1218_s1 + $0x188] sm:$0xff] }
  0x15   :  { %604 = vmatpush.bf16.msra.mxu3 %v959_v19  ;;  %v990_v1 = vld [vmem:[%s1218_s1 + $0x1d0] sm:$0xff]  ;;  %v989_v6 = vld [vmem:[%s1218_s1 + $0x1c8] sm:$0xff]  ;;  %v20_v7 = vld [vmem:[%s1219_s0 + $0x18] sm:$0xff] }
  0x16   :  { %566 = vmatpush.bf16.msra.mxu0 %v934_v20  ;;  %v19_v4 = vld [vmem:[%s1219_s0 + $0x10] sm:$0xff]  ;;  %v964_v10 = vld [vmem:[%s1218_s1 + $0x100] sm:$0xff]  ;;  %v159_v12 = vunpack.c.l.b16 %v20_v7  ;;  %v160_v13 = vunpack.c.h.b16 %v20_v7 }
  0x17   :  { %579 = vmatpush.bf16.msra.mxu1 %v942_v21  ;;  %v157_v8 = vunpack.c.l.b16 %v19_v4  ;;  %v158_v9 = vunpack.c.h.b16 %v19_v4  ;;  %v972_v11 = vld [vmem:[%s1218_s1 + $0x140] sm:$0xff] }
  0x18   :  { %592 = vmatpush.bf16.msra.mxu2 %v950_v22  ;;  %v980_v14 = vld [vmem:[%s1218_s1 + $0x180] sm:$0xff]  ;;  %v167_v18 = vpack.c.b16 %v159_v12, %v159_v12  ;;  %v168_v19 = vpack.c.b16 %v160_v13, %v160_v13 }
  0x19   :  { %605 = vmatpush.bf16.msra.mxu3 %v958_v23  ;;  %v988_v15 = vld [vmem:[%s1218_s1 + $0x1c0] sm:$0xff]  ;;  %v165_v16 = vpack.c.b16 %v157_v8, %v157_v8  ;;  %v166_v17 = vpack.c.b16 %v158_v9, %v158_v9 }
  0x1a   :  { %567 = vmatpush.bf16.msra.mxu0 %v933_v24 }
  0x1b   :  { %580 = vmatpush.bf16.msra.mxu1 %v941_v25 }
  0x1c   :  { %593 = vmatpush.bf16.msra.mxu2 %v949_v26 }
  0x1d   :  { %606 = vmatpush.bf16.msra.mxu3 %v957_v27 }
  0x1e   :  { %568 = vmatpush.bf16.msra.mxu0 %v932_v30 }
  0x1f   :  { %581 = vmatpush.bf16.msra.mxu1 %v940_v31 }
  0x20   :  { %594 = vmatpush.bf16.msra.mxu2 %v948_v34 }
  0x21   :  { %607 = vmatpush.bf16.msra.mxu3 %v956_v35  ;;  %569 = vmatmul.bf16.vlgmr.msra.gmra.mxu0 %v161_v44 }
  0x22   :  { %613 = vmatpush.bf16.msrb.mxu0 %v971_v38  ;;  %582 = vmatmul.bf16.vlgmr.msra.gmra.mxu1 %v162_v45 }
  0x23   :  { %626 = vmatpush.bf16.msrb.mxu1 %v979_v39  ;;  %595 = vmatmul.bf16.vlgmr.msra.gmra.mxu2 %v163_v42 }
  0x24   :  { %639 = vmatpush.bf16.msrb.mxu2 %v987_v40  ;;  %608 = vmatmul.bf16.vlgmr.msra.gmra.mxu3 %v164_v43 }
  0x25   :  { %652 = vmatpush.bf16.msrb.mxu3 %v995_v41 }
  0x26   :  { %614 = vmatpush.bf16.msrb.mxu0 %v970_v46 }
  0x27   :  { %627 = vmatpush.bf16.msrb.mxu1 %v978_v47 }
  0x28   :  { %640 = vmatpush.bf16.msrb.mxu2 %v986_v48 }
  0x29   :  { %653 = vmatpush.bf16.msrb.mxu3 %v994_v49 }
  0x2a   :  { %615 = vmatpush.bf16.msrb.mxu0 %v969_v50 }
  0x2b   :  { %628 = vmatpush.bf16.msrb.mxu1 %v977_v51 }
  0x2c   :  { %641 = vmatpush.bf16.msrb.mxu2 %v985_v52 }
  0x2d   :  { %654 = vmatpush.bf16.msrb.mxu3 %v993_v53 }
  0x2e   :  { %616 = vmatpush.bf16.msrb.mxu0 %v968_v54 }
  0x2f   :  { %629 = vmatpush.bf16.msrb.mxu1 %v976_v55 }
  0x30   :  { %642 = vmatpush.bf16.msrb.mxu2 %v984_v56 }
  0x31   :  { %655 = vmatpush.bf16.msrb.mxu3 %v992_v57 }
  0x32   :  { %617 = vmatpush.bf16.msrb.mxu0 %v967_v58 }
  0x33   :  { %630 = vmatpush.bf16.msrb.mxu1 %v975_v59 }
  0x34   :  { %643 = vmatpush.bf16.msrb.mxu2 %v983_v60 }
  0x35   :  { %656 = vmatpush.bf16.msrb.mxu3 %v991_v61 }
  0x36   :  { %618 = vmatpush.bf16.msrb.mxu0 %v966_v62 }
  0x37   :  { %631 = vmatpush.bf16.msrb.mxu1 %v974_v63 }
  0x38   :  { %644 = vmatpush.bf16.msrb.mxu2 %v982_v0 }
  0x39   :  { %657 = vmatpush.bf16.msrb.mxu3 %v990_v1 }
  0x3a   :  { %619 = vmatpush.bf16.msrb.mxu0 %v965_v2 }
  0x3b   :  { %632 = vmatpush.bf16.msrb.mxu1 %v973_v3 }
  0x3c   :  { %645 = vmatpush.bf16.msrb.mxu2 %v981_v5 }
  0x3d   :  { %658 = vmatpush.bf16.msrb.mxu3 %v989_v6 }
  0x3e   :  { %620 = vmatpush.bf16.msrb.mxu0 %v964_v10 }
  0x3f   :  { %633 = vmatpush.bf16.msrb.mxu1 %v972_v11 }
  0x40   :  { %646 = vmatpush.bf16.msrb.mxu2 %v980_v14 }
  0x41   :  { %659 = vmatpush.bf16.msrb.mxu3 %v988_v15  ;;  %621 = vmatmul.bf16.vlgmr.msrb.gmra.mxu0 %v165_v16 }
  0x42   :  { %634 = vmatmul.bf16.vlgmr.msrb.gmra.mxu1 %v166_v17 }
  0x43   :  { %647 = vmatmul.bf16.vlgmr.msrb.gmra.mxu2 %v167_v18 }
  0x44   :  { %660 = vmatmul.bf16.vlgmr.msrb.gmra.mxu3 %v168_v19 }
  0x9e   :  { %v570_v20 = vpop.f32.mrf.mxu0 }
  0x9f   :  { %v583_v21 = vpop.f32.mrf.mxu1 }
  0xa0   :  { %v584_v28 = vadd.f32 %v583_v21, %v570_v20 }
  0xa6   :  { %v596_v22 = vpop.f32.mrf.mxu2  ;;  %v572_v24 = vpop.f32.mrf.mxu0 }
  0xa7   :  { %v609_v23 = vpop.f32.mrf.mxu3  ;;  %v585_v25 = vpop.f32.mrf.mxu1  ;;  %v597_v29 = vadd.f32 %v596_v22, %v584_v28 }
  0xa9   :  { %v610_v30 = vadd.f32 %v609_v23, %v597_v29 }
  0xae   :  { %v598_v26 = vpop.f32.mrf.mxu2 }
  0xaf   :  { %v611_v27 = vpop.f32.mrf.mxu3 }
  0xbe   :  { %v622_v31 = vpop.f32.mrf.mxu0 }
  0xbf   :  { %v635_v32 = vpop.f32.mrf.mxu1  ;;  %v623_v33 = vadd.f32 %v622_v31, %v610_v30 }
  0xc1   :  { %v636_v34 = vadd.f32 %v635_v32, %v623_v33 }
  0xc6   :  { %v648_v35 = vpop.f32.mrf.mxu2  ;;  %v624_v38 = vpop.f32.mrf.mxu0 }
  0xc7   :  { %v661_v36 = vpop.f32.mrf.mxu3  ;;  %v649_v37 = vadd.f32 %v648_v35, %v636_v34  ;;  %v637_v39 = vpop.f32.mrf.mxu1 }
  0xc9   :  { %v662_v40 = vadd.f32 %v661_v36, %v649_v37 }
  0xcb   :  { %671 = vst [vmem:[%s1220_s2] sm:$0xff] %v662_v40 }
  0xce   :  { %v650_v41 = vpop.f32.mrf.mxu2 }
  0xcf   :  { %v663_v42 = vpop.f32.mrf.mxu3 }

</bundles_post_ra>
